<compile_context>
chip_gen: v5e
topology: v5e:2x2
jax: 0.10.0
libtpu: 0.0.40
codegen_flags: <defaults>
</compile_context>

<pallas_src>
import numpy as np
import jax
import jax.numpy as jnp
from jax import lax
from jax.experimental import pallas as pl
from jax.experimental.pallas import tpu as pltpu

EPS = 1e-5
PAD = 6
KSIZE = 12

_VMEM = pl.BlockSpec(memory_space=pltpu.MemorySpace.VMEM)


def _pool_out(l1):
    # MaxPool1d(kernel_size=2, stride=2), no padding
    return (l1 - 2) // 2 + 1


def _pool_selector(n, block_in, n_cols, p_out, pad_out, position_major):
    """Constant 0/1 selector: MaxPool1d(2,2) (+ next conv's zero padding) for a
    batch stacked along rows.  Sample b's conv-output position l sits at input
    column b*block_in + l; junk cross-correlation rows are never selected.
    Returns stacked [even; odd] -> one MXU dot, then max the two row halves."""
    rp = p_out + 2 * pad_out
    rows_half = (p_out * n) if position_major else (rp * n)
    se = np.zeros((rows_half, n_cols), np.float32)
    so = np.zeros((rows_half, n_cols), np.float32)
    for b in range(n):
        for i in range(p_out):
            r = (i * n + b) if position_major else (b * rp + pad_out + i)
            se[r, b * block_in + 2 * i] = 1.0
            so[r, b * block_in + 2 * i + 1] = 1.0
    return np.concatenate([se, so], axis=0)


# ----------------------------------------------------------------------------
# Fused encoder kernel (single invocation, everything stays in VMEM)
# ----------------------------------------------------------------------------
def _encoder_kernel(a1_ref, w1_ref, w2_ref, w3_ref, wf_ref, wh_ref,
                    sel1_ref, sel2_ref, sel3_ref,
                    cst_ref, fst_ref, bh_ref,
                    mu_ref, lv_ref):
    f32 = jnp.float32
    bf16 = jnp.bfloat16
    N, LAT = mu_ref.shape

    cst = cst_ref[...]            # (6, C)  conv scale/shift rows (f32)
    fst = fst_ref[...]            # (2, H)  fc   scale/shift rows (f32)

    def conv_bn_relu(a_bf, w_ref, s_row, t_row):
        # single batched im2col dot, bf16 operands, f32 accumulation
        y = jnp.dot(a_bf, w_ref[...], preferred_element_type=f32)
        return jnp.maximum(y * s_row + t_row, 0.0)

    def pool(sel_ref, y):
        # stacked [even; odd] 0/1 selector matmul (bf16, exact) + f32 max.
        # Junk rows at inter-sample boundaries are simply never selected.
        z = jnp.dot(sel_ref[...], y.astype(bf16), preferred_element_type=f32)
        half = sel_ref.shape[0] // 2
        return jnp.maximum(z[:half], z[half:])

    def im2col(xp):
        # full cross-correlation im2col over the stacked batch: one contiguous
        # slice per tap, cast to bf16, lane-aligned concat.  Rows straddling
        # two samples produce junk conv rows dropped by the next pool selector.
        lc = xp.shape[0] - (KSIZE - 1)
        return jnp.concatenate(
            [xp[k:k + lc, :].astype(bf16) for k in range(KSIZE)], axis=1)

    # conv1 (host-built im2col) + bn1 + relu -> pool1 (+ conv2 zero padding)
    y1 = conv_bn_relu(a1_ref[...], w1_ref, cst[0:1, :], cst[1:2, :])
    xp2 = pool(sel1_ref, y1)
    # conv2 + bn2 + relu -> pool2 (+ conv3 zero padding)
    y2 = conv_bn_relu(im2col(xp2), w2_ref, cst[2:3, :], cst[3:4, :])
    xp3 = pool(sel2_ref, y2)
    # conv3 + bn3 + relu -> pool3 (position-major rows: row = l*N + b)
    y3 = conv_bn_relu(im2col(xp3), w3_ref, cst[4:5, :], cst[5:6, :])
    p3 = pool(sel3_ref, y3)                              # (Pc*N, C) f32

    # flatten: the PyTorch channel-major view is folded into wf's host-side
    # permutation; here we only lane-concat the per-position row blocks.
    pc = (sel3_ref.shape[0] // 2) // N
    h_in = jnp.concatenate(
        [p3[l * N:(l + 1) * N, :].astype(bf16) for l in range(pc)], axis=1)

    # fc + bn0 + ReLU (one batched dot); dropout = identity (eval mode)
    h = jnp.maximum(
        jnp.dot(h_in, wf_ref[...], preferred_element_type=f32)
        * fst[0:1, :] + fst[1:2, :], 0.0)

    # fused mu/logvar head: one (N,H)@(H,2*LAT) dot, two lane-dense stores
    heads = jnp.dot(h.astype(bf16), wh_ref[...],
                    preferred_element_type=f32) + bh_ref[...]
    mu_ref[...] = heads[:, :LAT]
    lv_ref[...] = heads[:, LAT:]


# ----------------------------------------------------------------------------
# Wrapper: one-time weight folding / layout prep + a single pallas_call
# ----------------------------------------------------------------------------
def encoder_pallas(x_ncl, p):
    """x_ncl: (N, C_in, L) -- same NCL convention as the PyTorch module."""
    N, cin0, L0 = x_ncl.shape
    C = p["c1"][0].shape[0]                      # conv channel count (128)
    H = p["wf"].shape[0]
    LAT = p["wmu"].shape[0]

    L1a = L0 + 2 * PAD - KSIZE + 1               # conv1 out length
    Pa = _pool_out(L1a); Rp1 = Pa + 2 * PAD      # pool1 out (+pad) rows/sample
    L1b = Rp1 - KSIZE + 1
    Pb = _pool_out(L1b); Rp2 = Pb + 2 * PAD
    L1c = Rp2 - KSIZE + 1
    Pc = _pool_out(L1c)

    # ---- conv1 im2col on the host (input is tiny): contraction K*Cin = 168
    # real terms padded to the next lane multiple instead of 1536 with zeros.
    x_nlc = jnp.transpose(x_ncl, (0, 2, 1)).astype(jnp.float32)
    xpad = jnp.pad(x_nlc, ((0, 0), (PAD, PAD), (0, 0)))
    a1 = jnp.concatenate([xpad[:, k:k + L1a, :] for k in range(KSIZE)], axis=2)
    kc_real = KSIZE * cin0
    kc1 = ((kc_real + 127) // 128) * 128
    a1 = jnp.pad(a1.reshape(N * L1a, kc_real), ((0, 0), (0, kc1 - kc_real)))
    a1 = a1.astype(jnp.bfloat16)

    def fold_conv_w(w, row_pad=None):
        cout, cin, k = w.shape                   # torch layout (Cout, Cin, K)
        wm = jnp.transpose(w, (2, 1, 0)).reshape(k * cin, cout)   # im2col order
        if row_pad is not None:
            wm = jnp.pad(wm, ((0, row_pad - k * cin), (0, 0)))
        return wm.astype(jnp.bfloat16)

    def fold_bn(bias, g, be, m, v):
        s = g / jnp.sqrt(v + EPS)
        return s, (bias - m) * s + be            # conv/fc bias + BN(eval) folded

    w1 = fold_conv_w(p["c1"][0], kc1)
    w2 = fold_conv_w(p["c2"][0])
    w3 = fold_conv_w(p["c3"][0])
    s1, t1 = fold_bn(p["c1"][1], *p["c1"][2:])
    s2, t2 = fold_bn(p["c2"][1], *p["c2"][2:])
    s3, t3 = fold_bn(p["c3"][1], *p["c3"][2:])
    cst = jnp.stack([s1, t1, s2, t2, s3, t3]).astype(jnp.float32)   # (6, C)

    # fc: fold the PyTorch channel-major flatten into a weight permutation,
    # fold fc bias + bn0(eval) into one scale/shift row pair.
    wf = jnp.transpose(p["wf"].reshape(H, C, Pc), (2, 1, 0)).reshape(Pc * C, H)
    sf, tf = fold_bn(p["bf"], p["g0"], p["b0"], p["m0"], p["v0"])
    fst = jnp.stack([sf, tf]).astype(jnp.float32)                   # (2, H)

    # fused mu/logvar head weight/bias
    wh = jnp.concatenate([p["wmu"].T, p["wlv"].T], axis=1).astype(jnp.bfloat16)
    bh = jnp.concatenate([p["bmu"], p["blv"]]).reshape(1, 2 * LAT).astype(jnp.float32)

    # constant maxpool(+padding) selectors, stacked [even; odd], built once
    sel1 = jnp.asarray(_pool_selector(N, L1a, N * L1a, Pa, PAD, False), jnp.bfloat16)
    sel2 = jnp.asarray(_pool_selector(N, Rp1, N * Rp1 - (KSIZE - 1), Pb, PAD, False), jnp.bfloat16)
    sel3 = jnp.asarray(_pool_selector(N, Rp2, N * Rp2 - (KSIZE - 1), Pc, 0, True), jnp.bfloat16)

    # Working set ~2 MB << default scoped VMEM on v5e/v6e/v7x -> single
    # invocation, no grid, no vmem_limit tuning needed.
    # TODO(synk): for realistic batch sizes add grid=(N//nb,) with
    # dimension_semantics=("parallel",) and constant index_maps for the weights.
    return pl.pallas_call(
        _encoder_kernel,
        out_shape=(jax.ShapeDtypeStruct((N, LAT), jnp.float32),
                   jax.ShapeDtypeStruct((N, LAT), jnp.float32)),
        in_specs=[_VMEM] * 12,
        out_specs=(_VMEM, _VMEM),
    )(a1, w1, w2, w3, wf.astype(jnp.bfloat16), wh,
      sel1, sel2, sel3, cst, fst, bh)


# ----------------------------------------------------------------------------
# Pure-JAX reference (PyTorch eval-mode semantics, NCL layout, f32)
# ----------------------------------------------------------------------------
def encoder_ref(x_ncl, p):
    def block(x, w, b, g, be, m, v):
        y = lax.conv_general_dilated(x, w, window_strides=(1,), padding=[(PAD, PAD)],
                                     dimension_numbers=("NCH", "OIH", "NCH"))
        y = y + b[None, :, None]
        y = (y - m[None, :, None]) * (g / jnp.sqrt(v + EPS))[None, :, None] + be[None, :, None]
        y = jnp.maximum(y, 0.0)
        L1 = y.shape[2]
        P = (L1 - 2) // 2 + 1
        return jnp.maximum(y[:, :, 0:2 * P:2], y[:, :, 1:2 * P:2])

    x = x_ncl
    for name in ("c1", "c2", "c3"):
        x = block(x, *p[name])
    xf = x.reshape(x.shape[0], -1)
    h = xf @ p["wf"].T + p["bf"]
    h = (h - p["m0"]) * (p["g0"] / jnp.sqrt(p["v0"] + EPS)) + p["b0"]
    h = jnp.maximum(h, 0.0)
    return h @ p["wmu"].T + p["bmu"], h @ p["wlv"].T + p["blv"]


# ----------------------------------------------------------------------------
if __name__ == "__main__":
    N, input_dim, seq_len, latent_dim = 2, 14, 32, 128
    # seq after 3x (conv(pad6,k12) + pool2): 32 -> 33 -> 16 -> 17 -> 8 -> 9 -> 4
    final_seq = 4
    fc_in = 128 * final_seq     # 512
    hidden = 512

    key = jax.random.PRNGKey(0)
    ks = iter(jax.random.split(key, 40))
    nrm = lambda shape, s=0.05: (s * jax.random.normal(next(ks), shape)).astype(jnp.float32)
    uni = lambda shape: jax.random.uniform(next(ks), shape, jnp.float32, 0.5, 1.5)

    def bn_params(c):
        return (1.0 + nrm((c,), 0.1), nrm((c,), 0.1), nrm((c,), 0.1), uni((c,)))

    def conv_params(cin, cout):
        g, be, m, v = bn_params(cout)
        return (nrm((cout, cin, KSIZE)), nrm((cout,)), g, be, m, v)

    params = {
        "c1": conv_params(input_dim, 128),
        "c2": conv_params(128, 128),
        "c3": conv_params(128, 128),
        "wf": nrm((hidden, fc_in)), "bf": nrm((hidden,)),
        "wmu": nrm((latent_dim, hidden)), "bmu": nrm((latent_dim,)),
        "wlv": nrm((latent_dim, hidden)), "blv": nrm((latent_dim,)),
    }
    params["g0"], params["b0"], params["m0"], params["v0"] = bn_params(hidden)

    x = jax.random.normal(next(ks), (N, input_dim, seq_len), jnp.float32)  # NCL like torch

    mu, logvar = jax.block_until_ready(jax.jit(encoder_pallas)(x, params))
    mu_ref, lv_ref = encoder_ref(x, params)

    # bf16 MXU operands with f32 accumulation vs. a pure-f32 reference across
    # 5 matmul stages -> ~3e-2 worst-case deviation observed; 5e-2 tolerance.
    np.testing.assert_allclose(np.asarray(mu), np.asarray(mu_ref), rtol=5e-2, atol=5e-2)
    np.testing.assert_allclose(np.asarray(logvar), np.asarray(lv_ref), rtol=5e-2, atol=5e-2)
    assert mu.shape == (N, latent_dim) and logvar.shape == (N, latent_dim)
    print("KERNEL_OK")
</pallas_src>

<mosaic_0001>
module attributes {stable_mosaic.version = 11 : i64} {
  func.func @_encoder_kernel(%arg0: memref<66x256xbf16, #tpu.memory_space<vmem>>, %arg1: memref<256x128xbf16, #tpu.memory_space<vmem>>, %arg2: memref<1536x128xbf16, #tpu.memory_space<vmem>>, %arg3: memref<1536x128xbf16, #tpu.memory_space<vmem>>, %arg4: memref<512x512xbf16, #tpu.memory_space<vmem>>, %arg5: memref<512x256xbf16, #tpu.memory_space<vmem>>, %arg6: memref<112x66xbf16, #tpu.memory_space<vmem>>, %arg7: memref<80x45xbf16, #tpu.memory_space<vmem>>, %arg8: memref<16x29xbf16, #tpu.memory_space<vmem>>, %arg9: memref<6x128xf32, #tpu.memory_space<vmem>>, %arg10: memref<2x512xf32, #tpu.memory_space<vmem>>, %arg11: memref<1x256xf32, #tpu.memory_space<vmem>>, %arg12: memref<2x128xf32, #tpu.memory_space<vmem>>, %arg13: memref<2x128xf32, #tpu.memory_space<vmem>>) attributes {dimension_semantics = [], scalar_prefetch = 0 : i64, scratch_operands = 0 : i64, tpu.core_type = #tpu.core_type<tc>} {
    %c0 = arith.constant 0 : index
    %c0_0 = arith.constant 0 : index
    %0 = vector.load %arg9[%c0, %c0_0] : memref<6x128xf32, #tpu.memory_space<vmem>>, vector<6x128xf32>
    %c0_1 = arith.constant 0 : index
    %c0_2 = arith.constant 0 : index
    %1 = vector.load %arg10[%c0_1, %c0_2] : memref<2x512xf32, #tpu.memory_space<vmem>>, vector<2x512xf32>
    %c0_3 = arith.constant 0 : index
    %c0_4 = arith.constant 0 : index
    %2 = vector.load %arg0[%c0_3, %c0_4] : memref<66x256xbf16, #tpu.memory_space<vmem>>, vector<66x256xbf16>
    %3 = vector.extract_strided_slice %0 {offsets = [0, 0], sizes = [1, 128], strides = [1, 1]} : vector<6x128xf32> to vector<1x128xf32>
    %4 = vector.extract_strided_slice %0 {offsets = [1, 0], sizes = [1, 128], strides = [1, 1]} : vector<6x128xf32> to vector<1x128xf32>
    %c0_5 = arith.constant 0 : index
    %c0_6 = arith.constant 0 : index
    %5 = vector.load %arg1[%c0_5, %c0_6] : memref<256x128xbf16, #tpu.memory_space<vmem>>, vector<256x128xbf16>
    %cst = arith.constant dense<0.000000e+00> : vector<66x128xf32>
    %6 = tpu.matmul %2, %5, %cst {dimension_numbers = #tpu.dot_dimension_numbers<[1], [0], [0], [1], [0, 0, 1, 1], [], []>} : vector<66x256xbf16>, vector<256x128xbf16>, vector<66x128xf32> -> vector<66x128xf32>
    %7 = vector.broadcast %3 : vector<1x128xf32> to vector<66x128xf32>
    %8 = arith.mulf %6, %7 : vector<66x128xf32>
    %9 = vector.broadcast %4 : vector<1x128xf32> to vector<66x128xf32>
    %10 = arith.addf %8, %9 : vector<66x128xf32>
    %cst_7 = arith.constant 0.000000e+00 : f32
    %11 = vector.broadcast %cst_7 : f32 to vector<66x128xf32>
    %12 = arith.maximumf %10, %11 : vector<66x128xf32>
    %c0_8 = arith.constant 0 : index
    %c0_9 = arith.constant 0 : index
    %13 = vector.load %arg6[%c0_8, %c0_9] : memref<112x66xbf16, #tpu.memory_space<vmem>>, vector<112x66xbf16>
    %14 = arith.truncf %12 : vector<66x128xf32> to vector<66x128xbf16>
    %cst_10 = arith.constant dense<0.000000e+00> : vector<112x128xf32>
    %15 = tpu.matmul %13, %14, %cst_10 {dimension_numbers = #tpu.dot_dimension_numbers<[1], [0], [0], [1], [0, 0, 1, 1], [], []>} : vector<112x66xbf16>, vector<66x128xbf16>, vector<112x128xf32> -> vector<112x128xf32>
    %16 = vector.extract_strided_slice %15 {offsets = [0, 0], sizes = [56, 128], strides = [1, 1]} : vector<112x128xf32> to vector<56x128xf32>
    %17 = vector.extract_strided_slice %15 {offsets = [56, 0], sizes = [56, 128], strides = [1, 1]} : vector<112x128xf32> to vector<56x128xf32>
    %18 = arith.maximumf %16, %17 : vector<56x128xf32>
    %19 = vector.extract_strided_slice %18 {offsets = [0, 0], sizes = [45, 128], strides = [1, 1]} : vector<56x128xf32> to vector<45x128xf32>
    %20 = arith.truncf %19 : vector<45x128xf32> to vector<45x128xbf16>
    %21 = vector.extract_strided_slice %18 {offsets = [1, 0], sizes = [45, 128], strides = [1, 1]} : vector<56x128xf32> to vector<45x128xf32>
    %22 = arith.truncf %21 : vector<45x128xf32> to vector<45x128xbf16>
    %23 = vector.extract_strided_slice %18 {offsets = [2, 0], sizes = [45, 128], strides = [1, 1]} : vector<56x128xf32> to vector<45x128xf32>
    %24 = arith.truncf %23 : vector<45x128xf32> to vector<45x128xbf16>
    %25 = vector.extract_strided_slice %18 {offsets = [3, 0], sizes = [45, 128], strides = [1, 1]} : vector<56x128xf32> to vector<45x128xf32>
    %26 = arith.truncf %25 : vector<45x128xf32> to vector<45x128xbf16>
    %27 = vector.extract_strided_slice %18 {offsets = [4, 0], sizes = [45, 128], strides = [1, 1]} : vector<56x128xf32> to vector<45x128xf32>
    %28 = arith.truncf %27 : vector<45x128xf32> to vector<45x128xbf16>
    %29 = vector.extract_strided_slice %18 {offsets = [5, 0], sizes = [45, 128], strides = [1, 1]} : vector<56x128xf32> to vector<45x128xf32>
    %30 = arith.truncf %29 : vector<45x128xf32> to vector<45x128xbf16>
    %31 = vector.extract_strided_slice %18 {offsets = [6, 0], sizes = [45, 128], strides = [1, 1]} : vector<56x128xf32> to vector<45x128xf32>
    %32 = arith.truncf %31 : vector<45x128xf32> to vector<45x128xbf16>
    %33 = vector.extract_strided_slice %18 {offsets = [7, 0], sizes = [45, 128], strides = [1, 1]} : vector<56x128xf32> to vector<45x128xf32>
    %34 = arith.truncf %33 : vector<45x128xf32> to vector<45x128xbf16>
    %35 = vector.extract_strided_slice %18 {offsets = [8, 0], sizes = [45, 128], strides = [1, 1]} : vector<56x128xf32> to vector<45x128xf32>
    %36 = arith.truncf %35 : vector<45x128xf32> to vector<45x128xbf16>
    %37 = vector.extract_strided_slice %18 {offsets = [9, 0], sizes = [45, 128], strides = [1, 1]} : vector<56x128xf32> to vector<45x128xf32>
    %38 = arith.truncf %37 : vector<45x128xf32> to vector<45x128xbf16>
    %39 = vector.extract_strided_slice %18 {offsets = [10, 0], sizes = [45, 128], strides = [1, 1]} : vector<56x128xf32> to vector<45x128xf32>
    %40 = arith.truncf %39 : vector<45x128xf32> to vector<45x128xbf16>
    %41 = vector.extract_strided_slice %18 {offsets = [11, 0], sizes = [45, 128], strides = [1, 1]} : vector<56x128xf32> to vector<45x128xf32>
    %42 = arith.truncf %41 : vector<45x128xf32> to vector<45x128xbf16>
    %43 = tpu.concatenate %20, %22, %24, %26, %28, %30, %32, %34, %36, %38, %40, %42 in 1 : vector<45x128xbf16>, vector<45x128xbf16>, vector<45x128xbf16>, vector<45x128xbf16>, vector<45x128xbf16>, vector<45x128xbf16>, vector<45x128xbf16>, vector<45x128xbf16>, vector<45x128xbf16>, vector<45x128xbf16>, vector<45x128xbf16>, vector<45x128xbf16> -> vector<45x1536xbf16>
    %44 = vector.extract_strided_slice %0 {offsets = [2, 0], sizes = [1, 128], strides = [1, 1]} : vector<6x128xf32> to vector<1x128xf32>
    %45 = vector.extract_strided_slice %0 {offsets = [3, 0], sizes = [1, 128], strides = [1, 1]} : vector<6x128xf32> to vector<1x128xf32>
    %c0_11 = arith.constant 0 : index
    %c0_12 = arith.constant 0 : index
    %46 = vector.load %arg2[%c0_11, %c0_12] : memref<1536x128xbf16, #tpu.memory_space<vmem>>, vector<1536x128xbf16>
    %cst_13 = arith.constant dense<0.000000e+00> : vector<45x128xf32>
    %47 = tpu.matmul %43, %46, %cst_13 {dimension_numbers = #tpu.dot_dimension_numbers<[1], [0], [0], [1], [0, 0, 1, 1], [], []>} : vector<45x1536xbf16>, vector<1536x128xbf16>, vector<45x128xf32> -> vector<45x128xf32>
    %48 = vector.broadcast %44 : vector<1x128xf32> to vector<45x128xf32>
    %49 = arith.mulf %47, %48 : vector<45x128xf32>
    %50 = vector.broadcast %45 : vector<1x128xf32> to vector<45x128xf32>
    %51 = arith.addf %49, %50 : vector<45x128xf32>
    %cst_14 = arith.constant 0.000000e+00 : f32
    %52 = vector.broadcast %cst_14 : f32 to vector<45x128xf32>
    %53 = arith.maximumf %51, %52 : vector<45x128xf32>
    %c0_15 = arith.constant 0 : index
    %c0_16 = arith.constant 0 : index
    %54 = vector.load %arg7[%c0_15, %c0_16] : memref<80x45xbf16, #tpu.memory_space<vmem>>, vector<80x45xbf16>
    %55 = arith.truncf %53 : vector<45x128xf32> to vector<45x128xbf16>
    %cst_17 = arith.constant dense<0.000000e+00> : vector<80x128xf32>
    %56 = tpu.matmul %54, %55, %cst_17 {dimension_numbers = #tpu.dot_dimension_numbers<[1], [0], [0], [1], [0, 0, 1, 1], [], []>} : vector<80x45xbf16>, vector<45x128xbf16>, vector<80x128xf32> -> vector<80x128xf32>
    %57 = vector.extract_strided_slice %56 {offsets = [0, 0], sizes = [40, 128], strides = [1, 1]} : vector<80x128xf32> to vector<40x128xf32>
    %58 = vector.extract_strided_slice %56 {offsets = [40, 0], sizes = [40, 128], strides = [1, 1]} : vector<80x128xf32> to vector<40x128xf32>
    %59 = arith.maximumf %57, %58 : vector<40x128xf32>
    %60 = vector.extract_strided_slice %59 {offsets = [0, 0], sizes = [29, 128], strides = [1, 1]} : vector<40x128xf32> to vector<29x128xf32>
    %61 = arith.truncf %60 : vector<29x128xf32> to vector<29x128xbf16>
    %62 = vector.extract_strided_slice %59 {offsets = [1, 0], sizes = [29, 128], strides = [1, 1]} : vector<40x128xf32> to vector<29x128xf32>
    %63 = arith.truncf %62 : vector<29x128xf32> to vector<29x128xbf16>
    %64 = vector.extract_strided_slice %59 {offsets = [2, 0], sizes = [29, 128], strides = [1, 1]} : vector<40x128xf32> to vector<29x128xf32>
    %65 = arith.truncf %64 : vector<29x128xf32> to vector<29x128xbf16>
    %66 = vector.extract_strided_slice %59 {offsets = [3, 0], sizes = [29, 128], strides = [1, 1]} : vector<40x128xf32> to vector<29x128xf32>
    %67 = arith.truncf %66 : vector<29x128xf32> to vector<29x128xbf16>
    %68 = vector.extract_strided_slice %59 {offsets = [4, 0], sizes = [29, 128], strides = [1, 1]} : vector<40x128xf32> to vector<29x128xf32>
    %69 = arith.truncf %68 : vector<29x128xf32> to vector<29x128xbf16>
    %70 = vector.extract_strided_slice %59 {offsets = [5, 0], sizes = [29, 128], strides = [1, 1]} : vector<40x128xf32> to vector<29x128xf32>
    %71 = arith.truncf %70 : vector<29x128xf32> to vector<29x128xbf16>
    %72 = vector.extract_strided_slice %59 {offsets = [6, 0], sizes = [29, 128], strides = [1, 1]} : vector<40x128xf32> to vector<29x128xf32>
    %73 = arith.truncf %72 : vector<29x128xf32> to vector<29x128xbf16>
    %74 = vector.extract_strided_slice %59 {offsets = [7, 0], sizes = [29, 128], strides = [1, 1]} : vector<40x128xf32> to vector<29x128xf32>
    %75 = arith.truncf %74 : vector<29x128xf32> to vector<29x128xbf16>
    %76 = vector.extract_strided_slice %59 {offsets = [8, 0], sizes = [29, 128], strides = [1, 1]} : vector<40x128xf32> to vector<29x128xf32>
    %77 = arith.truncf %76 : vector<29x128xf32> to vector<29x128xbf16>
    %78 = vector.extract_strided_slice %59 {offsets = [9, 0], sizes = [29, 128], strides = [1, 1]} : vector<40x128xf32> to vector<29x128xf32>
    %79 = arith.truncf %78 : vector<29x128xf32> to vector<29x128xbf16>
    %80 = vector.extract_strided_slice %59 {offsets = [10, 0], sizes = [29, 128], strides = [1, 1]} : vector<40x128xf32> to vector<29x128xf32>
    %81 = arith.truncf %80 : vector<29x128xf32> to vector<29x128xbf16>
    %82 = vector.extract_strided_slice %59 {offsets = [11, 0], sizes = [29, 128], strides = [1, 1]} : vector<40x128xf32> to vector<29x128xf32>
    %83 = arith.truncf %82 : vector<29x128xf32> to vector<29x128xbf16>
    %84 = tpu.concatenate %61, %63, %65, %67, %69, %71, %73, %75, %77, %79, %81, %83 in 1 : vector<29x128xbf16>, vector<29x128xbf16>, vector<29x128xbf16>, vector<29x128xbf16>, vector<29x128xbf16>, vector<29x128xbf16>, vector<29x128xbf16>, vector<29x128xbf16>, vector<29x128xbf16>, vector<29x128xbf16>, vector<29x128xbf16>, vector<29x128xbf16> -> vector<29x1536xbf16>
    %85 = vector.extract_strided_slice %0 {offsets = [4, 0], sizes = [1, 128], strides = [1, 1]} : vector<6x128xf32> to vector<1x128xf32>
    %86 = vector.extract_strided_slice %0 {offsets = [5, 0], sizes = [1, 128], strides = [1, 1]} : vector<6x128xf32> to vector<1x128xf32>
    %c0_18 = arith.constant 0 : index
    %c0_19 = arith.constant 0 : index
    %87 = vector.load %arg3[%c0_18, %c0_19] : memref<1536x128xbf16, #tpu.memory_space<vmem>>, vector<1536x128xbf16>
    %cst_20 = arith.constant dense<0.000000e+00> : vector<29x128xf32>
    %88 = tpu.matmul %84, %87, %cst_20 {dimension_numbers = #tpu.dot_dimension_numbers<[1], [0], [0], [1], [0, 0, 1, 1], [], []>} : vector<29x1536xbf16>, vector<1536x128xbf16>, vector<29x128xf32> -> vector<29x128xf32>
    %89 = vector.broadcast %85 : vector<1x128xf32> to vector<29x128xf32>
    %90 = arith.mulf %88, %89 : vector<29x128xf32>
    %91 = vector.broadcast %86 : vector<1x128xf32> to vector<29x128xf32>
    %92 = arith.addf %90, %91 : vector<29x128xf32>
    %cst_21 = arith.constant 0.000000e+00 : f32
    %93 = vector.broadcast %cst_21 : f32 to vector<29x128xf32>
    %94 = arith.maximumf %92, %93 : vector<29x128xf32>
    %c0_22 = arith.constant 0 : index
    %c0_23 = arith.constant 0 : index
    %95 = vector.load %arg8[%c0_22, %c0_23] : memref<16x29xbf16, #tpu.memory_space<vmem>>, vector<16x29xbf16>
    %96 = arith.truncf %94 : vector<29x128xf32> to vector<29x128xbf16>
    %cst_24 = arith.constant dense<0.000000e+00> : vector<16x128xf32>
    %97 = tpu.matmul %95, %96, %cst_24 {dimension_numbers = #tpu.dot_dimension_numbers<[1], [0], [0], [1], [0, 0, 1, 1], [], []>} : vector<16x29xbf16>, vector<29x128xbf16>, vector<16x128xf32> -> vector<16x128xf32>
    %98 = vector.extract_strided_slice %97 {offsets = [0, 0], sizes = [8, 128], strides = [1, 1]} : vector<16x128xf32> to vector<8x128xf32>
    %99 = vector.extract_strided_slice %97 {offsets = [8, 0], sizes = [8, 128], strides = [1, 1]} : vector<16x128xf32> to vector<8x128xf32>
    %100 = arith.maximumf %98, %99 : vector<8x128xf32>
    %101 = vector.extract_strided_slice %100 {offsets = [0, 0], sizes = [2, 128], strides = [1, 1]} : vector<8x128xf32> to vector<2x128xf32>
    %102 = arith.truncf %101 : vector<2x128xf32> to vector<2x128xbf16>
    %103 = vector.extract_strided_slice %100 {offsets = [2, 0], sizes = [2, 128], strides = [1, 1]} : vector<8x128xf32> to vector<2x128xf32>
    %104 = arith.truncf %103 : vector<2x128xf32> to vector<2x128xbf16>
    %105 = vector.extract_strided_slice %100 {offsets = [4, 0], sizes = [2, 128], strides = [1, 1]} : vector<8x128xf32> to vector<2x128xf32>
    %106 = arith.truncf %105 : vector<2x128xf32> to vector<2x128xbf16>
    %107 = vector.extract_strided_slice %100 {offsets = [6, 0], sizes = [2, 128], strides = [1, 1]} : vector<8x128xf32> to vector<2x128xf32>
    %108 = arith.truncf %107 : vector<2x128xf32> to vector<2x128xbf16>
    %109 = tpu.concatenate %102, %104, %106, %108 in 1 : vector<2x128xbf16>, vector<2x128xbf16>, vector<2x128xbf16>, vector<2x128xbf16> -> vector<2x512xbf16>
    %c0_25 = arith.constant 0 : index
    %c0_26 = arith.constant 0 : index
    %110 = vector.load %arg4[%c0_25, %c0_26] : memref<512x512xbf16, #tpu.memory_space<vmem>>, vector<512x512xbf16>
    %cst_27 = arith.constant dense<0.000000e+00> : vector<2x512xf32>
    %111 = tpu.matmul %109, %110, %cst_27 {dimension_numbers = #tpu.dot_dimension_numbers<[1], [0], [0], [1], [0, 0, 1, 1], [], []>} : vector<2x512xbf16>, vector<512x512xbf16>, vector<2x512xf32> -> vector<2x512xf32>
    %112 = vector.extract_strided_slice %1 {offsets = [0, 0], sizes = [1, 512], strides = [1, 1]} : vector<2x512xf32> to vector<1x512xf32>
    %113 = vector.broadcast %112 : vector<1x512xf32> to vector<2x512xf32>
    %114 = arith.mulf %111, %113 : vector<2x512xf32>
    %115 = vector.extract_strided_slice %1 {offsets = [1, 0], sizes = [1, 512], strides = [1, 1]} : vector<2x512xf32> to vector<1x512xf32>
    %116 = vector.broadcast %115 : vector<1x512xf32> to vector<2x512xf32>
    %117 = arith.addf %114, %116 : vector<2x512xf32>
    %cst_28 = arith.constant 0.000000e+00 : f32
    %118 = vector.broadcast %cst_28 : f32 to vector<2x512xf32>
    %119 = arith.maximumf %117, %118 : vector<2x512xf32>
    %120 = arith.truncf %119 : vector<2x512xf32> to vector<2x512xbf16>
    %c0_29 = arith.constant 0 : index
    %c0_30 = arith.constant 0 : index
    %121 = vector.load %arg5[%c0_29, %c0_30] : memref<512x256xbf16, #tpu.memory_space<vmem>>, vector<512x256xbf16>
    %cst_31 = arith.constant dense<0.000000e+00> : vector<2x256xf32>
    %122 = tpu.matmul %120, %121, %cst_31 {dimension_numbers = #tpu.dot_dimension_numbers<[1], [0], [0], [1], [0, 0, 1, 1], [], []>} : vector<2x512xbf16>, vector<512x256xbf16>, vector<2x256xf32> -> vector<2x256xf32>
    %c0_32 = arith.constant 0 : index
    %c0_33 = arith.constant 0 : index
    %123 = vector.load %arg11[%c0_32, %c0_33] : memref<1x256xf32, #tpu.memory_space<vmem>>, vector<1x256xf32>
    %124 = vector.broadcast %123 : vector<1x256xf32> to vector<2x256xf32>
    %125 = arith.addf %122, %124 : vector<2x256xf32>
    %126 = vector.extract_strided_slice %125 {offsets = [0, 0], sizes = [2, 128], strides = [1, 1]} : vector<2x256xf32> to vector<2x128xf32>
    %c0_34 = arith.constant 0 : index
    %c0_35 = arith.constant 0 : index
    %127 = vector.load %arg12[%c0_34, %c0_35] : memref<2x128xf32, #tpu.memory_space<vmem>>, vector<2x128xf32>
    tpu.vector_store %arg12[%c0_34, %c0_35], %126 {strides = array<i32>} : memref<2x128xf32, #tpu.memory_space<vmem>>, vector<2x128xf32>,
    %128 = vector.extract_strided_slice %125 {offsets = [0, 128], sizes = [2, 128], strides = [1, 1]} : vector<2x256xf32> to vector<2x128xf32>
    %c0_36 = arith.constant 0 : index
    %c0_37 = arith.constant 0 : index
    %129 = vector.load %arg13[%c0_36, %c0_37] : memref<2x128xf32, #tpu.memory_space<vmem>>, vector<2x128xf32>
    tpu.vector_store %arg13[%c0_36, %c0_37], %128 {strides = array<i32>} : memref<2x128xf32, #tpu.memory_space<vmem>>, vector<2x128xf32>,
    return
  }
}

</mosaic_0001>

<bundles_post_ra>
// kernel: encoder_pallas.1
= control target key start
LH: loop header
LB: loop body
LE: loop exit
PB: predicated region body
PF: predicated region fallthrough
CT: control target
= control target key end

     0   :  { %19 = vsyncpa [#allocation3], 0  ;;  %s9119_s0 = inlined_call_operand.vmem [shape: bf16[66,256], index: 0, kind: input, shape index: {}]   ;;  %s9120_s1 = inlined_call_operand.vmem [shape: bf16[256,128], index: 1, kind: input, shape index: {}]   ;;  %s9121_s2 = inlined_call_operand.vmem [shape: bf16[1536,128], index: 2, kind: input, shape index: {}]   ;;  %s9122_s3 = inlined_call_operand.vmem [shape: bf16[1536,128], index: 3, kind: input, shape index: {}]   ;;  %s9123_s4 = inlined_call_operand.vmem [shape: bf16[512,512], index: 4, kind: input, shape index: {}]   ;;  %s9124_s5 = inlined_call_operand.vmem [shape: bf16[512,256], index: 5, kind: input, shape index: {}]   ;;  %s9125_s6 = inlined_call_operand.vmem [shape: bf16[112,66], index: 6, kind: input, shape index: {}]   ;;  %s9126_s7 = inlined_call_operand.vmem [shape: bf16[80,45], index: 7, kind: input, shape index: {}]   ;;  %s9127_s8 = inlined_call_operand.vmem [shape: bf16[16,29], index: 8, kind: input, shape index: {}]   ;;  %s9128_s9 = inlined_call_operand.vmem [shape: f32[6,128], index: 9, kind: input, shape index: {}]   ;;  %s9129_s10 = inlined_call_operand.vmem [shape: f32[2,512], index: 10, kind: input, shape index: {}]   ;;  %s9130_s11 = inlined_call_operand.vmem [shape: f32[1,256], index: 11, kind: input, shape index: {}]   ;;  %s9131_s12 = inlined_call_operand.hbm [shape: f32[2,128], index: 12, kind: output, shape index: {0}]   ;;  %s9132_s13 = inlined_call_operand.hbm [shape: f32[2,128], index: 13, kind: output, shape index: {1}]  }
   0x1   :  { %v6271_v0 = vld [vmem:[%s9120_s1 + $0x38] sm:$0xff]  ;;  %v6270_v2 = vld [vmem:[%s9120_s1 + $0x30] sm:$0xff]  ;;  %v6269_v4 = vld [vmem:[%s9120_s1 + $0x28] sm:$0xff] }
   0x2   :  { %v6279_v1 = vld [vmem:[%s9120_s1 + $0x78] sm:$0xff]  ;;  %232 = vmatpush.bf16.msra.mxu0 %v6271_v0  ;;  %v6278_v3 = vld [vmem:[%s9120_s1 + $0x70] sm:$0xff]  ;;  %v6277_v5 = vld [vmem:[%s9120_s1 + $0x68] sm:$0xff] }
   0x3   :  { %265 = vmatpush.bf16.msra.mxu1 %v6279_v1 }
   0x6   :  { %233 = vmatpush.bf16.msra.mxu0 %v6270_v2 }
   0x7   :  { %266 = vmatpush.bf16.msra.mxu1 %v6278_v3 }
   0x8   :  { %20 = vsyncpa [#allocation5], 0  ;;  %v6268_v6 = vld [vmem:[%s9120_s1 + $0x20] sm:$0xff]  ;;  %v6267_v8 = vld [vmem:[%s9120_s1 + $0x18] sm:$0xff]  ;;  %vm403_vm0 = vcmask 1040384   ;;  %vm381_vm1 = vcmask 539648  }
   0x9   :  { %v6276_v7 = vld [vmem:[%s9120_s1 + $0x60] sm:$0xff]  ;;  %v6275_v9 = vld [vmem:[%s9120_s1 + $0x58] sm:$0xff]  ;;  %v6266_v10 = vld [vmem:[%s9120_s1 + $0x10] sm:$0xff]  ;;  %vm510_vm2 = vcmask 1046528   ;;  %vm483_vm3 = vsmask.f32 7424 }
   0xa   :  { %234 = vmatpush.bf16.msra.mxu0 %v6269_v4  ;;  %v6274_v11 = vld [vmem:[%s9120_s1 + $0x50] sm:$0xff]  ;;  %v6265_v12 = vld [vmem:[%s9120_s1 + $0x8] sm:$0xff]  ;;  %v6264_v14 = vld [vmem:[%s9120_s1] sm:$0xff]  ;;  %vm572_vm4 = vcmask 1044480   ;;  %vm537_vm5 = vcmask 1045504   ;;  %vm1770_vm9 = vcmask 367616  }
   0xb   :  { %267 = vmatpush.bf16.msra.mxu1 %v6277_v5  ;;  %v6273_v13 = vld [vmem:[%s9120_s1 + $0x48] sm:$0xff]  ;;  %v6272_v15 = vld [vmem:[%s9120_s1 + $0x40] sm:$0xff]  ;;  %v4569_v22 = vld [vmem:[%s9119_s0 + $0x10] sm:$0xf]  ;;  %vm519_vm6 = vsmask.f32 6400 }
   0xc   :  { %v4561_v16 = vld [vmem:[%s9119_s0] sm:$0xf]  ;;  %v6257_v17 = vld [vmem:[%s9119_s0 + $0x4] sm:$0xf0]  ;;  %v6256_v18 = vld [vmem:[%s9119_s0 + $0x4] sm:$0xf] }
   0xd   :  { %v4563_v19 = vld [vmem:[%s9119_s0 + $0x8] sm:$0xf0]  ;;  %v4562_v20 = vor.u32 %v6257_v17, %v4561_v16  ;;  %v6259_v23 = vld [vmem:[%s9119_s0 + $0x14] sm:$0xf0]  ;;  %v6258_v24 = vld [vmem:[%s9119_s0 + $0x14] sm:$0xf] }
   0xe   :  { %235 = vmatpush.bf16.msra.mxu0 %v6268_v6  ;;  %v4566_v21 = vor.u32 %v6256_v18, %v4563_v19  ;;  %v4571_v25 = vld [vmem:[%s9119_s0 + $0x18] sm:$0xf0]  ;;  %v4570_v26 = vor.u32 %v6259_v23, %v4569_v22  ;;  %v4577_v28 = vld [vmem:[%s9119_s0 + $0x20] sm:$0xf]  ;;  %v6261_v29 = vld [vmem:[%s9119_s0 + $0x24] sm:$0xf0] }
   0xf   :  { %268 = vmatpush.bf16.msra.mxu1 %v6276_v7  ;;  %v4574_v27 = vor.u32 %v6258_v24, %v4571_v25  ;;  %v6260_v30 = vld [vmem:[%s9119_s0 + $0x24] sm:$0xf]  ;;  %v4579_v31 = vld [vmem:[%s9119_s0 + $0x28] sm:$0xf0]  ;;  %v4578_v32 = vor.u32 %v6261_v29, %v4577_v28  ;;  %v4585_v34 = vld [vmem:[%s9119_s0 + $0x30] sm:$0xf] }
  0x10   :  { %v4582_v33 = vor.u32 %v6260_v30, %v4579_v31  ;;  %v6263_v35 = vld [vmem:[%s9119_s0 + $0x34] sm:$0xf0]  ;;  %v6262_v36 = vld [vmem:[%s9119_s0 + $0x34] sm:$0xf]  ;;  %v4587_v37 = vld [vmem:[%s9119_s0 + $0x38] sm:$0xf0] }
  0x11   :  { %v4586_v38 = vor.u32 %v6263_v35, %v4585_v34  ;;  %v4590_v39 = vor.u32 %v6262_v36, %v4587_v37  ;;  %v56_v40 = vld [vmem:[%s9119_s0 + $0x40] sm:$0x11]  ;;  %vm548_vm7 = vsmask.f32 5376  ;;  %vm583_vm8 = vsmask.f32 4352 }
  0x12   :  { %236 = vmatpush.bf16.msra.mxu0 %v6267_v8  ;;  %v114_v41 = vunpack.c.l.b16 %v56_v40  ;;  %v115_v42 = vunpack.c.h.b16 %v56_v40  ;;  %v46_v62 = vld [vmem:[%s9128_s9] sm:$0x3f]  ;;  %vm2982_vm10 = vcmask 236544   ;;  %s6734_s16 = smov [#allocation2]   ;;  %s4534_s19 = sshll.u32 %s9131_s12, 4  ;;  %s4535_s19 = int_to_ptr.hbm [resolvable:$true] %s4534_s19 }
  0x13   :  { %269 = vmatpush.bf16.msra.mxu1 %v6275_v9  ;;  %v298_v0 = vperm.slane %v46_v62, 0  ;;  %v308_v8 = vperm.slane %v46_v62, 1  ;;  %v6310_v62 = vld [vmem:[%s9121_s2 + $0xb8] sm:$0xff]  ;;  %s4532_s17 = sshll.u32 %s6734_s16, 4  ;;  %s4545_s22 = sshll.u32 %s9132_s13, 4  ;;  %s4533_s17 = int_to_ptr.vmem [resolvable:$true] %s4532_s17  ;;  %s4546_s22 = int_to_ptr.hbm [resolvable:$true] %s4545_s22 }
  0x14   :  { %v124_v43 = vpack.c.b16 %v114_v41, %v114_v41  ;;  %v125_v44 = vpack.c.b16 %v115_v42, %v115_v42 }
  0x16   :  { %237 = vmatpush.bf16.msra.mxu0 %v6266_v10 }
  0x17   :  { %270 = vmatpush.bf16.msra.mxu1 %v6274_v11 }
  0x1a   :  { %238 = vmatpush.bf16.msra.mxu0 %v6265_v12 }
  0x1b   :  { %271 = vmatpush.bf16.msra.mxu1 %v6273_v13 }
  0x1e   :  { %239 = vmatpush.bf16.msra.mxu0 %v6264_v14 }
  0x1f   :  { %272 = vmatpush.bf16.msra.mxu1 %v6272_v15 }
  0x21   :  { %240 = vmatmul.bf16.vlgmr.msra.gmra.mxu0 %v4562_v20 }
  0x22   :  { %273 = vmatmul.bf16.vlgmr.msra.gmra.mxu1 %v4566_v21  ;;  %1472 = vmatpush.bf16.msrb.mxu0 %v6310_v62 }
  0x31   :  { %245 = vmatmul.bf16.gmra.mxu0 %v4570_v26 }
  0x32   :  { %278 = vmatmul.bf16.gmra.mxu1 %v4574_v27 }
  0x41   :  { %250 = vmatmul.bf16.gmra.mxu0 %v4578_v32 }
  0x42   :  { %283 = vmatmul.bf16.gmra.mxu1 %v4582_v33 }
  0x51   :  { %255 = vmatmul.bf16.gmra.mxu0 %v4586_v38 }
  0x52   :  { %288 = vmatmul.bf16.gmra.mxu1 %v4590_v39 }
  0x61   :  { %260 = vmatmul.bf16.gmra.mxu0 %v124_v43 }
  0x62   :  { %293 = vmatmul.bf16.gmra.mxu1 %v125_v44 }
  0x9e   :  { %v241_v45 = vpop.f32.mrf.mxu0 }
  0x9f   :  { %v274_v46 = vpop.f32.mrf.mxu1 }
  0xa0   :  { %v275_v47 = vadd.f32 %v274_v46, %v241_v45  ;;  %v6280_v46 = vld [vmem:[%s9125_s6] sm:$0xff] }
  0xa2   :  { %v299_v34 = vmul.f32 %v298_v0, %v275_v47  ;;  %v6281_v47 = vld [vmem:[%s9125_s6 + $0x8] sm:$0xff] }
  0xa4   :  { %v309_v41 = vadd.f32 %v308_v8, %v299_v34 }
  0xa6   :  { %v243_v48 = vpop.f32.mrf.mxu0  ;;  %v318_v44 = vmax.f32 %v309_v41, 0.0 }
  0xa7   :  { %v276_v49 = vpop.f32.mrf.mxu1 }
  0xa8   :  { %v277_v22 = vadd.f32 %v276_v49, %v243_v48  ;;  %v6282_v48 = vld [vmem:[%s9125_s6 + $0x10] sm:$0xff]  ;;  %v6283_v49 = vld [vmem:[%s9125_s6 + $0x18] sm:$0xff] }
  0xaa   :  { %v300_v30 = vmul.f32 %v298_v0, %v277_v22  ;;  %v6329_v22 = vld [vmem:[%s9121_s2 + $0x150] sm:$0xff] }
  0xac   :  { %v310_v39 = vadd.f32 %v308_v8, %v300_v30  ;;  %v6301_v30 = vld [vmem:[%s9121_s2 + $0x70] sm:$0xff] }
  0xae   :  { %v246_v50 = vpop.f32.mrf.mxu0  ;;  %v319_v43 = vmax.f32 %v310_v39, 0.0  ;;  %v6299_v39 = vld [vmem:[%s9121_s2 + $0x60] sm:$0xff] }
  0xaf   :  { %v279_v51 = vpop.f32.mrf.mxu1 }
  0xb0   :  { %v280_v16 = vadd.f32 %v279_v51, %v246_v50  ;;  %v341_v45 = vpack.c.bf16 %v319_v43, %v318_v44  ;;  %v6284_v50 = vld [vmem:[%s9125_s6 + $0x20] sm:$0xff]  ;;  %v6285_v51 = vld [vmem:[%s9125_s6 + $0x28] sm:$0xff]  ;;  %v6298_v43 = vld [vmem:[%s9121_s2 + $0x58] sm:$0xff] }
  0xb2   :  { %v301_v27 = vmul.f32 %v298_v0, %v280_v16  ;;  %v6305_v16 = vld [vmem:[%s9121_s2 + $0x90] sm:$0xff] }
  0xb4   :  { %v311_v36 = vadd.f32 %v308_v8, %v301_v27  ;;  %v6302_v27 = vld [vmem:[%s9121_s2 + $0x78] sm:$0xff] }
  0xb6   :  { %v248_v52 = vpop.f32.mrf.mxu0  ;;  %v320_v40 = vmax.f32 %v311_v36, 0.0 }
  0xb7   :  { %v281_v53 = vpop.f32.mrf.mxu1 }
  0xb8   :  { %v282_v12 = vadd.f32 %v281_v53, %v248_v52  ;;  %v6286_v52 = vld [vmem:[%s9125_s6 + $0x30] sm:$0xff] }
  0xba   :  { %v302_v23 = vmul.f32 %v298_v0, %v282_v12 }
  0xbc   :  { %v312_v33 = vadd.f32 %v308_v8, %v302_v23  ;;  %v6303_v23 = vld [vmem:[%s9121_s2 + $0x80] sm:$0xff] }
  0xbe   :  { %v251_v54 = vpop.f32.mrf.mxu0  ;;  %v321_v38 = vmax.f32 %v312_v33, 0.0 }
  0xbf   :  { %v284_v55 = vpop.f32.mrf.mxu1 }
  0xc0   :  { %v285_v9 = vadd.f32 %v284_v55, %v251_v54  ;;  %v342_v42 = vpack.c.bf16 %v321_v38, %v320_v40  ;;  %v6294_v55 = vld [vmem:[%s9121_s2 + $0x38] sm:$0xff] }
  0xc1   :  { %1424 = vmatpush.bf16.msra.mxu3 %v6294_v55 }
  0xc2   :  { %v303_v17 = vmul.f32 %v298_v0, %v285_v9  ;;  %v6307_v9 = vld [vmem:[%s9121_s2 + $0xa0] sm:$0xff] }
  0xc4   :  { %v313_v29 = vadd.f32 %v308_v8, %v303_v17  ;;  %v6314_v17 = vld [vmem:[%s9121_s2 + $0xd8] sm:$0xff] }
  0xc6   :  { %v253_v56 = vpop.f32.mrf.mxu0  ;;  %v322_v35 = vmax.f32 %v313_v29, 0.0  ;;  %v6327_v29 = vld [vmem:[%s9121_s2 + $0x140] sm:$0xff] }
  0xc7   :  { %v286_v57 = vpop.f32.mrf.mxu1 }
  0xc8   :  { %v287_v5 = vadd.f32 %v286_v57, %v253_v56  ;;  %v6293_v56 = vld [vmem:[%s9121_s2 + $0x30] sm:$0xff] }
  0xc9   :  { %1425 = vmatpush.bf16.msra.mxu3 %v6293_v56 }
  0xca   :  { %v304_v13 = vmul.f32 %v298_v0, %v287_v5  ;;  %v6308_v5 = vld [vmem:[%s9121_s2 + $0xa8] sm:$0xff] }
  0xcc   :  { %v314_v25 = vadd.f32 %v308_v8, %v304_v13  ;;  %v6306_v13 = vld [vmem:[%s9121_s2 + $0x98] sm:$0xff] }
  0xce   :  { %v256_v58 = vpop.f32.mrf.mxu0  ;;  %v323_v32 = vmax.f32 %v314_v25, 0.0  ;;  %v6328_v25 = vld [vmem:[%s9121_s2 + $0x148] sm:$0xff] }
  0xcf   :  { %v289_v59 = vpop.f32.mrf.mxu1 }
  0xd0   :  { %v290_v1 = vadd.f32 %v289_v59, %v256_v58  ;;  %v343_v37 = vpack.c.bf16 %v323_v32, %v322_v35  ;;  %v6292_v58 = vld [vmem:[%s9121_s2 + $0x28] sm:$0xff]  ;;  %v6291_v59 = vld [vmem:[%s9121_s2 + $0x20] sm:$0xff] }
  0xd1   :  { %1426 = vmatpush.bf16.msra.mxu3 %v6292_v58  ;;  %v6300_v35 = vld [vmem:[%s9121_s2 + $0x68] sm:$0xff]  ;;  %v6349_v58 = vld [vmem:[%s9121_s2 + $0x1f0] sm:$0xff] }
  0xd2   :  { %v305_v10 = vmul.f32 %v298_v0, %v290_v1  ;;  %v6318_v1 = vld [vmem:[%s9121_s2 + $0xf8] sm:$0xff] }
  0xd3   :  { %1496 = vmatpush.bf16.msrb.mxu1 %v6318_v1 }
  0xd4   :  { %v315_v20 = vadd.f32 %v308_v8, %v305_v10  ;;  %v6316_v10 = vld [vmem:[%s9121_s2 + $0xe8] sm:$0xff] }
  0xd5   :  { %1427 = vmatpush.bf16.msra.mxu3 %v6291_v59 }
  0xd6   :  { %v258_v60 = vpop.f32.mrf.mxu0  ;;  %v324_v28 = vmax.f32 %v315_v20, 0.0  ;;  %v6304_v20 = vld [vmem:[%s9121_s2 + $0x88] sm:$0xff] }
  0xd7   :  { %v291_v61 = vpop.f32.mrf.mxu1 }
  0xd8   :  { %v292_v63 = vadd.f32 %v291_v61, %v258_v60  ;;  %v6290_v61 = vld [vmem:[%s9121_s2 + $0x18] sm:$0xff] }
  0xd9   :  { %1428 = vmatpush.bf16.msra.mxu3 %v6290_v61  ;;  %v6295_v61 = vld [vmem:[%s9121_s2 + $0x40] sm:$0xff] }
  0xda   :  { %v306_v6 = vmul.f32 %v298_v0, %v292_v63  ;;  %v6289_v63 = vld [vmem:[%s9121_s2 + $0x10] sm:$0xff] }
  0xdc   :  { %v316_v14 = vadd.f32 %v308_v8, %v306_v6  ;;  %v6317_v6 = vld [vmem:[%s9121_s2 + $0xf0] sm:$0xff] }
  0xdd   :  { %1429 = vmatpush.bf16.msra.mxu3 %v6289_v63  ;;  %1497 = vmatpush.bf16.msrb.mxu1 %v6317_v6 }
  0xde   :  { %v261_v2 = vpop.f32.mrf.mxu0  ;;  %v325_v24 = vmax.f32 %v316_v14, 0.0  ;;  %v6315_v14 = vld [vmem:[%s9121_s2 + $0xe0] sm:$0xff] }
  0xdf   :  { %v294_v3 = vpop.f32.mrf.mxu1 }
  0xe0   :  { %v295_v4 = vadd.f32 %v294_v3, %v261_v2  ;;  %v344_v31 = vpack.c.bf16 %v325_v24, %v324_v28  ;;  %v6334_v2 = vld [vmem:[%s9121_s2 + $0x178] sm:$0xff]  ;;  %v6312_v24 = vld [vmem:[%s9121_s2 + $0xc8] sm:$0xff]  ;;  %v6311_v28 = vld [vmem:[%s9121_s2 + $0xc0] sm:$0xff] }
  0xe1   :  { %1498 = vmatpush.bf16.msrb.mxu1 %v6316_v10  ;;  %v6348_v10 = vld [vmem:[%s9121_s2 + $0x1e8] sm:$0xff] }
  0xe2   :  { %v307_v7 = vmul.f32 %v298_v0, %v295_v4  ;;  %v6309_v0 = vld [vmem:[%s9121_s2 + $0xb0] sm:$0xff]  ;;  %v6288_v4 = vld [vmem:[%s9121_s2 + $0x8] sm:$0xff] }
  0xe3   :  { %1473 = vmatpush.bf16.msrb.mxu0 %v6309_v0  ;;  %1430 = vmatpush.bf16.msra.mxu3 %v6288_v4 }
  0xe4   :  { %v317_v11 = vadd.f32 %v308_v8, %v307_v7  ;;  %v6333_v7 = vld [vmem:[%s9121_s2 + $0x170] sm:$0xff]  ;;  %v6287_v8 = vld [vmem:[%s9121_s2] sm:$0xff] }
  0xe5   :  { %1499 = vmatpush.bf16.msrb.mxu1 %v6315_v14 }
  0xe6   :  { %v326_v15 = vmax.f32 %v317_v11, 0.0  ;;  %v263_v18 = vpop.f32.mrf.mxu0  ;;  %v6332_v11 = vld [vmem:[%s9121_s2 + $0x168] sm:$0xff] }
  0xe7   :  { %v296_v19 = vpop.f32.mrf.mxu1  ;;  %1474 = vmatpush.bf16.msrb.mxu0 %v6308_v5  ;;  %1431 = vmatpush.bf16.msra.mxu3 %v6287_v8  ;;  %v6330_v18 = vld [vmem:[%s9121_s2 + $0x158] sm:$0xff] }
  0xe8   :  { %v345_v21 = vpack.c.bf16 %v326_v15, %v326_v15  ;;  %v6331_v15 = vld [vmem:[%s9121_s2 + $0x160] sm:$0xff] }
  0xe9   :  { %1500 = vmatpush.bf16.msrb.mxu1 %v6314_v17 }
  0xea   :  { %v405_v26 = vsel %vm403_vm0, %v345_v21, 0  ;;  %v6313_v21 = vld [vmem:[%s9121_s2 + $0xd0] sm:$0xff] }
  0xeb   :  { %410 = vmatpush.bf16.msra.mxu2 %v405_v26  ;;  %1475 = vmatpush.bf16.msrb.mxu0 %v6307_v9  ;;  %v6339_v9 = vld [vmem:[%s9121_s2 + $0x1a0] sm:$0xff] }
  0xec   :  { %1448 = vmatpush.bf16.msrb.mxu3 %v6302_v27 }
  0xed   :  { %1501 = vmatpush.bf16.msrb.mxu1 %v6313_v21 }
  0xef   :  { %411 = vmatpush.bf16.msra.mxu2 %v344_v31  ;;  %1476 = vmatpush.bf16.msrb.mxu0 %v6306_v13 }
  0xf0   :  { %1449 = vmatpush.bf16.msrb.mxu3 %v6301_v30  ;;  %v6338_v30 = vld [vmem:[%s9121_s2 + $0x198] sm:$0xff] }
  0xf1   :  { %1502 = vmatpush.bf16.msrb.mxu1 %v6312_v24 }
  0xf3   :  { %412 = vmatpush.bf16.msra.mxu2 %v343_v37  ;;  %1477 = vmatpush.bf16.msrb.mxu0 %v6305_v16 }
  0xf4   :  { %1450 = vmatpush.bf16.msrb.mxu3 %v6300_v35 }
  0xf5   :  { %1503 = vmatpush.bf16.msrb.mxu1 %v6311_v28 }
  0xf7   :  { %413 = vmatpush.bf16.msra.mxu2 %v342_v42  ;;  %1478 = vmatpush.bf16.msrb.mxu0 %v6304_v20 }
  0xf8   :  { %1451 = vmatpush.bf16.msrb.mxu3 %v6299_v39 }
  0xfb   :  { %414 = vmatpush.bf16.msra.mxu2 %v341_v45  ;;  %1479 = vmatpush.bf16.msrb.mxu0 %v6303_v23  ;;  %v6342_v45 = vld [vmem:[%s9121_s2 + $0x1b8] sm:$0xff] }
  0xfc   :  { %1452 = vmatpush.bf16.msrb.mxu3 %v6298_v43 }
  0xfe   :  { %4683 = vmatmul.msk.bf16.vlgmr.msra.gmra.mxu2 %vm381_vm1, %v6280_v46 }
  0xff   :  { %1544 = vmatpush.bf16.msrb.mxu2 %v6334_v2  ;;  %1568 = vmatpush.bf16.msra.mxu0 %v6342_v45 }
 0x103   :  { %1545 = vmatpush.bf16.msrb.mxu2 %v6333_v7 }
 0x107   :  { %1546 = vmatpush.bf16.msrb.mxu2 %v6332_v11  ;;  %v6364_v11 = vld [vmem:[%s9121_s2 + $0x268] sm:$0xff] }
 0x10b   :  { %1547 = vmatpush.bf16.msrb.mxu2 %v6331_v15 }
 0x10e   :  { %4684 = vmatmul.msk.bf16.gmra.mxu2 %vm381_vm1, %v6281_v47  ;;  %v6297_v47 = vld [vmem:[%s9121_s2 + $0x50] sm:$0xff] }
 0x10f   :  { %1548 = vmatpush.bf16.msrb.mxu2 %v6330_v18  ;;  %1453 = vmatpush.bf16.msrb.mxu3 %v6297_v47  ;;  %v6346_v47 = vld [vmem:[%s9121_s2 + $0x1d8] sm:$0xff] }
 0x113   :  { %1549 = vmatpush.bf16.msrb.mxu2 %v6329_v22 }
 0x117   :  { %1550 = vmatpush.bf16.msrb.mxu2 %v6328_v25 }
 0x11b   :  { %1551 = vmatpush.bf16.msrb.mxu2 %v6327_v29 }
 0x11e   :  { %4685 = vmatmul.msk.bf16.gmra.mxu2 %vm381_vm1, %v6282_v48 }
 0x12e   :  { %4686 = vmatmul.msk.bf16.gmra.mxu2 %vm381_vm1, %v6283_v49 }
 0x13e   :  { %4687 = vmatmul.msk.bf16.gmra.mxu2 %vm381_vm1, %v6284_v50  ;;  %v6341_v50 = vld [vmem:[%s9121_s2 + $0x1b0] sm:$0xff] }
 0x13f   :  { %1569 = vmatpush.bf16.msra.mxu0 %v6341_v50 }
 0x14e   :  { %4688 = vmatmul.msk.bf16.gmra.mxu2 %vm381_vm1, %v6285_v51  ;;  %v6350_v51 = vld [vmem:[%s9121_s2 + $0x1f8] sm:$0xff] }
 0x14f   :  { %1592 = vmatpush.bf16.msra.mxu1 %v6350_v51 }
 0x153   :  { %1593 = vmatpush.bf16.msra.mxu1 %v6349_v58 }
 0x157   :  { %1594 = vmatpush.bf16.msra.mxu1 %v6348_v10 }
 0x15e   :  { %4689 = vmatmul.msk.bf16.gmra.mxu2 %vm381_vm1, %v6286_v52  ;;  %v6366_v52 = vld [vmem:[%s9121_s2 + $0x278] sm:$0xff] }
 0x15f   :  { %1640 = vmatpush.bf16.msra.mxu2 %v6366_v52 }
 0x181   :  { %v6929_v53 = vpop.f32.mrf.mxu2 }
 0x189   :  { %v6931_v54 = vpop.f32.mrf.mxu2 }
 0x191   :  { %v6939_v57 = vpop.f32.mrf.mxu2 }
 0x199   :  { %v6947_v60 = vpop.f32.mrf.mxu2 }
 0x1a1   :  { %v6967_v3 = vpop.f32.mrf.mxu2 }
 0x1a9   :  { %v6993_v12 = vpop.f32.mrf.mxu2 }
 0x1b1   :  { %v7013_v19 = vpop.f32.mrf.mxu2 }
 0x1b9   :  { %v433_v26 = vpop.f32.mrf.mxu2 }
 0x1ba   :  { %v451_v31 = vmax.f32 %v6929_v53, %v433_v26 }
 0x1bc   :  { %v458_v33 = vpack.c.bf16 %v451_v31, %v451_v31  ;;  %v6347_v31 = vld [vmem:[%s9121_s2 + $0x1e0] sm:$0xff] }
 0x1bd   :  { %1595 = vmatpush.bf16.msra.mxu1 %v6347_v31 }
 0x1be   :  { %v471_v37 = vunpack.c.l.b16 %v458_v33 }
 0x1c1   :  { %v436_v32 = vpop.f32.mrf.mxu2  ;;  %1596 = vmatpush.bf16.msra.mxu1 %v6346_v47 }
 0x1c2   :  { %v452_v34 = vmax.f32 %v6931_v54, %v436_v32  ;;  %v6296_v54 = vld [vmem:[%s9121_s2 + $0x48] sm:$0xff]  ;;  %v6363_v32 = vld [vmem:[%s9121_s2 + $0x260] sm:$0xff] }
 0x1c3   :  { %1454 = vmatpush.bf16.msrb.mxu3 %v6296_v54  ;;  %v6345_v54 = vld [vmem:[%s9121_s2 + $0x1d0] sm:$0xff] }
 0x1c4   :  { %v459_v36 = vpack.c.bf16 %v452_v34, %v452_v34 }
 0x1c5   :  { %1597 = vmatpush.bf16.msra.mxu1 %v6345_v54  ;;  %v6374_v54 = vld [vmem:[%s9121_s2 + $0x2b8] sm:$0xff] }
 0x1c6   :  { %v472_v38 = vunpack.c.l.b16 %v459_v36 }
 0x1c7   :  { %1455 = vmatpush.bf16.msrb.mxu3 %v6295_v61  ;;  %v6344_v61 = vld [vmem:[%s9121_s2 + $0x1c8] sm:$0xff] }
 0x1c8   :  { %v7053_v40 = vpack.c.b16 %v472_v38, %v471_v37 }
 0x1c9   :  { %v438_v41 = vpop.f32.mrf.mxu2  ;;  %1598 = vmatpush.bf16.msra.mxu1 %v6344_v61 }
 0x1ca   :  { %v453_v42 = vmax.f32 %v6939_v57, %v438_v41  ;;  %1432 = vmatmul.bf16.vlgmr.msra.gmra.mxu3 %v7053_v40  ;;  %v7082_v55 = vshrl.u32 %v7053_v40, 16  ;;  %v7085_v56 = vshll.u32 %v7053_v40, 16  ;;  %v6340_v57 = vld [vmem:[%s9121_s2 + $0x1a8] sm:$0xff]  ;;  %v511_v4 = vrot.slane %v7053_v40, 1 }
 0x1cb   :  { %1570 = vmatpush.bf16.msra.mxu0 %v6340_v57  ;;  %v573_v5 = vrot.slane %v7053_v40, 3  ;;  %v538_v13 = vrot.slane %v7053_v40, 2 }
 0x1cc   :  { %v460_v44 = vpack.c.bf16 %v453_v42, %v453_v42  ;;  %v520_v63 = vrot.slane %v7082_v55, 1  ;;  %v521_v0 = vrot.slane %v7085_v56, 2  ;;  %v489_v1 = vrot.slane %v7085_v56, 1 }
 0x1cd   :  { %v549_v7 = vrot.slane %v7082_v55, 2  ;;  %v550_v8 = vrot.slane %v7085_v56, 3  ;;  %v584_v17 = vrot.slane %v7082_v55, 3  ;;  %v585_v22 = vrot.slane %v7085_v56, 4 }
 0x1ce   :  { %v473_v46 = vunpack.c.l.b16 %v460_v44  ;;  %v522_v18 = vor.u32 %v521_v0, %v520_v63  ;;  %v490_v20 = vor.u32 %v489_v1, %v7082_v55  ;;  %v6360_v63 = vld [vmem:[%s9121_s2 + $0x248] sm:$0xff] }
 0x1cf   :  { %1571 = vmatpush.bf16.msra.mxu0 %v6339_v9 }
 0x1d0   :  { %v7066_v48 = vpack.c.b16 %v473_v46, %v472_v38  ;;  %v551_v38 = vor.u32 %v550_v8, %v549_v7 }
 0x1d1   :  { %v441_v49 = vpop.f32.mrf.mxu2 }
 0x1d2   :  { %v454_v53 = vmax.f32 %v6947_v60, %v441_v49  ;;  %v6365_v60 = vld [vmem:[%s9121_s2 + $0x270] sm:$0xff]  ;;  %v6362_v49 = vld [vmem:[%s9121_s2 + $0x258] sm:$0xff] }
 0x1d3   :  { %1641 = vmatpush.bf16.msra.mxu2 %v6365_v60  ;;  %1572 = vmatpush.bf16.msra.mxu0 %v6338_v30  ;;  %v6335_v60 = vld [vmem:[%s9121_s2 + $0x180] sm:$0xff] }
 0x1d4   :  { %v461_v59 = vpack.c.bf16 %v454_v53, %v454_v53  ;;  %v6336_v53 = vld [vmem:[%s9121_s2 + $0x188] sm:$0xff] }
 0x1d6   :  { %v7099_v62 = vunpack.c.l.b16 %v461_v59 }
 0x1d7   :  { %1642 = vmatpush.bf16.msra.mxu2 %v6364_v11 }
 0x1d8   :  { %v7105_v2 = vpack.c.b16 %v7099_v62, %v473_v46  ;;  %v6337_v46 = vld [vmem:[%s9121_s2 + $0x190] sm:$0xff] }
 0x1d9   :  { %v443_v6 = vpop.f32.mrf.mxu2  ;;  %1573 = vmatpush.bf16.msra.mxu0 %v6337_v46 }
 0x1da   :  { %1437 = vmatmul.bf16.gmra.mxu3 %v7105_v2  ;;  %v512_v14 = vrot.slane %v7105_v2, 1  ;;  %v7124_v15 = vshll.u32 %v7105_v2, 16  ;;  %v7127_v16 = vshrl.u32 %v7105_v2, 16  ;;  %v574_v21 = vrot.slane %v7105_v2, 3 }
 0x1db   :  { %v539_v26 = vrot.slane %v7105_v2, 2  ;;  %v455_v34 = vmax.f32 %v6967_v3, %v443_v6  ;;  %1643 = vmatpush.bf16.msra.mxu2 %v6363_v32  ;;  %v586_v3 = vor.u32 %v585_v22, %v584_v17  ;;  %v6326_v6 = vld [vmem:[%s9121_s2 + $0x138] sm:$0xff]  ;;  %v6324_v2 = vld [vmem:[%s9121_s2 + $0x128] sm:$0xff] }
 0x1dc   :  { %v513_v23 = vsel %vm510_vm2, %v511_v4, %v512_v14  ;;  %v523_v24 = vrot.slane %v7127_v16, 1  ;;  %v524_v25 = vrot.slane %v7124_v15, 2  ;;  %v552_v27 = vrot.slane %v7127_v16, 2  ;;  %1520 = vmatpush.bf16.msra.mxu3 %v6326_v6  ;;  %v6371_v6 = vld [vmem:[%s9121_s2 + $0x2a0] sm:$0xff] }
 0x1dd   :  { %1480 = vmatmul.bf16.vlgmr.msrb.gmra.mxu0 %v513_v23  ;;  %v553_v28 = vrot.slane %v7124_v15, 3  ;;  %v494_v29 = vrot.slane %v7124_v15, 1  ;;  %v7154_v33 = vsel %vm572_vm4, %v573_v5, %v574_v21  ;;  %v587_v36 = vrot.slane %v7127_v16, 3 }
 0x1de   :  { %v7157_v35 = vor.u32 %v524_v25, %v523_v24  ;;  %v588_v37 = vrot.slane %v7124_v15, 4  ;;  %v7173_v43 = vsel %vm537_vm5, %v538_v13, %v539_v26  ;;  %v462_v50 = vpack.c.bf16 %v455_v34, %v455_v34  ;;  %1574 = vmatpush.bf16.msra.mxu0 %v6336_v53  ;;  %v6322_v53 = vld [vmem:[%s9121_s2 + $0x118] sm:$0xff] }
 0x1df   :  { %v7161_v39 = vor.u32 %v553_v28, %v552_v27  ;;  %v7164_v40 = vsel %vm483_vm3, %v490_v20, %v494_v29  ;;  %1644 = vmatpush.bf16.msra.mxu2 %v6362_v49  ;;  %v498_v7 = vor.u32 %v7127_v16, %v494_v29  ;;  %v6325_v20 = vld [vmem:[%s9121_s2 + $0x130] sm:$0xff] }
 0x1e0   :  { %v526_v41 = vsel %vm519_vm6, %v522_v18, %v7157_v35  ;;  %v7168_v42 = vor.u32 %v588_v37, %v587_v36  ;;  %v7200_v56 = vunpack.c.l.b16 %v462_v50  ;;  %v6343_v18 = vld [vmem:[%s9121_s2 + $0x1c0] sm:$0xff]  ;;  %1521 = vmatpush.bf16.msra.mxu3 %v6325_v20 }
 0x1e1   :  { %v446_v44 = vpop.f32.mrf.mxu2  ;;  %1504 = vmatmul.bf16.vlgmr.msrb.gmra.mxu1 %v526_v41  ;;  %v555_v45 = vsel %vm548_vm7, %v551_v38, %v7161_v39  ;;  %v6367_v20 = vld [vmem:[%s9121_s2 + $0x280] sm:$0xff] }
 0x1e2   :  { %v456_v51 = vmax.f32 %v6993_v12, %v446_v44  ;;  %1552 = vmatmul.bf16.vlgmr.msrb.gmra.mxu2 %v555_v45  ;;  %v7189_v52 = vsel %vm583_vm8, %v586_v3, %v7168_v42  ;;  %v6361_v12 = vld [vmem:[%s9121_s2 + $0x250] sm:$0xff]  ;;  %1575 = vmatpush.bf16.msra.mxu0 %v6335_v60  ;;  %v7319_v61 = vpack.c.b16 %v7200_v56, %v7099_v62  ;;  %v6380_v62 = vld [vmem:[%s9121_s2 + $0x2e8] sm:$0xff] }
 0x1e3   :  { %1645 = vmatpush.bf16.msra.mxu2 %v6361_v12  ;;  %1599 = vmatpush.bf16.msra.mxu1 %v6343_v18  ;;  %v6382_v12 = vld [vmem:[%s9121_s2 + $0x2f8] sm:$0xff]  ;;  %v6381_v60 = vld [vmem:[%s9121_s2 + $0x2f0] sm:$0xff] }
 0x1e4   :  { %v463_v55 = vpack.c.bf16 %v456_v51, %v456_v51  ;;  %1522 = vmatpush.bf16.msra.mxu3 %v6324_v2 }
 0x1e6   :  { %v7202_v57 = vunpack.c.l.b16 %v463_v55  ;;  %v6321_v55 = vld [vmem:[%s9121_s2 + $0x110] sm:$0xff]  ;;  %1664 = vmatpush.bf16.msrb.mxu0 %v6374_v54 }
 0x1e7   :  { %1646 = vmatpush.bf16.msra.mxu2 %v6360_v63  ;;  %1688 = vmatpush.bf16.msrb.mxu1 %v6382_v12  ;;  %v6319_v63 = vld [vmem:[%s9121_s2 + $0x100] sm:$0xff] }
 0x1e8   :  { %v7206_v58 = vpack.c.b16 %v7202_v57, %v7200_v56 }
 0x1e9   :  { %v448_v59 = vpop.f32.mrf.mxu2 }
 0x1ea   :  { %v457_v0 = vmax.f32 %v7013_v19, %v448_v59  ;;  %1442 = vmatmul.bf16.gmra.mxu3 %v7206_v58  ;;  %v514_v1 = vrot.slane %v7206_v58, 1  ;;  %v7221_v4 = vshll.u32 %v7206_v58, 16  ;;  %v7224_v5 = vshrl.u32 %v7206_v58, 16  ;;  %v6372_v59 = vld [vmem:[%s9121_s2 + $0x2a8] sm:$0xff] }
 0x1eb   :  { %v576_v19 = vrot.slane %v7206_v58, 3  ;;  %v541_v8 = vrot.slane %v7206_v58, 2  ;;  %v6320_v58 = vld [vmem:[%s9121_s2 + $0x108] sm:$0xff]  ;;  %1689 = vmatpush.bf16.msrb.mxu1 %v6381_v60 }
 0x1ec   :  { %v464_v9 = vpack.c.bf16 %v457_v0, %v457_v0  ;;  %v515_v10 = vsel %vm510_vm2, %v512_v14, %v514_v1  ;;  %v527_v11 = vrot.slane %v7224_v5, 1  ;;  %v528_v13 = vrot.slane %v7221_v4, 2  ;;  %v6359_v14 = vld [vmem:[%s9121_s2 + $0x240] sm:$0xff] }
 0x1ed   :  { %1485 = vmatmul.bf16.gmra.mxu0 %v515_v10  ;;  %v556_v15 = vrot.slane %v7224_v5, 2  ;;  %v557_v16 = vrot.slane %v7221_v4, 3  ;;  %v502_v17 = vrot.slane %v7221_v4, 1  ;;  %v7252_v22 = vsel %vm572_vm4, %v574_v21, %v576_v19  ;;  %1647 = vmatpush.bf16.msra.mxu2 %v6359_v14 }
 0x1ee   :  { %v7254_v23 = vunpack.c.l.b16 %v464_v9  ;;  %v529_v24 = vor.u32 %v528_v13, %v527_v11  ;;  %v591_v25 = vrot.slane %v7224_v5, 3  ;;  %v592_v27 = vrot.slane %v7221_v4, 4  ;;  %v6379_v9 = vld [vmem:[%s9121_s2 + $0x2e0] sm:$0xff]  ;;  %v6369_v11 = vld [vmem:[%s9121_s2 + $0x290] sm:$0xff]  ;;  %v6378_v13 = vld [vmem:[%s9121_s2 + $0x2d8] sm:$0xff] }
 0x1ef   :  { %v558_v28 = vor.u32 %v557_v16, %v556_v15  ;;  %v503_v29 = vsel %vm483_vm3, %v498_v7, %v502_v17  ;;  %v7264_v30 = vsel %vm537_vm5, %v539_v26, %v541_v8  ;;  %v611_v0 = vshll.u32 %v7066_v48, 16  ;;  %1690 = vmatpush.bf16.msrb.mxu1 %v6380_v62  ;;  %v6368_v15 = vld [vmem:[%s9121_s2 + $0x288] sm:$0xff] }
 0x1f0   :  { %v536_v21 = vpack.c.b16 %v7254_v23, %v7254_v23  ;;  %v530_v31 = vsel %vm519_vm6, %v7157_v35, %v529_v24  ;;  %v593_v34 = vor.u32 %v592_v27, %v591_v25  ;;  %v609_v7 = vshrl.u32 %v7066_v48, 16 }
 0x1f1   :  { %1509 = vmatmul.bf16.gmra.mxu1 %v530_v31  ;;  %v559_v32 = vsel %vm548_vm7, %v7161_v39, %v558_v28  ;;  %v6323_v39 = vld [vmem:[%s9121_s2 + $0x120] sm:$0xff]  ;;  %v613_v56 = vrot.slane %v611_v0, 1  ;;  %v7360_v16 = vpack.c.b16 %v7254_v23, %v7202_v57  ;;  %v506_v18 = vor.u32 %v7224_v5, %v502_v17  ;;  %v6358_v57 = vld [vmem:[%s9121_s2 + $0x238] sm:$0xff]  ;;  %v6357_v23 = vld [vmem:[%s9121_s2 + $0x230] sm:$0xff] }
 0x1f2   :  { %1557 = vmatmul.bf16.gmra.mxu2 %v559_v32  ;;  %v561_v36 = vshrl.u32 %v536_v21, 16  ;;  %v564_v37 = vshll.u32 %v536_v21, 16  ;;  %v578_v26 = vrot.slane %v536_v21, 3  ;;  %v7277_v38 = vsel %vm583_vm8, %v7168_v42, %v593_v34  ;;  %1523 = vmatpush.bf16.msra.mxu3 %v6323_v39  ;;  %v6375_v17 = vld [vmem:[%s9121_s2 + $0x2c0] sm:$0xff] }
 0x1f3   :  { %v543_v35 = vrot.slane %v536_v21, 2  ;;  %v614_v10 = vor.u32 %v613_v56, %v609_v7  ;;  %1691 = vmatpush.bf16.msrb.mxu1 %v6379_v9  ;;  %v624_v14 = vshll.u32 %v7360_v16, 16  ;;  %v620_v4 = vshrl.u32 %v7319_v61, 16  ;;  %v6353_v21 = vld [vmem:[%s9121_s2 + $0x210] sm:$0xff] }
 0x1f4   :  { %v563_v41 = vrot.slane %v561_v36, 2  ;;  %v566_v3 = vrot.slane %v564_v37, 3  ;;  %v7283_v44 = vsel %vm572_vm4, %v576_v19, %v578_v26  ;;  %v595_v45 = vrot.slane %v561_v36, 3 }
 0x1f5   :  { %v596_v46 = vrot.slane %v564_v37, 4  ;;  %v7286_v47 = vsel %vm537_vm5, %v541_v8, %v543_v35  ;;  %v6370_v8 = vld [vmem:[%s9121_s2 + $0x298] sm:$0xff]  ;;  %v626_v5 = vrot.slane %v624_v14, 1  ;;  %v628_v31 = vshrl.u32 %v7360_v16, 16 }
 0x1f6   :  { %v567_v49 = vor.u32 %v566_v3, %v563_v41  ;;  %1524 = vmatpush.bf16.msra.mxu3 %v6322_v53  ;;  %v645_v36 = vrot.slane %v620_v4, 1  ;;  %v635_v37 = vrot.slane %v7319_v61, 1  ;;  %v634_v26 = vrot.slane %v7066_v48, 1 }
 0x1f7   :  { %v597_v50 = vor.u32 %v596_v46, %v595_v45  ;;  %1692 = vmatpush.bf16.msrb.mxu1 %v6378_v13  ;;  %v630_v32 = vor.u32 %v628_v31, %v626_v5  ;;  %v643_v35 = vrot.slane %v611_v0, 2  ;;  %v649_v45 = vrot.slane %v628_v31, 1 }
 0x1f8   :  { %v568_v42 = vsel %vm548_vm7, %v558_v28, %v567_v49  ;;  %v6355_v28 = vld [vmem:[%s9121_s2 + $0x220] sm:$0xff]  ;;  %v636_v41 = vsel %vm510_vm2, %v634_v26, %v635_v37  ;;  %v637_v46 = vrot.slane %v7360_v16, 1  ;;  %v650_v49 = vrot.slane %v624_v14, 2 }
 0x1f9   :  { %v7290_v51 = vsel %vm583_vm8, %v593_v34, %v597_v50  ;;  %v6351_v34 = vld [vmem:[%s9121_s2 + $0x200] sm:$0xff] }
 0x1fa   :  { %1456 = vmatmul.bf16.vlgmr.msrb.gmra.mxu3 %v7164_v40  ;;  %v6373_v40 = vld [vmem:[%s9121_s2 + $0x2b0] sm:$0xff]  ;;  %v651_v50 = vor.u32 %v650_v49, %v649_v45 }
 0x1fb   :  { %1525 = vmatpush.bf16.msra.mxu3 %v6321_v55  ;;  %1665 = vmatpush.bf16.msrb.mxu0 %v6373_v40 }
 0x1fd   :  { %1490 = vmatmul.bf16.gmra.mxu0 %v514_v1  ;;  %v616_v1 = vshll.u32 %v7319_v61, 16 }
 0x1ff   :  { %1526 = vmatpush.bf16.msra.mxu3 %v6320_v58  ;;  %1666 = vmatpush.bf16.msrb.mxu0 %v6372_v59  ;;  %v618_v19 = vrot.slane %v616_v1, 1  ;;  %v646_v2 = vrot.slane %v616_v1, 2 }
 0x201   :  { %1514 = vmatmul.bf16.gmra.mxu1 %v529_v24  ;;  %v6376_v24 = vld [vmem:[%s9121_s2 + $0x2c8] sm:$0xff]  ;;  %v622_v25 = vor.u32 %v620_v4, %v618_v19  ;;  %v647_v3 = vor.u32 %v646_v2, %v645_v36 }
 0x202   :  { %1562 = vmatmul.bf16.gmra.mxu2 %v568_v42 }
 0x203   :  { %1527 = vmatpush.bf16.msra.mxu3 %v6319_v63  ;;  %1667 = vmatpush.bf16.msrb.mxu0 %v6371_v6  ;;  %v627_v27 = vsel %vm483_vm3, %v622_v25, %v626_v5 }
 0x207   :  { %1668 = vmatpush.bf16.msrb.mxu0 %v6370_v8  ;;  %1616 = vmatpush.bf16.msrb.mxu3 %v6358_v57 }
 0x20a   :  { %1461 = vmatmul.bf16.gmra.mxu3 %v503_v29  ;;  %v6354_v29 = vld [vmem:[%s9121_s2 + $0x218] sm:$0xff] }
 0x20b   :  { %1669 = vmatpush.bf16.msrb.mxu0 %v6369_v11  ;;  %1617 = vmatpush.bf16.msrb.mxu3 %v6357_v23 }
 0x20d   :  { %1576 = vmatmul.bf16.vlgmr.msra.gmra.mxu0 %v7154_v33  ;;  %v619_v33 = vsel %vm483_vm3, %v614_v10, %v618_v19 }
 0x20f   :  { %1670 = vmatpush.bf16.msrb.mxu0 %v6368_v15 }
 0x211   :  { %1600 = vmatmul.bf16.vlgmr.msra.gmra.mxu1 %v7189_v52  ;;  %v6377_v52 = vld [vmem:[%s9121_s2 + $0x2d0] sm:$0xff] }
 0x212   :  { %1648 = vmatmul.bf16.vlgmr.msra.gmra.mxu2 %v619_v33  ;;  %1693 = vmatpush.bf16.msrb.mxu1 %v6377_v52 }
 0x213   :  { %1671 = vmatpush.bf16.msrb.mxu0 %v6367_v20 }
 0x216   :  { %1694 = vmatpush.bf16.msrb.mxu1 %v6376_v24 }
 0x21a   :  { %1466 = vmatmul.bf16.gmra.mxu3 %v506_v18  ;;  %1695 = vmatpush.bf16.msrb.mxu1 %v6375_v17 }
 0x21d   :  { %1581 = vmatmul.bf16.gmra.mxu0 %v7252_v22  ;;  %v6356_v22 = vld [vmem:[%s9121_s2 + $0x228] sm:$0xff] }
 0x21e   :  { %1618 = vmatpush.bf16.msrb.mxu3 %v6356_v22 }
 0x221   :  { %1605 = vmatmul.bf16.gmra.mxu1 %v7277_v38  ;;  %v642_v38 = vrot.slane %v609_v7, 1 }
 0x222   :  { %1653 = vmatmul.bf16.gmra.mxu2 %v627_v27  ;;  %1619 = vmatpush.bf16.msrb.mxu3 %v6355_v28 }
 0x223   :  { %v644_v39 = vor.u32 %v643_v35, %v642_v38 }
 0x226   :  { %1620 = vmatpush.bf16.msrb.mxu3 %v6354_v29 }
 0x22a   :  { %1528 = vmatmul.bf16.vlgmr.msra.gmra.mxu3 %v7173_v43  ;;  %v6352_v43 = vld [vmem:[%s9121_s2 + $0x208] sm:$0xff] }
 0x22b   :  { %1621 = vmatpush.bf16.msrb.mxu3 %v6353_v21 }
 0x22d   :  { %1586 = vmatmul.bf16.gmra.mxu0 %v7283_v44  ;;  %v648_v44 = vsel %vm519_vm6, %v644_v39, %v647_v3 }
 0x22f   :  { %1622 = vmatpush.bf16.msrb.mxu3 %v6352_v43 }
 0x231   :  { %1610 = vmatmul.bf16.gmra.mxu1 %v7290_v51  ;;  %v652_v51 = vsel %vm519_vm6, %v647_v3, %v651_v50 }
 0x232   :  { %1658 = vmatmul.bf16.gmra.mxu2 %v630_v32 }
 0x233   :  { %1623 = vmatpush.bf16.msrb.mxu3 %v6351_v34 }
 0x23a   :  { %1533 = vmatmul.bf16.gmra.mxu3 %v7264_v30  ;;  %v638_v30 = vsel %vm510_vm2, %v635_v37, %v637_v46 }
 0x23d   :  { %1672 = vmatmul.bf16.vlgmr.msrb.gmra.mxu0 %v636_v41 }
 0x241   :  { %1696 = vmatmul.bf16.vlgmr.msrb.gmra.mxu1 %v648_v44 }
 0x24a   :  { %1538 = vmatmul.bf16.gmra.mxu3 %v7286_v47 }
 0x24d   :  { %v1433_v42 = vpop.f32.mrf.mxu3  ;;  %1677 = vmatmul.bf16.gmra.mxu0 %v638_v30 }
 0x251   :  { %1701 = vmatmul.bf16.gmra.mxu1 %v652_v51 }
 0x255   :  { %v7420_v53 = vpop.f32.mrf.mxu3 }
 0x25a   :  { %1624 = vmatmul.bf16.vlgmr.msrb.gmra.mxu3 %v7066_v48  ;;  %v1481_v55 = vpop.f32.mrf.mxu0 }
 0x25d   :  { %v1438_v54 = vpop.f32.mrf.mxu3  ;;  %1682 = vmatmul.bf16.gmra.mxu0 %v637_v46 }
 0x25e   :  { %v1505_v40 = vpop.f32.mrf.mxu1 }
 0x261   :  { %1706 = vmatmul.bf16.gmra.mxu1 %v651_v50 }
 0x262   :  { %v7425_v47 = vpop.f32.mrf.mxu0 }
 0x265   :  { %v7423_v12 = vpop.f32.mrf.mxu3 }
 0x266   :  { %v7428_v58 = vpop.f32.mrf.mxu1 }
 0x26a   :  { %1629 = vmatmul.bf16.gmra.mxu3 %v7319_v61  ;;  %v1486_v60 = vpop.f32.mrf.mxu0 }
 0x26d   :  { %v1443_v59 = vpop.f32.mrf.mxu3 }
 0x26e   :  { %v1510_v63 = vpop.f32.mrf.mxu1 }
 0x272   :  { %v7433_v48 = vpop.f32.mrf.mxu0 }
 0x275   :  { %v7430_v0 = vpop.f32.mrf.mxu3 }
 0x276   :  { %v7435_v62 = vpop.f32.mrf.mxu1 }
 0x27a   :  { %1634 = vmatmul.bf16.gmra.mxu3 %v7360_v16  ;;  %v1491_v8 = vpop.f32.mrf.mxu0  ;;  %v1553_v16 = vpop.f32.mrf.mxu2 }
 0x27d   :  { %v1457_v1 = vpop.f32.mrf.mxu3 }
 0x27e   :  { %v1458_v6 = vadd.f32 %v1457_v1, %v1433_v42  ;;  %v1515_v61 = vpop.f32.mrf.mxu1 }
 0x280   :  { %v1482_v56 = vadd.f32 %v1481_v55, %v1458_v6 }
 0x282   :  { %v1506_v7 = vadd.f32 %v1505_v40, %v1482_v56  ;;  %v1493_v11 = vpop.f32.mrf.mxu0  ;;  %v1555_v5 = vpop.f32.mrf.mxu2 }
 0x285   :  { %v1459_v19 = vpop.f32.mrf.mxu3 }
 0x286   :  { %v7437_v15 = vpop.f32.mrf.mxu1 }
 0x28a   :  { %v1577_v18 = vpop.f32.mrf.mxu0  ;;  %v1558_v27 = vpop.f32.mrf.mxu2 }
 0x28d   :  { %v1462_v9 = vpop.f32.mrf.mxu3 }
 0x28e   :  { %v1463_v10 = vadd.f32 %v1462_v9, %v1438_v54  ;;  %v1601_v14 = vpop.f32.mrf.mxu1 }
 0x290   :  { %v1487_v33 = vadd.f32 %v1486_v60, %v1463_v10 }
 0x292   :  { %v1511_v13 = vadd.f32 %v1510_v63, %v1487_v33  ;;  %v7439_v17 = vpop.f32.mrf.mxu0  ;;  %v1560_v36 = vpop.f32.mrf.mxu2 }
 0x295   :  { %v1464_v52 = vpop.f32.mrf.mxu3 }
 0x296   :  { %v7441_v25 = vpop.f32.mrf.mxu1  ;;  %v1465_v56 = vadd.f32 %v1464_v52, %v7423_v12 }
 0x29a   :  { %v1582_v29 = vpop.f32.mrf.mxu0  ;;  %v1563_v41 = vpop.f32.mrf.mxu2 }
 0x29d   :  { %v1467_v20 = vpop.f32.mrf.mxu3 }
 0x29e   :  { %v1468_v24 = vadd.f32 %v1467_v20, %v1443_v59  ;;  %v1606_v31 = vpop.f32.mrf.mxu1 }
 0x2a0   :  { %v1492_v57 = vadd.f32 %v1491_v8, %v1468_v24  ;;  %v1460_v8 = vadd.f32 %v1459_v19, %v7420_v53 }
 0x2a2   :  { %v1516_v4 = vadd.f32 %v1515_v61, %v1492_v57  ;;  %v1584_v37 = vpop.f32.mrf.mxu0  ;;  %v1565_v49 = vpop.f32.mrf.mxu2  ;;  %v1489_v61 = vadd.f32 %v7433_v48, %v1465_v56 }
 0x2a5   :  { %v1469_v23 = vpop.f32.mrf.mxu3 }
 0x2a6   :  { %v1608_v2 = vpop.f32.mrf.mxu1 }
 0x2aa   :  { %v1587_v39 = vpop.f32.mrf.mxu0  ;;  %v1649_v51 = vpop.f32.mrf.mxu2 }
 0x2ad   :  { %v1529_v22 = vpop.f32.mrf.mxu3 }
 0x2ae   :  { %v1530_v28 = vadd.f32 %v1529_v22, %v1506_v7  ;;  %v1611_v45 = vpop.f32.mrf.mxu1 }
 0x2b0   :  { %v1554_v21 = vadd.f32 %v1553_v16, %v1530_v28  ;;  %v1470_v16 = vadd.f32 %v1469_v23, %v7430_v0 }
 0x2b2   :  { %v1578_v32 = vadd.f32 %v1577_v18, %v1554_v21  ;;  %v1589_v30 = vpop.f32.mrf.mxu0  ;;  %v1651_v60 = vpop.f32.mrf.mxu2  ;;  %v1513_v18 = vadd.f32 %v7435_v62, %v1489_v61  ;;  %v1494_v24 = vadd.f32 %v1493_v11, %v1470_v16 }
 0x2b4   :  { %v7443_v43 = vadd.f32 %v1601_v14, %v1578_v32  ;;  %v1518_v22 = vadd.f32 %v7437_v15, %v1494_v24 }
 0x2b5   :  { %v1531_v34 = vpop.f32.mrf.mxu3 }
 0x2b6   :  { %v1613_v42 = vpop.f32.mrf.mxu1 }
 0x2ba   :  { %v7445_v55 = vpop.f32.mrf.mxu0  ;;  %v1654_v7 = vpop.f32.mrf.mxu2 }
 0x2bd   :  { %v1534_v26 = vpop.f32.mrf.mxu3 }
 0x2be   :  { %v1535_v38 = vadd.f32 %v1534_v26, %v1511_v13  ;;  %v7447_v40 = vpop.f32.mrf.mxu1  ;;  %v1484_v13 = vadd.f32 %v7425_v47, %v1460_v8 }
 0x2c0   :  { %v1559_v35 = vadd.f32 %v1558_v27, %v1535_v38  ;;  %v1508_v57 = vadd.f32 %v7428_v58, %v1484_v13 }
 0x2c2   :  { %v1583_v3 = vadd.f32 %v1582_v29, %v1559_v35  ;;  %v1675_v63 = vpop.f32.mrf.mxu0  ;;  %v1656_v12 = vpop.f32.mrf.mxu2  ;;  %v1532_v52 = vadd.f32 %v1531_v34, %v1508_v57 }
 0x2c4   :  { %v1607_v44 = vadd.f32 %v1606_v31, %v1583_v3  ;;  %v1556_v29 = vadd.f32 %v1555_v5, %v1532_v52 }
 0x2c5   :  { %v1536_v46 = vpop.f32.mrf.mxu3 }
 0x2c6   :  { %v7449_v1 = vpop.f32.mrf.mxu1  ;;  %v1537_v14 = vadd.f32 %v1536_v46, %v1513_v18  ;;  %v1580_v62 = vadd.f32 %v7439_v17, %v1556_v29 }
 0x2c8   :  { %v1561_v27 = vadd.f32 %v1560_v36, %v1537_v14  ;;  %v1604_v26 = vadd.f32 %v7441_v25, %v1580_v62  ;;  %v7465_v25 = vld [vmem:[%s9128_s9] sm:$0x3f] }
 0x2ca   :  { %v1678_v9 = vpop.f32.mrf.mxu0  ;;  %v1585_v21 = vadd.f32 %v1584_v37, %v1561_v27  ;;  %v1659_v31 = vpop.f32.mrf.mxu2 }
 0x2cd   :  { %v1539_v50 = vpop.f32.mrf.mxu3 }
 0x2ce   :  { %v1702_v10 = vpop.f32.mrf.mxu1  ;;  %v1540_v20 = vadd.f32 %v1539_v50, %v1516_v4  ;;  %v1609_v4 = vadd.f32 %v1608_v2, %v1585_v21 }
 0x2d0   :  { %v1564_v53 = vadd.f32 %v1563_v41, %v1540_v20 }
 0x2d2   :  { %v1680_v19 = vpop.f32.mrf.mxu0  ;;  %v1588_v0 = vadd.f32 %v1587_v39, %v1564_v53  ;;  %v1661_v56 = vpop.f32.mrf.mxu2 }
 0x2d4   :  { %v1612_v11 = vadd.f32 %v1611_v45, %v1588_v0 }
 0x2d5   :  { %v1541_v54 = vpop.f32.mrf.mxu3 }
 0x2d6   :  { %v1704_v28 = vpop.f32.mrf.mxu1  ;;  %v1542_v47 = vadd.f32 %v1541_v54, %v1518_v22 }
 0x2d8   :  { %v1566_v23 = vadd.f32 %v1565_v49, %v1542_v47 }
 0x2da   :  { %v1683_v36 = vpop.f32.mrf.mxu0  ;;  %v1590_v15 = vadd.f32 %v1589_v30, %v1566_v23 }
 0x2dc   :  { %v1614_v17 = vadd.f32 %v1613_v42, %v1590_v15  ;;  %v6392_v15 = vld [vmem:[%s9122_s3 + $0x20] sm:$0xff] }
 0x2dd   :  { %v1625_v59 = vpop.f32.mrf.mxu3 }
 0x2de   :  { %v1707_v41 = vpop.f32.mrf.mxu1  ;;  %v1626_v39 = vadd.f32 %v1625_v59, %v7443_v43 }
 0x2e0   :  { %v1650_v8 = vadd.f32 %v1649_v51, %v1626_v39  ;;  %v1719_v51 = vperm.slane %v7465_v25, 3  ;;  %v6390_v39 = vld [vmem:[%s9122_s3 + $0x10] sm:$0xff] }
 0x2e5   :  { %v1627_v6 = vpop.f32.mrf.mxu3 }
 0x2e6   :  { %v1628_v5 = vadd.f32 %v1627_v6, %v1604_v26  ;;  %v1685_v6 = vpop.f32.mrf.mxu0  ;;  %v6394_v26 = vld [vmem:[%s9122_s3 + $0x30] sm:$0xff] }
 0x2e8   :  { %v1652_v45 = vadd.f32 %v1651_v60, %v1628_v5  ;;  %v1709_v60 = vpop.f32.mrf.mxu1  ;;  %v6391_v5 = vld [vmem:[%s9122_s3 + $0x18] sm:$0xff] }
 0x2ea   :  { %v1676_v43 = vadd.f32 %v1675_v63, %v1652_v45  ;;  %v6389_v45 = vld [vmem:[%s9122_s3 + $0x8] sm:$0xff] }
 0x2ec   :  { %v1700_v16 = vadd.f32 %v7449_v1, %v1676_v43  ;;  %v6400_v43 = vld [vmem:[%s9122_s3 + $0x60] sm:$0xff] }
 0x2ed   :  { %v1630_v33 = vpop.f32.mrf.mxu3 }
 0x2ee   :  { %v1631_v38 = vadd.f32 %v1630_v33, %v1607_v44  ;;  %v1712_v44 = vperm.slane %v7465_v25, 2  ;;  %v1674_v33 = vadd.f32 %v7445_v55, %v1650_v8 }
 0x2f0   :  { %v1655_v46 = vadd.f32 %v1654_v7, %v1631_v38  ;;  %v1698_v24 = vadd.f32 %v7447_v40, %v1674_v33  ;;  %v1714_v55 = vmul.f32 %v1712_v44, %v1700_v16  ;;  %v6399_v33 = vld [vmem:[%s9122_s3 + $0x58] sm:$0xff]  ;;  %v6398_v16 = vld [vmem:[%s9122_s3 + $0x50] sm:$0xff] }
 0x2f2   :  { %v1679_v61 = vadd.f32 %v1678_v9, %v1655_v46  ;;  %v1713_v1 = vmul.f32 %v1712_v44, %v1698_v24  ;;  %v1721_v47 = vadd.f32 %v1719_v51, %v1714_v55  ;;  %v6444_v55 = vld [vmem:[%s9122_s3 + $0x1c0] sm:$0xff] }
 0x2f4   :  { %v1703_v13 = vadd.f32 %v1702_v10, %v1679_v61  ;;  %v1720_v21 = vadd.f32 %v1719_v51, %v1713_v1  ;;  %v1727_v23 = vmax.f32 %v1721_v47, 0.0  ;;  %v6401_v61 = vld [vmem:[%s9122_s3 + $0x68] sm:$0xff]  ;;  %v6434_v47 = vld [vmem:[%s9122_s3 + $0x170] sm:$0xff] }
 0x2f5   :  { %v1632_v48 = vpop.f32.mrf.mxu3 }
 0x2f6   :  { %v1633_v32 = vadd.f32 %v1632_v48, %v1609_v4  ;;  %v1715_v52 = vmul.f32 %v1712_v44, %v1703_v13  ;;  %v1726_v62 = vmax.f32 %v1720_v21, 0.0  ;;  %v6406_v13 = vld [vmem:[%s9122_s3 + $0x90] sm:$0xff]  ;;  %v6413_v21 = vld [vmem:[%s9122_s3 + $0xc8] sm:$0xff] }
 0x2f8   :  { %v1657_v3 = vadd.f32 %v1656_v12, %v1633_v32  ;;  %v6733_v12 = vmov 65535   ;;  %v1722_v22 = vadd.f32 %v1719_v51, %v1715_v52  ;;  %v1742_v4 = vpack.c.bf16 %v1727_v23, %v1726_v62  ;;  %v6386_v32 = vld [vmem:[%s9126_s7 + $0x18] sm:$0xff]  ;;  %v6426_v23 = vld [vmem:[%s9122_s3 + $0x130] sm:$0xff] }
 0x2f9   :  { %v1788_v63 = vsel %vm537_vm5, 4294967295, %v6733_v12  ;;  %v6404_v12 = vld [vmem:[%s9122_s3 + $0x80] sm:$0xff]  ;;  %v6415_v52 = vld [vmem:[%s9122_s3 + $0xd8] sm:$0xff]  ;;  %v6482_v62 = vld [vmem:[%s9122_s3 + $0x2f0] sm:$0xff] }
 0x2fa   :  { %v1681_v49 = vadd.f32 %v1680_v19, %v1657_v3  ;;  %v7474_v10 = vsel %vm510_vm2, %v1788_v63, 0  ;;  %v1728_v40 = vmax.f32 %v1722_v22, 0.0  ;;  %v6411_v3 = vld [vmem:[%s9122_s3 + $0xb8] sm:$0xff]  ;;  %v6445_v63 = vld [vmem:[%s9122_s3 + $0x1c8] sm:$0xff]  ;;  %v6414_v22 = vld [vmem:[%s9122_s3 + $0xd0] sm:$0xff] }
 0x2fb   :  { %2769 = vmatpush.bf16.msra.mxu1 %v6411_v3  ;;  %v6431_v3 = vld [vmem:[%s9122_s3 + $0x158] sm:$0xff] }
 0x2fc   :  { %v1705_v59 = vadd.f32 %v1704_v28, %v1681_v49  ;;  %v6402_v49 = vld [vmem:[%s9122_s3 + $0x70] sm:$0xff] }
 0x2fd   :  { %v1635_v58 = vpop.f32.mrf.mxu3 }
 0x2fe   :  { %v1636_v34 = vadd.f32 %v1635_v58, %v1612_v11  ;;  %v1716_v20 = vmul.f32 %v1712_v44, %v1705_v59  ;;  %v6383_v11 = vld [vmem:[%s9126_s7] sm:$0xff]  ;;  %v6385_v58 = vld [vmem:[%s9126_s7 + $0x10] sm:$0xff]  ;;  %v6407_v59 = vld [vmem:[%s9122_s3 + $0x98] sm:$0xff] }
 0x300   :  { %v1660_v35 = vadd.f32 %v1659_v31, %v1636_v34  ;;  %v1723_v19 = vadd.f32 %v1719_v51, %v1716_v20  ;;  %v6384_v31 = vld [vmem:[%s9126_s7 + $0x8] sm:$0xff]  ;;  %v6387_v34 = vld [vmem:[%s9126_s7 + $0x20] sm:$0xff] }
 0x301   :  { %v6416_v20 = vld [vmem:[%s9122_s3 + $0xe0] sm:$0xff] }
 0x302   :  { %v1684_v37 = vadd.f32 %v1683_v36, %v1660_v35  ;;  %v1729_v29 = vmax.f32 %v1723_v19, 0.0  ;;  %v6395_v36 = vld [vmem:[%s9122_s3 + $0x38] sm:$0xff]  ;;  %v6393_v35 = vld [vmem:[%s9122_s3 + $0x28] sm:$0xff] }
 0x303   :  { %2731 = vmatpush.bf16.msrb.mxu2 %v6395_v36  ;;  %v6435_v19 = vld [vmem:[%s9122_s3 + $0x178] sm:$0xff] }
 0x304   :  { %v1708_v50 = vadd.f32 %v1707_v41, %v1684_v37  ;;  %v1743_v0 = vpack.c.bf16 %v1729_v29, %v1728_v40  ;;  %v6403_v37 = vld [vmem:[%s9122_s3 + $0x78] sm:$0xff] }
 0x305   :  { %v1637_v2 = vpop.f32.mrf.mxu3  ;;  %2750 = vmatpush.bf16.msra.mxu0 %v6403_v37  ;;  %v6427_v29 = vld [vmem:[%s9122_s3 + $0x138] sm:$0xff]  ;;  %v6442_v37 = vld [vmem:[%s9122_s3 + $0x1b0] sm:$0xff] }
 0x306   :  { %v1638_v54 = vadd.f32 %v1637_v2, %v1614_v17  ;;  %v1717_v42 = vmul.f32 %v1712_v44, %v1708_v50  ;;  %v6410_v17 = vld [vmem:[%s9122_s3 + $0xb0] sm:$0xff]  ;;  %v6451_v2 = vld [vmem:[%s9122_s3 + $0x1f8] sm:$0xff]  ;;  %v6409_v50 = vld [vmem:[%s9122_s3 + $0xa8] sm:$0xff] }
 0x307   :  { %2732 = vmatpush.bf16.msrb.mxu2 %v6394_v26  ;;  %2770 = vmatpush.bf16.msra.mxu1 %v6410_v17  ;;  %v6483_v40 = vld [vmem:[%s9122_s3 + $0x2f8] sm:$0xff]  ;;  %v6432_v26 = vld [vmem:[%s9122_s3 + $0x160] sm:$0xff] }
 0x308   :  { %v1662_v30 = vadd.f32 %v1661_v56, %v1638_v54  ;;  %v1724_v18 = vadd.f32 %v1719_v51, %v1717_v42  ;;  %v6450_v54 = vld [vmem:[%s9122_s3 + $0x1f0] sm:$0xff]  ;;  %v6388_v56 = vld [vmem:[%s9122_s3] sm:$0xff] }
 0x309   :  { %2751 = vmatpush.bf16.msra.mxu0 %v6402_v49  ;;  %v6448_v42 = vld [vmem:[%s9122_s3 + $0x1e0] sm:$0xff]  ;;  %v6479_v49 = vld [vmem:[%s9122_s3 + $0x2d8] sm:$0xff] }
 0x30a   :  { %v1686_v7 = vadd.f32 %v1685_v6, %v1662_v30  ;;  %v1730_v27 = vmax.f32 %v1724_v18, 0.0  ;;  %v6449_v30 = vld [vmem:[%s9122_s3 + $0x1e8] sm:$0xff]  ;;  %v6419_v6 = vld [vmem:[%s9122_s3 + $0xf8] sm:$0xff] }
 0x30b   :  { %2733 = vmatpush.bf16.msrb.mxu2 %v6393_v35  ;;  %2771 = vmatpush.bf16.msra.mxu1 %v6409_v50  ;;  %v6405_v18 = vld [vmem:[%s9122_s3 + $0x88] sm:$0xff]  ;;  %v6443_v35 = vld [vmem:[%s9122_s3 + $0x1b8] sm:$0xff] }
 0x30c   :  { %v1710_v9 = vadd.f32 %v1709_v60, %v1686_v7  ;;  %v6418_v60 = vld [vmem:[%s9122_s3 + $0xf0] sm:$0xff]  ;;  %v6441_v50 = vld [vmem:[%s9122_s3 + $0x1a8] sm:$0xff] }
 0x30d   :  { %2752 = vmatpush.bf16.msra.mxu0 %v6401_v61  ;;  %v6478_v61 = vld [vmem:[%s9122_s3 + $0x2d0] sm:$0xff] }
 0x30e   :  { %v1718_v14 = vmul.f32 %v1712_v44, %v1710_v9  ;;  %v6408_v44 = vld [vmem:[%s9122_s3 + $0xa0] sm:$0xff]  ;;  %v6417_v9 = vld [vmem:[%s9122_s3 + $0xe8] sm:$0xff] }
 0x30f   :  { %2734 = vmatpush.bf16.msrb.mxu2 %v6392_v15  ;;  %2772 = vmatpush.bf16.msra.mxu1 %v6408_v44  ;;  %v6424_v15 = vld [vmem:[%s9122_s3 + $0x120] sm:$0xff] }
 0x310   :  { %v1725_v57 = vadd.f32 %v1719_v51, %v1718_v14  ;;  %v6447_v51 = vld [vmem:[%s9122_s3 + $0x1d8] sm:$0xff]  ;;  %v6446_v14 = vld [vmem:[%s9122_s3 + $0x1d0] sm:$0xff]  ;;  %v6440_v44 = vld [vmem:[%s9122_s3 + $0x1a0] sm:$0xff] }
 0x311   :  { %2753 = vmatpush.bf16.msra.mxu0 %v6400_v43  ;;  %v6429_v43 = vld [vmem:[%s9122_s3 + $0x148] sm:$0xff] }
 0x312   :  { %v1731_v53 = vmax.f32 %v1725_v57, 0.0  ;;  %v6397_v57 = vld [vmem:[%s9122_s3 + $0x48] sm:$0xff] }
 0x313   :  { %2735 = vmatpush.bf16.msrb.mxu2 %v6391_v5  ;;  %2773 = vmatpush.bf16.msra.mxu1 %v6407_v59 }
 0x314   :  { %v1744_v48 = vpack.c.bf16 %v1731_v53, %v1730_v27  ;;  %v6396_v53 = vld [vmem:[%s9122_s3 + $0x40] sm:$0xff] }
 0x315   :  { %2754 = vmatpush.bf16.msra.mxu0 %v6399_v33  ;;  %v6421_v33 = vld [vmem:[%s9122_s3 + $0x108] sm:$0xff] }
 0x316   :  { %v1791_v28 = vand.u32 %v7474_v10, %v1744_v48 }
 0x317   :  { %2736 = vmatpush.bf16.msrb.mxu2 %v6390_v39  ;;  %2774 = vmatpush.bf16.msra.mxu1 %v6406_v13  ;;  %v6423_v39 = vld [vmem:[%s9122_s3 + $0x118] sm:$0xff] }
 0x318   :  { %1798 = vmatpush.bf16.msra.mxu3 %v1791_v28 }
 0x319   :  { %2755 = vmatpush.bf16.msra.mxu0 %v6398_v16 }
 0x31b   :  { %2737 = vmatpush.bf16.msrb.mxu2 %v6389_v45  ;;  %2775 = vmatpush.bf16.msra.mxu1 %v6405_v18  ;;  %v6430_v45 = vld [vmem:[%s9122_s3 + $0x150] sm:$0xff] }
 0x31c   :  { %1799 = vmatpush.bf16.msra.mxu3 %v1743_v0 }
 0x31d   :  { %2756 = vmatpush.bf16.msra.mxu0 %v6397_v57 }
 0x31f   :  { %2738 = vmatpush.bf16.msrb.mxu2 %v6388_v56  ;;  %2776 = vmatpush.bf16.msra.mxu1 %v6404_v12 }
 0x320   :  { %1800 = vmatpush.bf16.msra.mxu3 %v1742_v4 }
 0x321   :  { %2757 = vmatpush.bf16.msra.mxu0 %v6396_v53 }
 0x323   :  { %5094 = vmatmul.msk.bf16.vlgmr.msra.gmra.mxu3 %vm1770_vm9, %v6383_v11  ;;  %2788 = vmatpush.bf16.msra.mxu2 %v6419_v6 }
 0x324   :  { %2864 = vmatpush.bf16.msrb.mxu3 %v6451_v2  ;;  %2826 = vmatpush.bf16.msrb.mxu1 %v6435_v19 }
 0x325   :  { %2807 = vmatpush.bf16.msrb.mxu0 %v6427_v29 }
 0x327   :  { %2789 = vmatpush.bf16.msra.mxu2 %v6418_v60 }
 0x328   :  { %2865 = vmatpush.bf16.msrb.mxu3 %v6450_v54  ;;  %2827 = vmatpush.bf16.msrb.mxu1 %v6434_v47 }
 0x329   :  { %2808 = vmatpush.bf16.msrb.mxu0 %v6426_v23 }
 0x32b   :  { %2790 = vmatpush.bf16.msra.mxu2 %v6417_v9 }
 0x32c   :  { %2866 = vmatpush.bf16.msrb.mxu3 %v6449_v30 }
 0x32f   :  { %2791 = vmatpush.bf16.msra.mxu2 %v6416_v20  ;;  %v6428_v20 = vld [vmem:[%s9122_s3 + $0x140] sm:$0xff] }
 0x330   :  { %2867 = vmatpush.bf16.msrb.mxu3 %v6448_v42 }
 0x333   :  { %5095 = vmatmul.msk.bf16.gmra.mxu3 %vm1770_vm9, %v6384_v31  ;;  %2792 = vmatpush.bf16.msra.mxu2 %v6415_v52  ;;  %v6433_v31 = vld [vmem:[%s9122_s3 + $0x168] sm:$0xff] }
 0x334   :  { %2868 = vmatpush.bf16.msrb.mxu3 %v6447_v51  ;;  %2828 = vmatpush.bf16.msrb.mxu1 %v6433_v31 }
 0x337   :  { %2793 = vmatpush.bf16.msra.mxu2 %v6414_v22  ;;  %v6467_v22 = vld [vmem:[%s9122_s3 + $0x278] sm:$0xff] }
 0x338   :  { %2869 = vmatpush.bf16.msrb.mxu3 %v6446_v14  ;;  %2829 = vmatpush.bf16.msrb.mxu1 %v6432_v26 }
 0x33b   :  { %2794 = vmatpush.bf16.msra.mxu2 %v6413_v21  ;;  %v6438_v21 = vld [vmem:[%s9122_s3 + $0x190] sm:$0xff] }
 0x33c   :  { %2870 = vmatpush.bf16.msrb.mxu3 %v6445_v63  ;;  %2830 = vmatpush.bf16.msrb.mxu1 %v6431_v3  ;;  %v6436_v3 = vld [vmem:[%s9122_s3 + $0x180] sm:$0xff] }
 0x340   :  { %2871 = vmatpush.bf16.msrb.mxu3 %v6444_v55  ;;  %2831 = vmatpush.bf16.msrb.mxu1 %v6430_v45  ;;  %v6420_v55 = vld [vmem:[%s9122_s3 + $0x100] sm:$0xff] }
 0x341   :  { %v6464_v45 = vld [vmem:[%s9122_s3 + $0x260] sm:$0xff] }
 0x343   :  { %5096 = vmatmul.msk.bf16.gmra.mxu3 %vm1770_vm9, %v6385_v58  ;;  %v6412_v58 = vld [vmem:[%s9122_s3 + $0xc0] sm:$0xff] }
 0x344   :  { %2940 = vmatpush.bf16.msra.mxu3 %v6483_v40  ;;  %2795 = vmatpush.bf16.msra.mxu2 %v6412_v58  ;;  %v6466_v58 = vld [vmem:[%s9122_s3 + $0x270] sm:$0xff] }
 0x345   :  { %2832 = vmatpush.bf16.msrb.mxu1 %v6429_v43  ;;  %v6455_v43 = vld [vmem:[%s9122_s3 + $0x218] sm:$0xff] }
 0x348   :  { %2941 = vmatpush.bf16.msra.mxu3 %v6482_v62 }
 0x349   :  { %2833 = vmatpush.bf16.msrb.mxu1 %v6428_v20 }
 0x353   :  { %5097 = vmatmul.msk.bf16.gmra.mxu3 %vm1770_vm9, %v6386_v32 }
 0x363   :  { %5098 = vmatmul.msk.bf16.gmra.mxu3 %vm1770_vm9, %v6387_v34  ;;  %v6425_v34 = vld [vmem:[%s9122_s3 + $0x128] sm:$0xff] }
 0x364   :  { %2809 = vmatpush.bf16.msrb.mxu0 %v6425_v34  ;;  %v6437_v34 = vld [vmem:[%s9122_s3 + $0x188] sm:$0xff] }
 0x368   :  { %2810 = vmatpush.bf16.msrb.mxu0 %v6424_v15 }
 0x36c   :  { %2811 = vmatpush.bf16.msrb.mxu0 %v6423_v39 }
 0x3a6   :  { %v7498_v38 = vpop.f32.mrf.mxu3 }
 0x3ae   :  { %v7506_v41 = vpop.f32.mrf.mxu3 }
 0x3b6   :  { %v7520_v46 = vpop.f32.mrf.mxu3 }
 0x3be   :  { %v7543_v8 = vpop.f32.mrf.mxu3 }
 0x3c6   :  { %v7566_v7 = vpop.f32.mrf.mxu3 }
 0x3ce   :  { %v1814_v24 = vpop.f32.mrf.mxu3 }
 0x3cf   :  { %v1827_v27 = vmax.f32 %v7498_v38, %v1814_v24  ;;  %v6481_v38 = vld [vmem:[%s9122_s3 + $0x2e8] sm:$0xff] }
 0x3d0   :  { %2942 = vmatpush.bf16.msra.mxu3 %v6481_v38  ;;  %v6477_v24 = vld [vmem:[%s9122_s3 + $0x2c8] sm:$0xff]  ;;  %v6458_v38 = vld [vmem:[%s9122_s3 + $0x230] sm:$0xff] }
 0x3d1   :  { %v1832_v1 = vpack.c.bf16 %v1827_v27, %v1827_v27 }
 0x3d3   :  { %v1841_v4 = vunpack.c.l.b16 %v1832_v1  ;;  %v6476_v1 = vld [vmem:[%s9122_s3 + $0x2c0] sm:$0xff] }
 0x3d6   :  { %v1817_v48 = vpop.f32.mrf.mxu3 }
 0x3d7   :  { %v1828_v28 = vmax.f32 %v7506_v41, %v1817_v48  ;;  %v6480_v41 = vld [vmem:[%s9122_s3 + $0x2e0] sm:$0xff] }
 0x3d8   :  { %2943 = vmatpush.bf16.msra.mxu3 %v6480_v41 }
 0x3d9   :  { %v1833_v0 = vpack.c.bf16 %v1828_v28, %v1828_v28 }
 0x3db   :  { %v7639_v11 = vunpack.c.l.b16 %v1833_v0  ;;  %v6459_v0 = vld [vmem:[%s9122_s3 + $0x238] sm:$0xff] }
 0x3dc   :  { %2944 = vmatpush.bf16.msra.mxu3 %v6479_v49  ;;  %v6475_v49 = vld [vmem:[%s9122_s3 + $0x2b8] sm:$0xff] }
 0x3dd   :  { %v7648_v32 = vpack.c.b16 %v7639_v11, %v1841_v4 }
 0x3de   :  { %v1819_v36 = vpop.f32.mrf.mxu3 }
 0x3df   :  { %2739 = vmatmul.bf16.vlgmr.msrb.gmra.mxu2 %v7648_v32  ;;  %v1829_v5 = vmax.f32 %v7520_v46, %v1819_v36  ;;  %v7690_v54 = vshll.u32 %v7648_v32, 16  ;;  %v7709_v59 = vshrl.u32 %v7648_v32, 16  ;;  %v1866_v51 = vrot.slane %v7648_v32, 1 }
 0x3e0   :  { %2845 = vmatpush.bf16.msrb.mxu2 %v6443_v35  ;;  %2945 = vmatpush.bf16.msra.mxu3 %v6478_v61  ;;  %v6465_v35 = vld [vmem:[%s9122_s3 + $0x268] sm:$0xff]  ;;  %v6463_v61 = vld [vmem:[%s9122_s3 + $0x258] sm:$0xff] }
 0x3e1   :  { %v1834_v2 = vpack.c.bf16 %v1829_v5, %v1829_v5  ;;  %v1854_v42 = vrot.slane %v7690_v54, 1  ;;  %v1915_v12 = vrot.slane %v7709_v59, 3  ;;  %v1916_v63 = vrot.slane %v7690_v54, 4 }
 0x3e2   :  { %v1871_v36 = vrot.slane %v7709_v59, 1  ;;  %v1872_v26 = vrot.slane %v7690_v54, 2 }
 0x3e3   :  { %v7701_v30 = vunpack.c.l.b16 %v1834_v2  ;;  %v1855_v57 = vor.u32 %v1854_v42, %v7709_v59  ;;  %v1917_v47 = vor.u32 %v1916_v63, %v1915_v12 }
 0x3e4   :  { %2846 = vmatpush.bf16.msrb.mxu2 %v6442_v37  ;;  %2946 = vmatpush.bf16.msra.mxu3 %v6477_v24  ;;  %v6457_v37 = vld [vmem:[%s9122_s3 + $0x228] sm:$0xff]  ;;  %v1873_v39 = vor.u32 %v1872_v26, %v1871_v36  ;;  %v6468_v36 = vld [vmem:[%s9122_s3 + $0x280] sm:$0xff]  ;;  %v1908_v26 = vrot.slane %v7648_v32, 3 }
 0x3e5   :  { %v6461_v24 = vld [vmem:[%s9122_s3 + $0x248] sm:$0xff] }
 0x3e6   :  { %v1822_v17 = vpop.f32.mrf.mxu3 }
 0x3e7   :  { %v1830_v46 = vmax.f32 %v7543_v8, %v1822_v17  ;;  %v6422_v8 = vld [vmem:[%s9122_s3 + $0x110] sm:$0xff] }
 0x3e8   :  { %2847 = vmatpush.bf16.msrb.mxu2 %v6441_v50  ;;  %2812 = vmatpush.bf16.msrb.mxu0 %v6422_v8  ;;  %v6456_v50 = vld [vmem:[%s9122_s3 + $0x220] sm:$0xff] }
 0x3e9   :  { %v1835_v56 = vpack.c.bf16 %v1830_v46, %v1830_v46  ;;  %2947 = vmatpush.bf16.msra.mxu3 %v6476_v1 }
 0x3eb   :  { %v7703_v6 = vunpack.c.l.b16 %v1835_v56 }
 0x3ec   :  { %2848 = vmatpush.bf16.msrb.mxu2 %v6440_v44  ;;  %2813 = vmatpush.bf16.msrb.mxu0 %v6421_v33  ;;  %v6474_v44 = vld [vmem:[%s9122_s3 + $0x2b0] sm:$0xff] }
 0x3ed   :  { %v7714_v60 = vpack.c.b16 %v7703_v6, %v7701_v30 }
 0x3ee   :  { %v1824_v13 = vpop.f32.mrf.mxu3 }
 0x3ef   :  { %v1831_v9 = vmax.f32 %v7566_v7, %v1824_v13  ;;  %2744 = vmatmul.bf16.gmra.mxu2 %v7714_v60  ;;  %v1867_v16 = vrot.slane %v7714_v60, 1  ;;  %v7724_v18 = vshll.u32 %v7714_v60, 16  ;;  %v7727_v14 = vshrl.u32 %v7714_v60, 16  ;;  %v6439_v7 = vld [vmem:[%s9122_s3 + $0x198] sm:$0xff]  ;;  %v6462_v13 = vld [vmem:[%s9122_s3 + $0x250] sm:$0xff] }
 0x3f0   :  { %2849 = vmatpush.bf16.msrb.mxu2 %v6439_v7  ;;  %2814 = vmatpush.bf16.msrb.mxu0 %v6420_v55  ;;  %v1884_v55 = vrot.slane %v7714_v60, 2 }
 0x3f1   :  { %v1836_v52 = vpack.c.bf16 %v1831_v9, %v1831_v9  ;;  %v1868_v27 = vsel %vm510_vm2, %v1866_v51, %v1867_v16  ;;  %v1859_v53 = vrot.slane %v7724_v18, 1  ;;  %v1918_v19 = vrot.slane %v7727_v14, 3  ;;  %v6473_v51 = vld [vmem:[%s9122_s3 + $0x2a8] sm:$0xff]  ;;  %v6454_v9 = vld [vmem:[%s9122_s3 + $0x210] sm:$0xff] }
 0x3f2   :  { %2777 = vmatmul.bf16.vlgmr.msra.gmra.mxu1 %v1868_v27  ;;  %v1919_v48 = vrot.slane %v7724_v18, 4  ;;  %v1874_v4 = vrot.slane %v7727_v14, 1  ;;  %v1875_v31 = vrot.slane %v7724_v18, 2  ;;  %v1894_v20 = vrot.slane %v7724_v18, 3 }
 0x3f3   :  { %v1881_v28 = vunpack.c.l.b16 %v1836_v52  ;;  %v1860_v29 = vsel %vm483_vm3, %v1855_v57, %v1859_v53  ;;  %2902 = vmatpush.bf16.msra.mxu1 %v6467_v22  ;;  %v1863_v56 = vor.u32 %v7727_v14, %v1859_v53  ;;  %v1890_v18 = vrot.slane %v7709_v59, 2  ;;  %v6471_v59 = vld [vmem:[%s9122_s3 + $0x298] sm:$0xff] }
 0x3f4   :  { %2758 = vmatmul.bf16.vlgmr.msra.gmra.mxu0 %v1860_v29  ;;  %v1920_v40 = vor.u32 %v1919_v48, %v1918_v19  ;;  %2850 = vmatpush.bf16.msrb.mxu2 %v6438_v21  ;;  %v1876_v15 = vor.u32 %v1875_v31, %v1874_v4  ;;  %v6452_v48 = vld [vmem:[%s9122_s3 + $0x200] sm:$0xff]  ;;  %v1883_v29 = vrot.slane %v7648_v32, 2  ;;  %v6469_v4 = vld [vmem:[%s9122_s3 + $0x288] sm:$0xff] }
 0x3f5   :  { %v7763_v23 = vpack.c.b16 %v1881_v28, %v1881_v28  ;;  %2883 = vmatpush.bf16.msra.mxu0 %v6459_v0  ;;  %v7817_v42 = vpack.c.b16 %v1881_v28, %v7703_v6  ;;  %v7831_v6 = vpack.c.b16 %v7701_v30, %v7639_v11  ;;  %v6472_v11 = vld [vmem:[%s9122_s3 + $0x2a0] sm:$0xff]  ;;  %v6453_v30 = vld [vmem:[%s9122_s3 + $0x208] sm:$0xff]  ;;  %v6470_v0 = vld [vmem:[%s9122_s3 + $0x290] sm:$0xff] }
 0x3f6   :  { %v1921_v62 = vsel %vm583_vm8, %v1917_v47, %v1920_v40  ;;  %v1877_v17 = vsel %vm519_vm6, %v1873_v39, %v1876_v15 }
 0x3f7   :  { %2872 = vmatmul.bf16.vlgmr.msrb.gmra.mxu3 %v1921_v62  ;;  %2903 = vmatpush.bf16.msra.mxu1 %v6466_v58  ;;  %v1898_v41 = vshrl.u32 %v7763_v23, 16  ;;  %v1901_v5 = vshll.u32 %v7763_v23, 16  ;;  %v1940_v7 = vshll.u32 %v7817_v42, 16  ;;  %v1944_v57 = vshrl.u32 %v7817_v42, 16 }
 0x3f8   :  { %2851 = vmatpush.bf16.msrb.mxu2 %v6437_v34  ;;  %v1933_v12 = vshrl.u32 %v7831_v6, 16  ;;  %v1935_v63 = vshll.u32 %v7831_v6, 16  ;;  %v1909_v34 = vrot.slane %v7714_v60, 3  ;;  %v1911_v60 = vrot.slane %v7763_v23, 3 }
 0x3f9   :  { %2884 = vmatpush.bf16.msra.mxu0 %v6458_v38  ;;  %v1922_v2 = vrot.slane %v1898_v41, 3  ;;  %v1923_v46 = vrot.slane %v1901_v5, 4  ;;  %v1957_v27 = vrot.slane %v1944_v57, 1  ;;  %v1958_v53 = vrot.slane %v1940_v7, 2 }
 0x3fa   :  { %v1954_v22 = vrot.slane %v1933_v12, 1  ;;  %v1955_v1 = vrot.slane %v1935_v63, 2  ;;  %v1900_v31 = vrot.slane %v1898_v41, 2  ;;  %v1903_v58 = vrot.slane %v1901_v5, 3 }
 0x3fb   :  { %2904 = vmatpush.bf16.msra.mxu1 %v6465_v35  ;;  %v1924_v8 = vor.u32 %v1923_v46, %v1922_v2  ;;  %v1959_v47 = vor.u32 %v1958_v53, %v1957_v27  ;;  %v1910_v35 = vsel %vm572_vm4, %v1908_v26, %v1909_v34  ;;  %v1912_v32 = vsel %vm572_vm4, %v1909_v34, %v1911_v60 }
 0x3fc   :  { %2852 = vmatpush.bf16.msrb.mxu2 %v6436_v3  ;;  %v1956_v21 = vor.u32 %v1955_v1, %v1954_v22  ;;  %v1904_v38 = vor.u32 %v1903_v58, %v1900_v31  ;;  %v1937_v3 = vrot.slane %v1935_v63, 1  ;;  %v1950_v2 = vrot.slane %v7817_v42, 1 }
 0x3fd   :  { %2885 = vmatpush.bf16.msra.mxu0 %v6457_v37  ;;  %v1925_v33 = vsel %vm583_vm8, %v1920_v40, %v1924_v8  ;;  %v1885_v40 = vsel %vm537_vm5, %v1883_v29, %v1884_v55  ;;  %v1942_v37 = vrot.slane %v1940_v7, 1  ;;  %v1949_v46 = vrot.slane %v7831_v6, 1 }
 0x3fe   :  { %v1960_v62 = vsel %vm519_vm6, %v1956_v21, %v1959_v47  ;;  %v1938_v39 = vor.u32 %v1937_v3, %v1933_v12 }
 0x3ff   :  { %2796 = vmatmul.bf16.vlgmr.msra.gmra.mxu2 %v1877_v17  ;;  %2905 = vmatpush.bf16.msra.mxu1 %v6464_v45  ;;  %v1951_v45 = vsel %vm510_vm2, %v1949_v46, %v1950_v2 }
 0x400   :  { %2921 = vmatpush.bf16.msra.mxu2 %v6475_v49  ;;  %v1943_v17 = vsel %vm483_vm3, %v1938_v39, %v1942_v37 }
 0x401   :  { %2886 = vmatpush.bf16.msra.mxu0 %v6456_v50 }
 0x402   :  { %2782 = vmatmul.bf16.gmra.mxu1 %v1867_v16  ;;  %v1893_v16 = vrot.slane %v7727_v14, 2  ;;  %v1891_v14 = vrot.slane %v7690_v54, 3  ;;  %v6460_v54 = vld [vmem:[%s9122_s3 + $0x240] sm:$0xff] }
 0x403   :  { %2906 = vmatpush.bf16.msra.mxu1 %v6463_v61 }
 0x404   :  { %2763 = vmatmul.bf16.gmra.mxu0 %v1863_v56  ;;  %2922 = vmatpush.bf16.msra.mxu2 %v6474_v44  ;;  %v1895_v52 = vor.u32 %v1894_v20, %v1893_v16  ;;  %v1892_v19 = vor.u32 %v1891_v14, %v1890_v18 }
 0x405   :  { %2887 = vmatpush.bf16.msra.mxu0 %v6455_v43 }
 0x406   :  { %v1896_v28 = vsel %vm548_vm7, %v1892_v19, %v1895_v52  ;;  %v1905_v41 = vsel %vm548_vm7, %v1895_v52, %v1904_v38 }
 0x407   :  { %2877 = vmatmul.bf16.gmra.mxu3 %v1925_v33  ;;  %2907 = vmatpush.bf16.msra.mxu1 %v6462_v13 }
 0x408   :  { %2923 = vmatpush.bf16.msra.mxu2 %v6473_v51 }
 0x409   :  { %2888 = vmatpush.bf16.msra.mxu0 %v6454_v9 }
 0x40b   :  { %2908 = vmatpush.bf16.msra.mxu1 %v6461_v24 }
 0x40c   :  { %2924 = vmatpush.bf16.msra.mxu2 %v6472_v11 }
 0x40d   :  { %2889 = vmatpush.bf16.msra.mxu0 %v6453_v30 }
 0x40f   :  { %2801 = vmatmul.bf16.gmra.mxu2 %v1876_v15  ;;  %2909 = vmatpush.bf16.msra.mxu1 %v6460_v54  ;;  %v1886_v15 = vrot.slane %v7763_v23, 2  ;;  %v1946_v23 = vor.u32 %v1944_v57, %v1942_v37 }
 0x410   :  { %2925 = vmatpush.bf16.msra.mxu2 %v6471_v59 }
 0x411   :  { %2890 = vmatpush.bf16.msra.mxu0 %v6452_v48  ;;  %v1887_v5 = vsel %vm537_vm5, %v1884_v55, %v1886_v15 }
 0x412   :  { %2834 = vmatmul.bf16.vlgmr.msrb.gmra.mxu1 %v1896_v28 }
 0x414   :  { %2815 = vmatmul.bf16.vlgmr.msrb.gmra.mxu0 %v1885_v40  ;;  %2926 = vmatpush.bf16.msra.mxu2 %v6470_v0 }
 0x417   :  { %2948 = vmatmul.bf16.vlgmr.msra.gmra.mxu3 %v1960_v62 }
 0x418   :  { %2927 = vmatpush.bf16.msra.mxu2 %v6469_v4 }
 0x41c   :  { %2928 = vmatpush.bf16.msra.mxu2 %v6468_v36 }
 0x41f   :  { %2853 = vmatmul.bf16.vlgmr.msrb.gmra.mxu2 %v1910_v35 }
 0x422   :  { %2839 = vmatmul.bf16.gmra.mxu1 %v1905_v41 }
 0x424   :  { %2820 = vmatmul.bf16.gmra.mxu0 %v1887_v5 }
 0x427   :  { %2953 = vmatmul.bf16.gmra.mxu3 %v1959_v47 }
 0x42f   :  { %2858 = vmatmul.bf16.gmra.mxu2 %v1912_v32 }
 0x432   :  { %2910 = vmatmul.bf16.vlgmr.msra.gmra.mxu1 %v1943_v17 }
 0x434   :  { %2891 = vmatmul.bf16.vlgmr.msra.gmra.mxu0 %v7831_v6 }
 0x43f   :  { %2929 = vmatmul.bf16.vlgmr.msra.gmra.mxu2 %v1951_v45 }
 0x442   :  { %2915 = vmatmul.bf16.gmra.mxu1 %v1946_v23 }
 0x444   :  { %2896 = vmatmul.bf16.gmra.mxu0 %v7817_v42 }
 0x44f   :  { %2934 = vmatmul.bf16.gmra.mxu2 %v1950_v2 }
 0x462   :  { %v2740_v49 = vpop.f32.mrf.mxu2 }
 0x46a   :  { %v2742_v50 = vpop.f32.mrf.mxu2 }
 0x46f   :  { %v2778_v56 = vpop.f32.mrf.mxu1 }
 0x471   :  { %v2759_v8 = vpop.f32.mrf.mxu0 }
 0x472   :  { %v2760_v61 = vadd.f32 %v2759_v8, %v2740_v49  ;;  %v2745_v44 = vpop.f32.mrf.mxu2  ;;  %v7896_v8 = vperm.slane %v7465_v25, 4 }
 0x474   :  { %v2779_v43 = vadd.f32 %v2778_v56, %v2760_v61 }
 0x477   :  { %v2780_v33 = vpop.f32.mrf.mxu1 }
 0x479   :  { %v2761_v13 = vpop.f32.mrf.mxu0 }
 0x47a   :  { %v2747_v51 = vpop.f32.mrf.mxu2  ;;  %v2762_v24 = vadd.f32 %v2761_v13, %v2742_v50  ;;  %v2873_v63 = vpop.f32.mrf.mxu3 }
 0x47c   :  { %v2781_v11 = vadd.f32 %v2780_v33, %v2762_v24 }
 0x47f   :  { %v2783_v9 = vpop.f32.mrf.mxu1 }
 0x481   :  { %v2764_v6 = vpop.f32.mrf.mxu0 }
 0x482   :  { %v2797_v16 = vpop.f32.mrf.mxu2  ;;  %v2875_v19 = vpop.f32.mrf.mxu3  ;;  %v2765_v4 = vadd.f32 %v2764_v6, %v2745_v44  ;;  %v7900_v6 = vperm.slane %v7465_v25, 5  ;;  %v6515_v25 = vld [vmem:[%s9123_s4 + $0xec] sm:$0xf0] }
 0x483   :  { %v2798_v20 = vadd.f32 %v2797_v16, %v2779_v43 }
 0x484   :  { %v2784_v26 = vadd.f32 %v2783_v9, %v2765_v4 }
 0x487   :  { %v2785_v7 = vpop.f32.mrf.mxu1 }
 0x489   :  { %v2766_v57 = vpop.f32.mrf.mxu0 }
 0x48a   :  { %v2799_v42 = vpop.f32.mrf.mxu2  ;;  %v2878_v48 = vpop.f32.mrf.mxu3  ;;  %v2767_v3 = vadd.f32 %v2766_v57, %v2747_v51 }
 0x48b   :  { %v2800_v30 = vadd.f32 %v2799_v42, %v2781_v11 }
 0x48c   :  { %v2786_v46 = vadd.f32 %v2785_v7, %v2767_v3  ;;  %v5698_v3 = vld [vmem:[%s9123_s4 + $0x1a0] sm:$0xf] }
 0x48f   :  { %v2835_v14 = vpop.f32.mrf.mxu1 }
 0x491   :  { %v2816_v18 = vpop.f32.mrf.mxu0 }
 0x492   :  { %v2802_v12 = vpop.f32.mrf.mxu2  ;;  %v2817_v29 = vadd.f32 %v2816_v18, %v2798_v20  ;;  %v2880_v40 = vpop.f32.mrf.mxu3 }
 0x493   :  { %v2803_v5 = vadd.f32 %v2802_v12, %v2784_v26  ;;  %v5586_v12 = vld [vmem:[%s9123_s4 + $0xc0] sm:$0xf] }
 0x494   :  { %v2836_v0 = vadd.f32 %v2835_v14, %v2817_v29  ;;  %v5602_v14 = vld [vmem:[%s9123_s4 + $0xe0] sm:$0xf] }
 0x495   :  { %v5858_v29 = vld [vmem:[%s9123_s4 + $0x2e0] sm:$0xf] }
 0x497   :  { %v2837_v53 = vpop.f32.mrf.mxu1 }
 0x499   :  { %v2818_v52 = vpop.f32.mrf.mxu0 }
 0x49a   :  { %v2804_v27 = vpop.f32.mrf.mxu2  ;;  %v2819_v31 = vadd.f32 %v2818_v52, %v2800_v30  ;;  %v2949_v38 = vpop.f32.mrf.mxu3 }
 0x49b   :  { %v2805_v50 = vadd.f32 %v2804_v27, %v2786_v46 }
 0x49c   :  { %v2838_v35 = vadd.f32 %v2837_v53, %v2819_v31  ;;  %v5603_v53 = vor.u32 %v6515_v25, %v5602_v14  ;;  %v6507_v31 = vld [vmem:[%s9123_s4 + $0xac] sm:$0xf0] }
 0x49e   :  { %3782 = vmatpush.bf16.msrb.mxu1 %v5603_v53 }
 0x49f   :  { %v2840_v59 = vpop.f32.mrf.mxu1 }
 0x4a1   :  { %v2821_v55 = vpop.f32.mrf.mxu0 }
 0x4a2   :  { %v2854_v54 = vpop.f32.mrf.mxu2  ;;  %v2822_v37 = vadd.f32 %v2821_v55, %v2803_v5  ;;  %v2951_v61 = vpop.f32.mrf.mxu3  ;;  %v5730_v55 = vld [vmem:[%s9123_s4 + $0x1e0] sm:$0xf] }
 0x4a3   :  { %v2855_v62 = vadd.f32 %v2854_v54, %v2836_v0  ;;  %v6547_v54 = vld [vmem:[%s9123_s4 + $0x1ec] sm:$0xf0] }
 0x4a4   :  { %v2841_v23 = vadd.f32 %v2840_v59, %v2822_v37  ;;  %v6539_v37 = vld [vmem:[%s9123_s4 + $0x1ac] sm:$0xf0] }
 0x4a5   :  { %v2874_v36 = vadd.f32 %v2873_v63, %v2855_v62  ;;  %v5699_v46 = vor.u32 %v6539_v37, %v5698_v3  ;;  %v5618_v3 = vld [vmem:[%s9123_s4 + $0x100] sm:$0xf] }
 0x4a7   :  { %v2842_v28 = vpop.f32.mrf.mxu1 }
 0x4a9   :  { %v2823_v22 = vpop.f32.mrf.mxu0 }
 0x4aa   :  { %v2856_v1 = vpop.f32.mrf.mxu2  ;;  %v2824_v43 = vadd.f32 %v2823_v22, %v2805_v50  ;;  %v2954_v63 = vpop.f32.mrf.mxu3  ;;  %v5682_v50 = vld [vmem:[%s9123_s4 + $0x180] sm:$0xf] }
 0x4ab   :  { %v2857_v60 = vadd.f32 %v2856_v1, %v2838_v35  ;;  %v5842_v35 = vld [vmem:[%s9123_s4 + $0x2c0] sm:$0xf] }
 0x4ac   :  { %v2843_v24 = vadd.f32 %v2842_v28, %v2824_v43  ;;  %v5731_v28 = vor.u32 %v6547_v54, %v5730_v55  ;;  %v6567_v43 = vld [vmem:[%s9123_s4 + $0x28c] sm:$0xf0]  ;;  %v5778_v54 = vld [vmem:[%s9123_s4 + $0x240] sm:$0xf] }
 0x4ad   :  { %v2876_v17 = vadd.f32 %v2875_v19, %v2857_v60  ;;  %v6511_v19 = vld [vmem:[%s9123_s4 + $0xcc] sm:$0xf0] }
 0x4ae   :  { %v5587_v62 = vor.u32 %v6511_v19, %v5586_v12  ;;  %3795 = vmatpush.bf16.msrb.mxu2 %v5731_v28  ;;  %v6527_v55 = vld [vmem:[%s9123_s4 + $0x14c] sm:$0xf0] }
 0x4af   :  { %v2911_v58 = vpop.f32.mrf.mxu1  ;;  %v6491_v28 = vld [vmem:[%s9123_s4 + $0x2c] sm:$0xf0] }
 0x4b0   :  { %3783 = vmatpush.bf16.msrb.mxu1 %v5587_v62  ;;  %v6523_v62 = vld [vmem:[%s9123_s4 + $0x12c] sm:$0xf0] }
 0x4b1   :  { %v2892_v21 = vpop.f32.mrf.mxu0 }
 0x4b2   :  { %v2859_v47 = vpop.f32.mrf.mxu2  ;;  %v2893_v15 = vadd.f32 %v2892_v21, %v2874_v36 }
 0x4b3   :  { %v2860_v44 = vadd.f32 %v2859_v47, %v2841_v23  ;;  %v6579_v47 = vld [vmem:[%s9123_s4 + $0x2ec] sm:$0xf0] }
 0x4b4   :  { %v2912_v32 = vadd.f32 %v2911_v58, %v2893_v15  ;;  %v5859_v4 = vor.u32 %v6579_v47, %v5858_v29  ;;  %v5714_v58 = vld [vmem:[%s9123_s4 + $0x1c0] sm:$0xf]  ;;  %v6575_v15 = vld [vmem:[%s9123_s4 + $0x2cc] sm:$0xf0] }
 0x4b5   :  { %v2879_v16 = vadd.f32 %v2878_v48, %v2860_v44  ;;  %v5810_v44 = vld [vmem:[%s9123_s4 + $0x280] sm:$0xf] }
 0x4b6   :  { %3808 = vmatpush.bf16.msrb.mxu3 %v5859_v4  ;;  %v5762_v4 = vld [vmem:[%s9123_s4 + $0x220] sm:$0xf] }
 0x4b7   :  { %v2913_v45 = vpop.f32.mrf.mxu1 }
 0x4b9   :  { %v2894_v41 = vpop.f32.mrf.mxu0 }
 0x4ba   :  { %v2861_v34 = vpop.f32.mrf.mxu2  ;;  %v2895_v49 = vadd.f32 %v2894_v41, %v2876_v17  ;;  %v5843_v41 = vor.u32 %v6575_v15, %v5842_v35  ;;  %v5554_v17 = vld [vmem:[%s9123_s4 + $0x80] sm:$0xf]  ;;  %v6487_v35 = vld [vmem:[%s9123_s4 + $0xc] sm:$0xf0] }
 0x4bb   :  { %v2862_v11 = vadd.f32 %v2861_v34, %v2843_v24  ;;  %v6543_v34 = vld [vmem:[%s9123_s4 + $0x1cc] sm:$0xf0]  ;;  %v5970_v15 = vld [vmem:[%s9123_s4 + $0x3c0] sm:$0xf] }
 0x4bc   :  { %v2914_v13 = vadd.f32 %v2913_v45, %v2895_v49  ;;  %v6571_v45 = vld [vmem:[%s9123_s4 + $0x2ac] sm:$0xf0]  ;;  %3809 = vmatpush.bf16.msrb.mxu3 %v5843_v41  ;;  %v6513_v41 = vld [vmem:[%s9123_s4 + $0xe4] sm:$0xf] }
 0x4bd   :  { %v2881_v59 = vadd.f32 %v2880_v40, %v2862_v11  ;;  %v5570_v40 = vld [vmem:[%s9123_s4 + $0xa0] sm:$0xf] }
 0x4be   :  { %v5571_v60 = vor.u32 %v6507_v31, %v5570_v40  ;;  %v5666_v11 = vld [vmem:[%s9123_s4 + $0x160] sm:$0xf]  ;;  %v6555_v40 = vld [vmem:[%s9123_s4 + $0x22c] sm:$0xf0] }
 0x4bf   :  { %v2916_v42 = vpop.f32.mrf.mxu1 }
 0x4c0   :  { %3784 = vmatpush.bf16.msrb.mxu1 %v5571_v60  ;;  %v5763_v60 = vor.u32 %v6555_v40, %v5762_v4  ;;  %v5890_v4 = vld [vmem:[%s9123_s4 + $0x320] sm:$0xf]  ;;  %v6587_v40 = vld [vmem:[%s9123_s4 + $0x32c] sm:$0xf0] }
 0x4c1   :  { %v2897_v33 = vpop.f32.mrf.mxu0 }
 0x4c2   :  { %v2930_v39 = vpop.f32.mrf.mxu2  ;;  %v2898_v7 = vadd.f32 %v2897_v33, %v2879_v16  ;;  %v5538_v16 = vld [vmem:[%s9123_s4 + $0x60] sm:$0xf] }
 0x4c3   :  { %v2931_v2 = vadd.f32 %v2930_v39, %v2912_v32  ;;  %v5826_v32 = vld [vmem:[%s9123_s4 + $0x2a0] sm:$0xf] }
 0x4c4   :  { %v2917_v52 = vadd.f32 %v2916_v42, %v2898_v7  ;;  %v5827_v49 = vor.u32 %v6571_v45, %v5826_v32  ;;  %v6531_v42 = vld [vmem:[%s9123_s4 + $0x16c] sm:$0xf0]  ;;  %v6545_v45 = vld [vmem:[%s9123_s4 + $0x1e4] sm:$0xf] }
 0x4c5   :  { %v2950_v56 = vadd.f32 %v2949_v38, %v2931_v2  ;;  %v5715_v38 = vor.u32 %v6543_v34, %v5714_v58  ;;  %v6503_v2 = vld [vmem:[%s9123_s4 + $0x8c] sm:$0xf0]  ;;  %v5986_v58 = vld [vmem:[%s9123_s4 + $0x3e0] sm:$0xf] }
 0x4c6   :  { %3810 = vmatpush.bf16.msrb.mxu3 %v5827_v49  ;;  %v6611_v34 = vld [vmem:[%s9123_s4 + $0x3ec] sm:$0xf0]  ;;  %v6484_v49 = vld [vmem:[%s9127_s8] sm:$0xff] }
 0x4c7   :  { %v2960_v51 = vmul.f32 %v7896_v8, %v2950_v56  ;;  %v2918_v39 = vpop.f32.mrf.mxu1  ;;  %3796 = vmatpush.bf16.msrb.mxu2 %v5715_v38  ;;  %v5490_v38 = vld [vmem:[%s9123_s4] sm:$0xf]  ;;  %v5987_v37 = vor.u32 %v6611_v34, %v5986_v58  ;;  %v6519_v32 = vld [vmem:[%s9123_s4 + $0x10c] sm:$0xf0] }
 0x4c8   :  { %v5874_v58 = vld [vmem:[%s9123_s4 + $0x300] sm:$0xf]  ;;  %v6583_v34 = vld [vmem:[%s9123_s4 + $0x30c] sm:$0xf0] }
 0x4c9   :  { %v2965_v30 = vadd.f32 %v7900_v6, %v2960_v51  ;;  %v2899_v48 = vpop.f32.mrf.mxu0  ;;  %v5555_v51 = vor.u32 %v6503_v2, %v5554_v17  ;;  %v6551_v17 = vld [vmem:[%s9123_s4 + $0x20c] sm:$0xf0] }
 0x4ca   :  { %v2932_v9 = vpop.f32.mrf.mxu2  ;;  %v2900_v36 = vadd.f32 %v2899_v48, %v2881_v59  ;;  %v6559_v59 = vld [vmem:[%s9123_s4 + $0x24c] sm:$0xf0] }
 0x4cb   :  { %v2933_v20 = vadd.f32 %v2932_v9, %v2914_v13  ;;  %v2969_v1 = vmax.f32 %v2965_v30, 0.0  ;;  %v2956_v9 = vpop.f32.mrf.mxu3  ;;  %3797 = vmatpush.bf16.msrb.mxu2 %v5699_v46  ;;  %v5794_v30 = vld [vmem:[%s9123_s4 + $0x260] sm:$0xf]  ;;  %3785 = vmatpush.bf16.msrb.mxu1 %v5555_v51  ;;  %v6607_v2 = vld [vmem:[%s9123_s4 + $0x3cc] sm:$0xf0]  ;;  %v5491_v46 = vor.u32 %v6487_v35, %v5490_v38  ;;  %v5875_v35 = vor.u32 %v6583_v34, %v5874_v58 }
 0x4cc   :  { %v2919_v23 = vadd.f32 %v2918_v39, %v2900_v36  ;;  %v5746_v39 = vld [vmem:[%s9123_s4 + $0x200] sm:$0xf]  ;;  %v5971_v51 = vor.u32 %v6607_v2, %v5970_v15  ;;  %v5988_v38 = vld [vmem:[%s9123_s4 + $0x3f0] sm:$0xf0]  ;;  %v6605_v15 = vld [vmem:[%s9123_s4 + $0x3c4] sm:$0xf] }
 0x4cd   :  { %v2952_v57 = vadd.f32 %v2951_v61, %v2933_v20  ;;  %v6535_v61 = vld [vmem:[%s9123_s4 + $0x18c] sm:$0xf0]  ;;  %v5748_v58 = vld [vmem:[%s9123_s4 + $0x210] sm:$0xf0]  ;;  %v6581_v34 = vld [vmem:[%s9123_s4 + $0x304] sm:$0xf] }
 0x4ce   :  { %v6499_v20 = vld [vmem:[%s9123_s4 + $0x6c] sm:$0xf0]  ;;  %v5683_v24 = vor.u32 %v6535_v61, %v5682_v50  ;;  %v5860_v61 = vld [vmem:[%s9123_s4 + $0x2f0] sm:$0xf0] }
 0x4cf   :  { %v2961_v18 = vmul.f32 %v7896_v8, %v2952_v57  ;;  %v5811_v57 = vor.u32 %v6567_v43, %v5810_v44  ;;  %v5539_v12 = vor.u32 %v6499_v20, %v5538_v16  ;;  %v6509_v44 = vld [vmem:[%s9123_s4 + $0xc4] sm:$0xf]  ;;  %v5588_v43 = vld [vmem:[%s9123_s4 + $0xd0] sm:$0xf0] }
 0x4d0   :  { %3798 = vmatpush.bf16.msrb.mxu2 %v5683_v24  ;;  %v6541_v24 = vld [vmem:[%s9123_s4 + $0x1c4] sm:$0xf] }
 0x4d1   :  { %v2966_v27 = vadd.f32 %v7900_v6, %v2961_v18  ;;  %v6563_v18 = vld [vmem:[%s9123_s4 + $0x26c] sm:$0xf0]  ;;  %3811 = vmatpush.bf16.msrb.mxu3 %v5811_v57  ;;  %3786 = vmatpush.bf16.msrb.mxu1 %v5539_v12  ;;  %v5591_v57 = vor.u32 %v6509_v44, %v5588_v43  ;;  %v6493_v44 = vld [vmem:[%s9123_s4 + $0x44] sm:$0xf] }
 0x4d2   :  { %v2935_v22 = vpop.f32.mrf.mxu2  ;;  %v5795_v19 = vor.u32 %v6563_v18, %v5794_v30  ;;  %v6505_v30 = vld [vmem:[%s9123_s4 + $0xa4] sm:$0xf]  ;;  %v5572_v18 = vld [vmem:[%s9123_s4 + $0xb0] sm:$0xf0] }
 0x4d3   :  { %v2936_v21 = vadd.f32 %v2935_v22, %v2917_v52  ;;  %v2970_v0 = vmax.f32 %v2966_v27, 0.0  ;;  %v6495_v52 = vld [vmem:[%s9123_s4 + $0x4c] sm:$0xf0]  ;;  %v5667_v27 = vor.u32 %v6531_v42, %v5666_v11  ;;  %v6573_v11 = vld [vmem:[%s9123_s4 + $0x2c4] sm:$0xf] }
 0x4d4   :  { %v5844_v42 = vld [vmem:[%s9123_s4 + $0x2d0] sm:$0xf0] }
 0x4d5   :  { %v7941_v26 = vpack.c.bf16 %v2970_v0, %v2969_v1  ;;  %v2955_v5 = vadd.f32 %v2954_v63, %v2936_v21  ;;  %v5522_v63 = vld [vmem:[%s9123_s4 + $0x40] sm:$0xf]  ;;  %3799 = vmatpush.bf16.msrb.mxu2 %v5667_v27  ;;  %3812 = vmatpush.bf16.msrb.mxu3 %v5795_v19  ;;  %v5779_v21 = vor.u32 %v6559_v59, %v5778_v54  ;;  %v6537_v27 = vld [vmem:[%s9123_s4 + $0x1a4] sm:$0xf]  ;;  %v5556_v59 = vld [vmem:[%s9123_s4 + $0x90] sm:$0xf0] }
 0x4d6   :  { %v5523_v22 = vor.u32 %v6495_v52, %v5522_v63  ;;  %v5506_v1 = vld [vmem:[%s9123_s4 + $0x20] sm:$0xf]  ;;  %v6599_v63 = vld [vmem:[%s9123_s4 + $0x38c] sm:$0xf0]  ;;  %v5847_v52 = vor.u32 %v6573_v11, %v5844_v42  ;;  %v5575_v19 = vor.u32 %v6505_v30, %v5572_v18  ;;  %v6501_v54 = vld [vmem:[%s9123_s4 + $0x84] sm:$0xf] }
 0x4d7   :  { %v2962_v33 = vmul.f32 %v7896_v8, %v2955_v5  ;;  %v5634_v0 = vld [vmem:[%s9123_s4 + $0x120] sm:$0xf]  ;;  %v5507_v36 = vor.u32 %v6491_v28, %v5506_v1  ;;  %v5604_v5 = vld [vmem:[%s9123_s4 + $0xf0] sm:$0xf0]  ;;  %v6595_v1 = vld [vmem:[%s9123_s4 + $0x36c] sm:$0xf0] }
 0x4d8   :  { %3787 = vmatpush.bf16.msrb.mxu1 %v5523_v22  ;;  %v5607_v50 = vor.u32 %v6513_v41, %v5604_v5  ;;  %v5922_v22 = vld [vmem:[%s9123_s4 + $0x360] sm:$0xf]  ;;  %v5972_v41 = vld [vmem:[%s9123_s4 + $0x3d0] sm:$0xf0]  ;;  %v6489_v42 = vld [vmem:[%s9123_s4 + $0x24] sm:$0xf] }
 0x4d9   :  { %v2967_v14 = vadd.f32 %v7900_v6, %v2962_v33  ;;  %3813 = vmatpush.bf16.msrb.mxu3 %v5779_v21  ;;  %v5619_v33 = vor.u32 %v6519_v32, %v5618_v3  ;;  %v5906_v21 = vld [vmem:[%s9123_s4 + $0x340] sm:$0xf]  ;;  %v5975_v5 = vor.u32 %v6605_v15, %v5972_v41  ;;  %v5956_v3 = vld [vmem:[%s9123_s4 + $0x3b0] sm:$0xf0]  ;;  %v6497_v32 = vld [vmem:[%s9123_s4 + $0x64] sm:$0xf] }
 0x4da   :  { %v2937_v56 = vpop.f32.mrf.mxu2  ;;  %v5508_v30 = vld [vmem:[%s9123_s4 + $0x30] sm:$0xf0]  ;;  %v5610_v15 = vld [vmem:[%s9123_s4 + $0xe8] sm:$0xf]  ;;  %v6516_v41 = vld [vmem:[%s9123_s4 + $0xf4] sm:$0xf0] }
 0x4db   :  { %v2938_v13 = vadd.f32 %v2937_v56, %v2919_v23  ;;  %v2971_v48 = vmax.f32 %v2967_v14, 0.0  ;;  %v5732_v23 = vld [vmem:[%s9123_s4 + $0x1f0] sm:$0xf0]  ;;  %v6577_v56 = vld [vmem:[%s9123_s4 + $0x2e4] sm:$0xf]  ;;  %v5511_v18 = vor.u32 %v6489_v42, %v5508_v30 }
 0x4dc   :  { %3788 = vmatpush.bf16.msrb.mxu1 %v5507_v36  ;;  %v5735_v16 = vor.u32 %v6545_v45, %v5732_v23  ;;  %v5863_v20 = vor.u32 %v6577_v56, %v5860_v61  ;;  %v6609_v36 = vld [vmem:[%s9123_s4 + $0x3e4] sm:$0xf]  ;;  %v5812_v23 = vld [vmem:[%s9123_s4 + $0x290] sm:$0xf0]  ;;  %v5978_v42 = vld [vmem:[%s9123_s4 + $0x3c8] sm:$0xf] }
 0x4dd   :  { %v2957_v7 = vadd.f32 %v2956_v9, %v2938_v13  ;;  %3814 = vmatpush.bf16.msrb.mxu3 %v5763_v60  ;;  %v5747_v13 = vor.u32 %v6551_v17, %v5746_v39  ;;  %v5954_v9 = vld [vmem:[%s9123_s4 + $0x3a0] sm:$0xf]  ;;  %v6601_v60 = vld [vmem:[%s9123_s4 + $0x3a4] sm:$0xf]  ;;  %v5540_v39 = vld [vmem:[%s9123_s4 + $0x70] sm:$0xf0] }
 0x4de   :  { %v6533_v17 = vld [vmem:[%s9123_s4 + $0x184] sm:$0xf]  ;;  %v5543_v2 = vor.u32 %v6497_v32, %v5540_v39  ;;  %v5940_v61 = vld [vmem:[%s9123_s4 + $0x390] sm:$0xf0]  ;;  %v5594_v32 = vld [vmem:[%s9123_s4 + $0xc8] sm:$0xf] }
 0x4df   :  { %v2963_v25 = vmul.f32 %v7896_v8, %v2957_v7  ;;  %v5650_v8 = vld [vmem:[%s9123_s4 + $0x140] sm:$0xf]  ;;  %v5716_v7 = vld [vmem:[%s9123_s4 + $0x1d0] sm:$0xf0]  ;;  %v6565_v45 = vld [vmem:[%s9123_s4 + $0x284] sm:$0xf] }
 0x4e0   :  { %v5651_v29 = vor.u32 %v6527_v55, %v5650_v8  ;;  %3789 = vmatpush.bf16.msrb.mxu1 %v5491_v46  ;;  %v5719_v12 = vor.u32 %v6541_v24, %v5716_v7  ;;  %v6569_v8 = vld [vmem:[%s9123_s4 + $0x2a4] sm:$0xf]  ;;  %v5828_v55 = vld [vmem:[%s9123_s4 + $0x2b0] sm:$0xf0]  ;;  %v6512_v39 = vld [vmem:[%s9123_s4 + $0xd4] sm:$0xf0] }
 0x4e1   :  { %v2968_v53 = vadd.f32 %v7900_v6, %v2963_v25  ;;  %3815 = vmatpush.bf16.msrb.mxu3 %v5747_v13  ;;  %v5938_v25 = vld [vmem:[%s9123_s4 + $0x380] sm:$0xf]  ;;  %v5831_v28 = vor.u32 %v6569_v8, %v5828_v55  ;;  %v5684_v46 = vld [vmem:[%s9123_s4 + $0x190] sm:$0xf0]  ;;  %v6597_v56 = vld [vmem:[%s9123_s4 + $0x384] sm:$0xf] }
 0x4e2   :  { %3800 = vmatpush.bf16.msrb.mxu2 %v5651_v29  ;;  %v5559_v29 = vor.u32 %v6501_v54, %v5556_v59  ;;  %v5943_v43 = vor.u32 %v6597_v56, %v5940_v61  ;;  %v6529_v13 = vld [vmem:[%s9123_s4 + $0x164] sm:$0xf]  ;;  %v5492_v54 = vld [vmem:[%s9123_s4 + $0x10] sm:$0xf0]  ;;  %v6612_v56 = vld [vmem:[%s9123_s4 + $0x3f4] sm:$0xf0] }
 0x4e3   :  { %v2972_v6 = vmax.f32 %v2968_v53, 0.0  ;;  %v5700_v53 = vld [vmem:[%s9123_s4 + $0x1b0] sm:$0xf0]  ;;  %v6593_v24 = vld [vmem:[%s9123_s4 + $0x364] sm:$0xf] }
 0x4e4   :  { %3834 = vmatpush.bf16.msra.mxu1 %v5607_v50  ;;  %v5815_v50 = vor.u32 %v6565_v45, %v5812_v23  ;;  %v6485_v55 = vld [vmem:[%s9123_s4 + $0x4] sm:$0xf]  ;;  %v5866_v45 = vld [vmem:[%s9123_s4 + $0x2e8] sm:$0xf]  ;;  %v6580_v23 = vld [vmem:[%s9123_s4 + $0x2f4] sm:$0xf0] }
 0x4e5   :  { %v2976_v47 = vpack.c.bf16 %v2972_v6, %v2971_v48  ;;  %3860 = vmatpush.bf16.msra.mxu3 %v5863_v20  ;;  %v5939_v48 = vor.u32 %v6599_v63, %v5938_v25  ;;  %v5703_v6 = vor.u32 %v6537_v27, %v5700_v53  ;;  %v5796_v20 = vld [vmem:[%s9123_s4 + $0x270] sm:$0xf0]  ;;  %v6589_v27 = vld [vmem:[%s9123_s4 + $0x344] sm:$0xf]  ;;  %v5495_v59 = vor.u32 %v6485_v55, %v5492_v54  ;;  %v6608_v30 = vld [vmem:[%s9123_s4 + $0x3d4] sm:$0xf0] }
 0x4e6   :  { %v5652_v25 = vld [vmem:[%s9123_s4 + $0x150] sm:$0xf0]  ;;  %v5962_v55 = vld [vmem:[%s9123_s4 + $0x3a8] sm:$0xf]  ;;  %v6604_v54 = vld [vmem:[%s9123_s4 + $0x3b4] sm:$0xf0] }
 0x4e7   :  { %v2987_v31 = vand.u32 %v2976_v47, %v7474_v10  ;;  %v5635_v10 = vor.u32 %v6523_v62, %v5634_v0  ;;  %v5923_v47 = vor.u32 %v6595_v1, %v5922_v22  ;;  %v6591_v0 = vld [vmem:[%s9123_s4 + $0x34c] sm:$0xf0]  ;;  %v5908_v53 = vld [vmem:[%s9123_s4 + $0x350] sm:$0xf0]  ;;  %v6553_v22 = vld [vmem:[%s9123_s4 + $0x224] sm:$0xf] }
 0x4e8   :  { %3835 = vmatpush.bf16.msra.mxu1 %v5591_v57  ;;  %v5907_v62 = vor.u32 %v6591_v0, %v5906_v21  ;;  %v5924_v57 = vld [vmem:[%s9123_s4 + $0x370] sm:$0xf0]  ;;  %v5911_v8 = vor.u32 %v6589_v27, %v5908_v53  ;;  %v6540_v27 = vld [vmem:[%s9123_s4 + $0x1b4] sm:$0xf0]  ;;  %v5834_v53 = vld [vmem:[%s9123_s4 + $0x2a8] sm:$0xf] }
 0x4e9   :  { %2995 = vmatpush.bf16.msrb.mxu0 %v2987_v31  ;;  %3801 = vmatpush.bf16.msrb.mxu2 %v5635_v10  ;;  %v5891_v31 = vor.u32 %v6587_v40, %v5890_v4  ;;  %v5991_v10 = vor.u32 %v6609_v36, %v5988_v38  ;;  %v5927_v11 = vor.u32 %v6593_v24, %v5924_v57  ;;  %v5764_v1 = vld [vmem:[%s9123_s4 + $0x230] sm:$0xf0] }
 0x4ea   :  { %3861 = vmatpush.bf16.msra.mxu3 %v5847_v52  ;;  %v5780_v52 = vld [vmem:[%s9123_s4 + $0x250] sm:$0xf0] }
 0x4eb   :  { %v5892_v21 = vld [vmem:[%s9123_s4 + $0x330] sm:$0xf0] }
 0x4ec   :  { %3836 = vmatpush.bf16.msra.mxu1 %v5575_v19  ;;  %v5620_v4 = vld [vmem:[%s9123_s4 + $0x110] sm:$0xf0] }
 0x4ed   :  { %2996 = vmatpush.bf16.msrb.mxu0 %v7941_v26  ;;  %v6603_v26 = vld [vmem:[%s9123_s4 + $0x3ac] sm:$0xf0]  ;;  %3802 = vmatpush.bf16.msrb.mxu2 %v5619_v33  ;;  %v5524_v33 = vld [vmem:[%s9123_s4 + $0x50] sm:$0xf0] }
 0x4ee   :  { %v5955_v14 = vor.u32 %v6603_v26, %v5954_v9  ;;  %3862 = vmatpush.bf16.msra.mxu3 %v5831_v28  ;;  %v5527_v9 = vor.u32 %v6493_v44, %v5524_v33  ;;  %v6561_v26 = vld [vmem:[%s9123_s4 + $0x264] sm:$0xf]  ;;  %v5876_v38 = vld [vmem:[%s9123_s4 + $0x310] sm:$0xf0]  ;;  %v5578_v44 = vld [vmem:[%s9123_s4 + $0xa8] sm:$0xf] }
 0x4ef   :  { %v5799_v7 = vor.u32 %v6561_v26, %v5796_v20 }
 0x4f0   :  { %5487 = vmatmul.msk.bf16.vlgmr.msrb.gmra.mxu0 %vm2982_vm10, %v6484_v49  ;;  %3837 = vmatpush.bf16.msra.mxu1 %v5559_v29  ;;  %v5687_v49 = vor.u32 %v6533_v17, %v5684_v46  ;;  %v5767_v29 = vor.u32 %v6553_v22, %v5764_v1  ;;  %v5738_v17 = vld [vmem:[%s9123_s4 + $0x1e8] sm:$0xf]  ;;  %v6548_v46 = vld [vmem:[%s9123_s4 + $0x1f4] sm:$0xf0]  ;;  %v5963_v1 = vor.u32 %v6604_v54, %v5962_v55 }
 0x4f1   :  { %3821 = vmatpush.bf16.msra.mxu0 %v5987_v37  ;;  %3847 = vmatpush.bf16.msra.mxu2 %v5735_v16  ;;  %v5959_v37 = vor.u32 %v6601_v60, %v5956_v3  ;;  %v5611_v3 = vor.u32 %v6516_v41, %v5610_v15  ;;  %v5739_v33 = vor.u32 %v6548_v46, %v5738_v17  ;;  %v6564_v15 = vld [vmem:[%s9123_s4 + $0x274] sm:$0xf0] }
 0x4f2   :  { %3863 = vmatpush.bf16.msra.mxu3 %v5815_v50  ;;  %v5994_v50 = vld [vmem:[%s9123_s4 + $0x3e8] sm:$0xf]  ;;  %v6552_v54 = vld [vmem:[%s9123_s4 + $0x214] sm:$0xf0] }
 0x4f3   :  { %v5995_v24 = vor.u32 %v6612_v56, %v5994_v50  ;;  %v5914_v56 = vld [vmem:[%s9123_s4 + $0x348] sm:$0xf] }
 0x4f4   :  { %3838 = vmatpush.bf16.msra.mxu1 %v5543_v2 }
 0x4f5   :  { %3822 = vmatpush.bf16.msra.mxu0 %v5971_v51  ;;  %3848 = vmatpush.bf16.msra.mxu2 %v5719_v12  ;;  %v5668_v51 = vld [vmem:[%s9123_s4 + $0x170] sm:$0xf0]  ;;  %v6557_v12 = vld [vmem:[%s9123_s4 + $0x244] sm:$0xf] }
 0x4f6   :  { %v5671_v16 = vor.u32 %v6529_v13, %v5668_v51  ;;  %3864 = vmatpush.bf16.msra.mxu3 %v5799_v7  ;;  %v5783_v19 = vor.u32 %v6557_v12, %v5780_v52  ;;  %v5867_v13 = vor.u32 %v6580_v23, %v5866_v45  ;;  %v5722_v51 = vld [vmem:[%s9123_s4 + $0x1c8] sm:$0xf]  ;;  %v6528_v45 = vld [vmem:[%s9123_s4 + $0x154] sm:$0xf0] }
 0x4f7   :  { %v5850_v7 = vld [vmem:[%s9123_s4 + $0x2c8] sm:$0xf] }
 0x4f8   :  { %3839 = vmatpush.bf16.msra.mxu1 %v5527_v9  ;;  %v6544_v9 = vld [vmem:[%s9123_s4 + $0x1d4] sm:$0xf0]  ;;  %v5706_v52 = vld [vmem:[%s9123_s4 + $0x1a8] sm:$0xf] }
 0x4f9   :  { %3823 = vmatpush.bf16.msra.mxu0 %v5955_v14  ;;  %3849 = vmatpush.bf16.msra.mxu2 %v5703_v6  ;;  %v6525_v14 = vld [vmem:[%s9123_s4 + $0x144] sm:$0xf]  ;;  %v5636_v6 = vld [vmem:[%s9123_s4 + $0x130] sm:$0xf0]  ;;  %v5786_v23 = vld [vmem:[%s9123_s4 + $0x248] sm:$0xf] }
 0x4fa   :  { %v5655_v63 = vor.u32 %v6525_v14, %v5652_v25  ;;  %3865 = vmatpush.bf16.msra.mxu3 %v5783_v19  ;;  %v6504_v14 = vld [vmem:[%s9123_s4 + $0x94] sm:$0xf0]  ;;  %v5723_v25 = vor.u32 %v6544_v9, %v5722_v51  ;;  %v6514_v51 = vld [vmem:[%s9123_s4 + $0xec] sm:$0xf]  ;;  %v5612_v9 = vld [vmem:[%s9123_s4 + $0xf8] sm:$0xf0] }
 0x4fc   :  { %3840 = vmatpush.bf16.msra.mxu1 %v5511_v18  ;;  %v5562_v18 = vld [vmem:[%s9123_s4 + $0x88] sm:$0xf] }
 0x4fd   :  { %3824 = vmatpush.bf16.msra.mxu0 %v5939_v48  ;;  %3850 = vmatpush.bf16.msra.mxu2 %v5687_v49  ;;  %v6521_v48 = vld [vmem:[%s9123_s4 + $0x124] sm:$0xf]  ;;  %v5595_v49 = vor.u32 %v6512_v39, %v5594_v32  ;;  %v5563_v19 = vor.u32 %v6504_v14, %v5562_v18  ;;  %v6492_v32 = vld [vmem:[%s9123_s4 + $0x34] sm:$0xf0]  ;;  %v5898_v18 = vld [vmem:[%s9123_s4 + $0x328] sm:$0xf] }
 0x4fe   :  { %v5639_v28 = vor.u32 %v6521_v48, %v5636_v6  ;;  %3866 = vmatpush.bf16.msra.mxu3 %v5767_v29  ;;  %v5546_v48 = vld [vmem:[%s9123_s4 + $0x68] sm:$0xf]  ;;  %v6500_v6 = vld [vmem:[%s9123_s4 + $0x74] sm:$0xf0] }
 0x4ff   :  { %v6536_v29 = vld [vmem:[%s9123_s4 + $0x194] sm:$0xf0] }
 0x500   :  { %3841 = vmatpush.bf16.msra.mxu1 %v5495_v59  ;;  %v5707_v59 = vor.u32 %v6540_v27, %v5706_v52  ;;  %v6588_v14 = vld [vmem:[%s9123_s4 + $0x334] sm:$0xf0] }
 0x501   :  { %3825 = vmatpush.bf16.msra.mxu0 %v5923_v47  ;;  %3851 = vmatpush.bf16.msra.mxu2 %v5671_v16  ;;  %v6585_v47 = vld [vmem:[%s9123_s4 + $0x324] sm:$0xf]  ;;  %v5899_v55 = vor.u32 %v6588_v14, %v5898_v18  ;;  %v6494_v18 = vld [vmem:[%s9123_s4 + $0x4c] sm:$0xf]  ;;  %v5532_v14 = vld [vmem:[%s9123_s4 + $0x58] sm:$0xf0] }
 0x502   :  { %v5895_v0 = vor.u32 %v6585_v47, %v5892_v21  ;;  %v5818_v47 = vld [vmem:[%s9123_s4 + $0x288] sm:$0xf]  ;;  %v6568_v21 = vld [vmem:[%s9123_s4 + $0x294] sm:$0xf0] }
 0x505   :  { %3826 = vmatpush.bf16.msra.mxu0 %v5907_v62  ;;  %3852 = vmatpush.bf16.msra.mxu2 %v5655_v63  ;;  %v6517_v62 = vld [vmem:[%s9123_s4 + $0x104] sm:$0xf]  ;;  %v5979_v63 = vor.u32 %v6608_v30, %v5978_v42  ;;  %v6556_v42 = vld [vmem:[%s9123_s4 + $0x234] sm:$0xf0] }
 0x506   :  { %v5623_v40 = vor.u32 %v6517_v62, %v5620_v4  ;;  %v6600_v62 = vld [vmem:[%s9123_s4 + $0x394] sm:$0xf0]  ;;  %v5547_v4 = vor.u32 %v6500_v6, %v5546_v48  ;;  %v6546_v6 = vld [vmem:[%s9123_s4 + $0x1ec] sm:$0xf] }
 0x507   :  { %v6584_v48 = vld [vmem:[%s9123_s4 + $0x314] sm:$0xf0] }
 0x509   :  { %3827 = vmatpush.bf16.msra.mxu0 %v5891_v31  ;;  %3853 = vmatpush.bf16.msra.mxu2 %v5639_v28  ;;  %v6549_v31 = vld [vmem:[%s9123_s4 + $0x204] sm:$0xf]  ;;  %v5690_v28 = vld [vmem:[%s9123_s4 + $0x188] sm:$0xf] }
 0x50a   :  { %v5751_v36 = vor.u32 %v6549_v31, %v5748_v58  ;;  %v5530_v31 = vld [vmem:[%s9123_s4 + $0x48] sm:$0xf]  ;;  %v6496_v58 = vld [vmem:[%s9123_s4 + $0x54] sm:$0xf0] }
 0x50b   :  { %v5531_v41 = vor.u32 %v6496_v58, %v5530_v31 }
 0x50c   :  { %3867 = vmatpush.bf16.msra.mxu3 %v5751_v36 }
 0x50d   :  { %3828 = vmatpush.bf16.msra.mxu0 %v5875_v35  ;;  %v5879_v35 = vor.u32 %v6581_v34, %v5876_v38  ;;  %3854 = vmatpush.bf16.msra.mxu2 %v5623_v40  ;;  %v5691_v40 = vor.u32 %v6536_v29, %v5690_v28  ;;  %v5819_v34 = vor.u32 %v6568_v21, %v5818_v47  ;;  %v5674_v38 = vld [vmem:[%s9123_s4 + $0x168] sm:$0xf]  ;;  %v5868_v29 = vld [vmem:[%s9123_s4 + $0x2f8] sm:$0xf0]  ;;  %v6610_v47 = vld [vmem:[%s9123_s4 + $0x3ec] sm:$0xf] }
 0x50e   :  { %v5996_v21 = vld [vmem:[%s9123_s4 + $0x3f8] sm:$0xf0] }
 0x511   :  { %3873 = vmatpush.bf16.msrb.mxu0 %v5991_v10 }
 0x515   :  { %3874 = vmatpush.bf16.msrb.mxu0 %v5975_v5 }
 0x519   :  { %3875 = vmatpush.bf16.msrb.mxu0 %v5959_v37 }
 0x51d   :  { %3876 = vmatpush.bf16.msrb.mxu0 %v5943_v43  ;;  %v6508_v43 = vld [vmem:[%s9123_s4 + $0xb4] sm:$0xf0] }
 0x51e   :  { %v5579_v57 = vor.u32 %v6508_v43, %v5578_v44  ;;  %v5498_v44 = vld [vmem:[%s9123_s4 + $0x8] sm:$0xf]  ;;  %v6488_v43 = vld [vmem:[%s9123_s4 + $0x14] sm:$0xf0] }
 0x51f   :  { %v5499_v30 = vor.u32 %v6488_v43, %v5498_v44  ;;  %v6498_v44 = vld [vmem:[%s9123_s4 + $0x6c] sm:$0xf]  ;;  %v5548_v43 = vld [vmem:[%s9123_s4 + $0x78] sm:$0xf0] }
 0x521   :  { %3877 = vmatpush.bf16.msrb.mxu0 %v5927_v11  ;;  %v6576_v11 = vld [vmem:[%s9123_s4 + $0x2d4] sm:$0xf0] }
 0x522   :  { %v5851_v12 = vor.u32 %v6576_v11, %v5850_v7  ;;  %v5770_v11 = vld [vmem:[%s9123_s4 + $0x228] sm:$0xf] }
 0x523   :  { %v5771_v27 = vor.u32 %v6556_v42, %v5770_v11  ;;  %v5820_v11 = vld [vmem:[%s9123_s4 + $0x298] sm:$0xf0]  ;;  %v6598_v42 = vld [vmem:[%s9123_s4 + $0x38c] sm:$0xf] }
 0x525   :  { %3878 = vmatpush.bf16.msrb.mxu0 %v5911_v8  ;;  %v6572_v8 = vld [vmem:[%s9123_s4 + $0x2b4] sm:$0xf0] }
 0x526   :  { %v5835_v22 = vor.u32 %v6572_v8, %v5834_v53  ;;  %v5626_v53 = vld [vmem:[%s9123_s4 + $0x108] sm:$0xf] }
 0x527   :  { %v5754_v8 = vld [vmem:[%s9123_s4 + $0x208] sm:$0xf] }
 0x529   :  { %3879 = vmatpush.bf16.msrb.mxu0 %v5895_v0  ;;  %v5946_v0 = vld [vmem:[%s9123_s4 + $0x388] sm:$0xf] }
 0x52a   :  { %v5947_v36 = vor.u32 %v6600_v62, %v5946_v0  ;;  %v5755_v62 = vor.u32 %v6552_v54, %v5754_v8  ;;  %v5804_v8 = vld [vmem:[%s9123_s4 + $0x278] sm:$0xf0] }
 0x52b   :  { %v5932_v54 = vld [vmem:[%s9123_s4 + $0x378] sm:$0xf0] }
 0x52d   :  { %3880 = vmatpush.bf16.msrb.mxu0 %v5879_v35  ;;  %v6532_v35 = vld [vmem:[%s9123_s4 + $0x174] sm:$0xf0] }
 0x52e   :  { %v5675_v39 = vor.u32 %v6532_v35, %v5674_v38  ;;  %v6542_v38 = vld [vmem:[%s9123_s4 + $0x1cc] sm:$0xf]  ;;  %v5724_v35 = vld [vmem:[%s9123_s4 + $0x1d8] sm:$0xf0] }
 0x56d   :  { %v2998_v10 = vpop.f32.mrf.mxu0 }
 0x575   :  { %v3000_v5 = vpop.f32.mrf.mxu0 }
 0x576   :  { %v3003_v60 = vmax.f32 %v2998_v10, %v3000_v5  ;;  %v5802_v10 = vld [vmem:[%s9123_s4 + $0x268] sm:$0xf] }
 0x577   :  { %v5930_v5 = vld [vmem:[%s9123_s4 + $0x368] sm:$0xf]  ;;  %v5803_v17 = vor.u32 %v6564_v15, %v5802_v10  ;;  %v6574_v10 = vld [vmem:[%s9123_s4 + $0x2cc] sm:$0xf] }
 0x578   :  { %v8306_v37 = vpack.c.bf16 %v3003_v60, %v3003_v60  ;;  %v6596_v60 = vld [vmem:[%s9123_s4 + $0x374] sm:$0xf0] }
 0x579   :  { %v5931_v46 = vor.u32 %v6596_v60, %v5930_v5  ;;  %v6606_v5 = vld [vmem:[%s9123_s4 + $0x3cc] sm:$0xf]  ;;  %v5980_v60 = vld [vmem:[%s9123_s4 + $0x3d8] sm:$0xf0] }
 0x57a   :  { %v3006_v2 = vunpack.c.l.b16 %v8306_v37  ;;  %3790 = vmatmul.bf16.vlgmr.msrb.gmra.mxu1 %v8306_v37 }
 0x57b   :  { %3886 = vmatpush.bf16.msrb.mxu1 %v5611_v3  ;;  %v5514_v3 = vld [vmem:[%s9123_s4 + $0x28] sm:$0xf] }
 0x57c   :  { %v3007_v61 = vpack.c.b16 %v3006_v2, %v3006_v2  ;;  %v5658_v2 = vld [vmem:[%s9123_s4 + $0x148] sm:$0xf]  ;;  %v5515_v50 = vor.u32 %v6492_v32, %v5514_v3  ;;  %v6502_v3 = vld [vmem:[%s9123_s4 + $0x8c] sm:$0xf]  ;;  %v5564_v32 = vld [vmem:[%s9123_s4 + $0x98] sm:$0xf0] }
 0x57e   :  { %v8346_v16 = vrot.slane %v3007_v61, 1  ;;  %v8348_v26 = vrot.slane %v3007_v61, 2  ;;  %v8350_v20 = vrot.slane %v3007_v61, 3  ;;  %v6592_v61 = vld [vmem:[%s9123_s4 + $0x354] sm:$0xf0] }
 0x57f   :  { %3887 = vmatpush.bf16.msrb.mxu1 %v5595_v49  ;;  %v6560_v49 = vld [vmem:[%s9123_s4 + $0x254] sm:$0xf0]  ;;  %v5915_v7 = vor.u32 %v6592_v61, %v5914_v56  ;;  %v6602_v56 = vld [vmem:[%s9123_s4 + $0x3ac] sm:$0xf]  ;;  %v5964_v61 = vld [vmem:[%s9123_s4 + $0x3b8] sm:$0xf0] }
 0x580   :  { %3803 = vmatmul.bf16.vlgmr.msrb.gmra.mxu2 %v8346_v16  ;;  %3816 = vmatmul.bf16.vlgmr.msrb.gmra.mxu3 %v8348_v26 }
 0x581   :  { %3829 = vmatmul.bf16.vlgmr.msra.gmra.mxu0 %v8350_v20  ;;  %3899 = vmatpush.bf16.msrb.mxu2 %v5739_v33  ;;  %v5659_v33 = vor.u32 %v6528_v45, %v5658_v2  ;;  %v5983_v2 = vor.u32 %v6606_v5, %v5980_v60  ;;  %v5708_v45 = vld [vmem:[%s9123_s4 + $0x1b8] sm:$0xf0] }
 0x582   :  { %3912 = vmatpush.bf16.msrb.mxu3 %v5867_v13  ;;  %3925 = vmatpush.bf16.msra.mxu0 %v5995_v24  ;;  %v5787_v13 = vor.u32 %v6560_v49, %v5786_v23  ;;  %v5642_v24 = vld [vmem:[%s9123_s4 + $0x128] sm:$0xf]  ;;  %v6570_v23 = vld [vmem:[%s9123_s4 + $0x2ac] sm:$0xf]  ;;  %v5567_v49 = vor.u32 %v6502_v3, %v5564_v32  ;;  %v5772_v60 = vld [vmem:[%s9123_s4 + $0x238] sm:$0xf0] }
 0x583   :  { %3888 = vmatpush.bf16.msrb.mxu1 %v5579_v57  ;;  %v6524_v57 = vld [vmem:[%s9123_s4 + $0x134] sm:$0xf0]  ;;  %v6586_v3 = vld [vmem:[%s9123_s4 + $0x32c] sm:$0xf]  ;;  %v5900_v32 = vld [vmem:[%s9123_s4 + $0x338] sm:$0xf0] }
 0x584   :  { %v5643_v52 = vor.u32 %v6524_v57, %v5642_v24  ;;  %v5692_v24 = vld [vmem:[%s9123_s4 + $0x198] sm:$0xf0]  ;;  %v5551_v57 = vor.u32 %v6498_v44, %v5548_v43  ;;  %v6582_v44 = vld [vmem:[%s9123_s4 + $0x30c] sm:$0xf] }
 0x585   :  { %3900 = vmatpush.bf16.msrb.mxu2 %v5723_v25  ;;  %v5615_v25 = vor.u32 %v6514_v51, %v5612_v9  ;;  %v5967_v51 = vor.u32 %v6602_v56, %v5964_v61  ;;  %v6534_v9 = vld [vmem:[%s9123_s4 + $0x18c] sm:$0xf]  ;;  %v5756_v61 = vld [vmem:[%s9123_s4 + $0x218] sm:$0xf0] }
 0x586   :  { %3913 = vmatpush.bf16.msrb.mxu3 %v5851_v12  ;;  %3926 = vmatpush.bf16.msra.mxu0 %v5979_v63  ;;  %v6510_v12 = vld [vmem:[%s9123_s4 + $0xcc] sm:$0xf]  ;;  %v5596_v63 = vld [vmem:[%s9123_s4 + $0xd8] sm:$0xf0] }
 0x587   :  { %3889 = vmatpush.bf16.msrb.mxu1 %v5563_v19  ;;  %v6520_v19 = vld [vmem:[%s9123_s4 + $0x114] sm:$0xf0]  ;;  %v5599_v28 = vor.u32 %v6510_v12, %v5596_v63  ;;  %v6550_v56 = vld [vmem:[%s9123_s4 + $0x20c] sm:$0xf]  ;;  %v5884_v43 = vld [vmem:[%s9123_s4 + $0x318] sm:$0xf0] }
 0x588   :  { %v5627_v0 = vor.u32 %v6520_v19, %v5626_v53  ;;  %v6562_v53 = vld [vmem:[%s9123_s4 + $0x26c] sm:$0xf]  ;;  %v5535_v19 = vor.u32 %v6494_v18, %v5532_v14  ;;  %v6034_v18 = vld [vmem:[%s9124_s5 + $0x40] sm:$0xf]  ;;  %v6622_v14 = vld [vmem:[%s9124_s5 + $0x44] sm:$0xf0] }
 0x589   :  { %3901 = vmatpush.bf16.msrb.mxu2 %v5707_v59  ;;  %v5882_v59 = vld [vmem:[%s9123_s4 + $0x308] sm:$0xf] }
 0x58a   :  { %3914 = vmatpush.bf16.msrb.mxu3 %v5835_v22  ;;  %3927 = vmatpush.bf16.msra.mxu0 %v5963_v1  ;;  %v5740_v22 = vld [vmem:[%s9123_s4 + $0x1f8] sm:$0xf0]  ;;  %v6578_v1 = vld [vmem:[%s9123_s4 + $0x2ec] sm:$0xf]  ;;  %v5883_v31 = vor.u32 %v6584_v48, %v5882_v59 }
 0x58b   :  { %3842 = vmatmul.bf16.vlgmr.msra.gmra.mxu1 %v8306_v37  ;;  %v5743_v58 = vor.u32 %v6546_v6, %v5740_v22  ;;  %v6490_v59 = vld [vmem:[%s9123_s4 + $0x2c] sm:$0xf]  ;;  %v5516_v48 = vld [vmem:[%s9123_s4 + $0x38] sm:$0xf0]  ;;  %v5807_v22 = vor.u32 %v6562_v53, %v5804_v8  ;;  %v6616_v8 = vld [vmem:[%s9124_s5 + $0x14] sm:$0xf0] }
 0x58c   :  { %3890 = vmatpush.bf16.msrb.mxu1 %v5547_v4  ;;  %v6506_v4 = vld [vmem:[%s9123_s4 + $0xac] sm:$0xf] }
 0x58d   :  { %3902 = vmatpush.bf16.msrb.mxu2 %v5691_v40  ;;  %v5580_v40 = vld [vmem:[%s9123_s4 + $0xb8] sm:$0xf0] }
 0x58e   :  { %3915 = vmatpush.bf16.msrb.mxu3 %v5819_v34  ;;  %3928 = vmatpush.bf16.msra.mxu0 %v5947_v36  ;;  %v5871_v34 = vor.u32 %v6578_v1, %v5868_v29  ;;  %v5999_v36 = vor.u32 %v6610_v47, %v5996_v21  ;;  %v5583_v15 = vor.u32 %v6506_v4, %v5580_v40  ;;  %v5660_v29 = vld [vmem:[%s9123_s4 + $0x158] sm:$0xf0]  ;;  %v6558_v47 = vld [vmem:[%s9123_s4 + $0x24c] sm:$0xf] }
 0x58f   :  { %v5519_v21 = vor.u32 %v6490_v59, %v5516_v48  ;;  %v5916_v4 = vld [vmem:[%s9123_s4 + $0x358] sm:$0xf0]  ;;  %v6486_v40 = vld [vmem:[%s9123_s4 + $0xc] sm:$0xf]  ;;  %v6640_v59 = vld [vmem:[%s9124_s5 + $0xd4] sm:$0xf0] }
 0x590   :  { %3891 = vmatpush.bf16.msrb.mxu1 %v5531_v41  ;;  %3855 = vmatmul.bf16.vlgmr.msra.gmra.mxu2 %v8346_v16  ;;  %v5852_v41 = vld [vmem:[%s9123_s4 + $0x2d8] sm:$0xf0]  ;;  %v6002_v48 = vld [vmem:[%s9124_s5] sm:$0xf] }
 0x591   :  { %3868 = vmatmul.bf16.vlgmr.msra.gmra.mxu3 %v8348_v26  ;;  %3881 = vmatmul.bf16.vlgmr.msrb.gmra.mxu0 %v8350_v20 }
 0x592   :  { %3903 = vmatpush.bf16.msrb.mxu2 %v5675_v39  ;;  %3916 = vmatpush.bf16.msrb.mxu3 %v5803_v17  ;;  %v5727_v39 = vor.u32 %v6542_v38, %v5724_v35  ;;  %v5855_v17 = vor.u32 %v6574_v10, %v5852_v41  ;;  %v6522_v10 = vld [vmem:[%s9123_s4 + $0x12c] sm:$0xf] }
 0x593   :  { %3929 = vmatpush.bf16.msra.mxu0 %v5931_v46  ;;  %v6538_v46 = vld [vmem:[%s9123_s4 + $0x1ac] sm:$0xf] }
 0x594   :  { %3892 = vmatpush.bf16.msrb.mxu1 %v5515_v50  ;;  %v5836_v50 = vld [vmem:[%s9123_s4 + $0x2b8] sm:$0xf0]  ;;  %v6554_v41 = vld [vmem:[%s9123_s4 + $0x22c] sm:$0xf] }
 0x596   :  { %3904 = vmatpush.bf16.msrb.mxu2 %v5659_v33  ;;  %3917 = vmatpush.bf16.msrb.mxu3 %v5787_v13  ;;  %v5711_v33 = vor.u32 %v6538_v46, %v5708_v45  ;;  %v5839_v13 = vor.u32 %v6570_v23, %v5836_v50  ;;  %v6626_v46 = vld [vmem:[%s9124_s5 + $0x64] sm:$0xf0]  ;;  %v5775_v45 = vor.u32 %v6554_v41, %v5772_v60  ;;  %v5628_v50 = vld [vmem:[%s9123_s4 + $0x118] sm:$0xf0]  ;;  %v6178_v60 = vld [vmem:[%s9124_s5 + $0x160] sm:$0xf] }
 0x597   :  { %3930 = vmatpush.bf16.msra.mxu0 %v5915_v7  ;;  %v6566_v7 = vld [vmem:[%s9123_s4 + $0x28c] sm:$0xf]  ;;  %v5903_v23 = vor.u32 %v6586_v3, %v5900_v32  ;;  %v6634_v41 = vld [vmem:[%s9124_s5 + $0xa4] sm:$0xf0]  ;;  %v6623_v32 = vld [vmem:[%s9124_s5 + $0x54] sm:$0xf] }
 0x598   :  { %3893 = vmatpush.bf16.msrb.mxu1 %v5499_v30  ;;  %v5948_v30 = vld [vmem:[%s9123_s4 + $0x398] sm:$0xf0]  ;;  %v5823_v12 = vor.u32 %v6566_v7, %v5820_v11  ;;  %v6624_v7 = vld [vmem:[%s9124_s5 + $0x54] sm:$0xf0]  ;;  %v5887_v11 = vor.u32 %v6582_v44, %v5884_v43  ;;  %v6658_v3 = vld [vmem:[%s9124_s5 + $0x164] sm:$0xf0] }
 0x599   :  { %v5951_v63 = vor.u32 %v6598_v42, %v5948_v30 }
 0x59a   :  { %3905 = vmatpush.bf16.msrb.mxu2 %v5643_v52  ;;  %3918 = vmatpush.bf16.msrb.mxu3 %v5771_v27  ;;  %v6530_v52 = vld [vmem:[%s9123_s4 + $0x16c] sm:$0xf]  ;;  %v5676_v27 = vld [vmem:[%s9123_s4 + $0x178] sm:$0xf0] }
 0x59b   :  { %3931 = vmatpush.bf16.msra.mxu0 %v5899_v55  ;;  %3894 = vmatmul.bf16.vlgmr.msrb.gmra.mxu1 %v8306_v37  ;;  %v6594_v55 = vld [vmem:[%s9123_s4 + $0x36c] sm:$0xf]  ;;  %v5679_v6 = vor.u32 %v6530_v52, %v5676_v27  ;;  %v6642_v27 = vld [vmem:[%s9124_s5 + $0xe4] sm:$0xf0] }
 0x59c   :  { %3938 = vmatpush.bf16.msra.mxu1 %v5615_v25  ;;  %v5695_v25 = vor.u32 %v6534_v9, %v5692_v24  ;;  %v5935_v1 = vor.u32 %v6594_v55, %v5932_v54  ;;  %v6042_v24 = vld [vmem:[%s9124_s5 + $0x50] sm:$0xf] }
 0x59d   :  { %v6043_v30 = vor.u32 %v6624_v7, %v6042_v24  ;;  %v6106_v55 = vld [vmem:[%s9124_s5 + $0xd0] sm:$0xf]  ;;  %v6654_v24 = vld [vmem:[%s9124_s5 + $0x144] sm:$0xf0] }
 0x59e   :  { %3906 = vmatpush.bf16.msrb.mxu2 %v5627_v0  ;;  %3919 = vmatpush.bf16.msrb.mxu3 %v5755_v62  ;;  %v5788_v0 = vld [vmem:[%s9123_s4 + $0x258] sm:$0xf0]  ;;  %v6590_v62 = vld [vmem:[%s9123_s4 + $0x34c] sm:$0xf] }
 0x59f   :  { %3932 = vmatpush.bf16.msra.mxu0 %v5883_v31  ;;  %v5500_v31 = vld [vmem:[%s9123_s4 + $0x18] sm:$0xf0]  ;;  %v5791_v38 = vor.u32 %v6558_v47, %v5788_v0  ;;  %v5919_v35 = vor.u32 %v6590_v62, %v5916_v4  ;;  %v6090_v4 = vld [vmem:[%s9124_s5 + $0xb0] sm:$0xf] }
 0x5a0   :  { %3939 = vmatpush.bf16.msra.mxu1 %v5599_v28  ;;  %v6526_v28 = vld [vmem:[%s9123_s4 + $0x14c] sm:$0xf]  ;;  %v5503_v5 = vor.u32 %v6486_v40, %v5500_v31  ;;  %v6060_v0 = vld [vmem:[%s9124_s5 + $0x78] sm:$0xf0]  ;;  %v6636_v40 = vld [vmem:[%s9124_s5 + $0xb4] sm:$0xf0] }
 0x5a1   :  { %3907 = vmatmul.bf16.vlgmr.msrb.gmra.mxu2 %v8346_v16  ;;  %3920 = vmatmul.bf16.vlgmr.msrb.gmra.mxu3 %v8348_v26  ;;  %v6091_v31 = vor.u32 %v6636_v40, %v6090_v4  ;;  %v6613_v4 = vld [vmem:[%s9124_s5 + $0x4] sm:$0xf] }
 0x5a2   :  { %3951 = vmatpush.bf16.msra.mxu2 %v5743_v58  ;;  %3964 = vmatpush.bf16.msra.mxu3 %v5871_v34  ;;  %v5663_v58 = vor.u32 %v6526_v28, %v5660_v29  ;;  %v6058_v34 = vld [vmem:[%s9124_s5 + $0x70] sm:$0xf]  ;;  %v6638_v28 = vld [vmem:[%s9124_s5 + $0xc4] sm:$0xf0] }
 0x5a3   :  { %3977 = vmatpush.bf16.msrb.mxu0 %v5999_v36  ;;  %v6628_v36 = vld [vmem:[%s9124_s5 + $0x74] sm:$0xf0] }
 0x5a4   :  { %3940 = vmatpush.bf16.msra.mxu1 %v5583_v15  ;;  %3933 = vmatmul.bf16.vlgmr.msra.gmra.mxu0 %v8350_v20  ;;  %v5644_v15 = vld [vmem:[%s9123_s4 + $0x138] sm:$0xf0] }
 0x5a6   :  { %3952 = vmatpush.bf16.msra.mxu2 %v5727_v39  ;;  %3965 = vmatpush.bf16.msra.mxu3 %v5855_v17  ;;  %v6059_v39 = vor.u32 %v6628_v36, %v6058_v34  ;;  %v5647_v17 = vor.u32 %v6522_v10, %v5644_v15  ;;  %v6660_v34 = vld [vmem:[%s9124_s5 + $0x174] sm:$0xf0]  ;;  %v6625_v36 = vld [vmem:[%s9124_s5 + $0x64] sm:$0xf]  ;;  %v6082_v15 = vld [vmem:[%s9124_s5 + $0xa0] sm:$0xf] }
 0x5a7   :  { %3978 = vmatpush.bf16.msrb.mxu0 %v5983_v2  ;;  %v6050_v2 = vld [vmem:[%s9124_s5 + $0x60] sm:$0xf] }
 0x5a8   :  { %3941 = vmatpush.bf16.msra.mxu1 %v5567_v49  ;;  %v6518_v49 = vld [vmem:[%s9123_s4 + $0x10c] sm:$0xf] }
 0x5a9   :  { %v5631_v9 = vor.u32 %v6518_v49, %v5628_v50  ;;  %v6656_v50 = vld [vmem:[%s9124_s5 + $0x154] sm:$0xf0] }
 0x5aa   :  { %3953 = vmatpush.bf16.msra.mxu2 %v5711_v33  ;;  %3966 = vmatpush.bf16.msra.mxu3 %v5839_v13  ;;  %v6051_v33 = vor.u32 %v6626_v46, %v6050_v2  ;;  %v6122_v13 = vld [vmem:[%s9124_s5 + $0xf0] sm:$0xf] }
 0x5ab   :  { %3979 = vmatpush.bf16.msrb.mxu0 %v5967_v51  ;;  %v6644_v51 = vld [vmem:[%s9124_s5 + $0xf4] sm:$0xf0]  ;;  %v6074_v46 = vld [vmem:[%s9124_s5 + $0x90] sm:$0xf] }
 0x5ac   :  { %3942 = vmatpush.bf16.msra.mxu1 %v5551_v57  ;;  %v5759_v57 = vor.u32 %v6550_v56, %v5756_v61  ;;  %v6123_v42 = vor.u32 %v6644_v51, %v6122_v13  ;;  %v6621_v56 = vld [vmem:[%s9124_s5 + $0x44] sm:$0xf]  ;;  %v6036_v61 = vld [vmem:[%s9124_s5 + $0x48] sm:$0xf0]  ;;  %v6630_v13 = vld [vmem:[%s9124_s5 + $0x84] sm:$0xf0] }
 0x5ad   :  { %v6039_v43 = vor.u32 %v6621_v56, %v6036_v61  ;;  %v6162_v51 = vld [vmem:[%s9124_s5 + $0x140] sm:$0xf]  ;;  %v6188_v61 = vld [vmem:[%s9124_s5 + $0x178] sm:$0xf0] }
 0x5ae   :  { %3954 = vmatpush.bf16.msra.mxu2 %v5695_v25  ;;  %3967 = vmatpush.bf16.msra.mxu3 %v5823_v12  ;;  %v6035_v25 = vor.u32 %v6622_v14, %v6034_v18  ;;  %v6620_v12 = vld [vmem:[%s9124_s5 + $0x34] sm:$0xf0]  ;;  %v6163_v7 = vor.u32 %v6654_v24, %v6162_v51  ;;  %v6124_v18 = vld [vmem:[%s9124_s5 + $0xf8] sm:$0xf0]  ;;  %v6242_v51 = vld [vmem:[%s9124_s5 + $0x1e0] sm:$0xf] }
 0x5af   :  { %3980 = vmatpush.bf16.msrb.mxu0 %v5951_v63 }
 0x5b0   :  { %3943 = vmatpush.bf16.msra.mxu1 %v5535_v19  ;;  %v6010_v19 = vld [vmem:[%s9124_s5 + $0x10] sm:$0xf] }
 0x5b1   :  { %v6011_v54 = vor.u32 %v6616_v8, %v6010_v19  ;;  %v8886_v19 = vld [vmem:[%s9129_s10] sm:$0xff] }
 0x5b2   :  { %3955 = vmatpush.bf16.msra.mxu2 %v5679_v6  ;;  %3968 = vmatpush.bf16.msra.mxu3 %v5807_v22  ;;  %v6614_v6 = vld [vmem:[%s9124_s5 + $0x4] sm:$0xf0]  ;;  %v6107_v22 = vor.u32 %v6640_v59, %v6106_v55  ;;  %v6146_v8 = vld [vmem:[%s9124_s5 + $0x120] sm:$0xf]  ;;  %v6615_v59 = vld [vmem:[%s9124_s5 + $0x14] sm:$0xf] }
 0x5b3   :  { %3981 = vmatpush.bf16.msrb.mxu0 %v5935_v1  ;;  %v6098_v1 = vld [vmem:[%s9124_s5 + $0xc0] sm:$0xf]  ;;  %v6003_v29 = vor.u32 %v6614_v6, %v6002_v48  ;;  %v6650_v55 = vld [vmem:[%s9124_s5 + $0x124] sm:$0xf0]  ;;  %v6012_v48 = vld [vmem:[%s9124_s5 + $0x18] sm:$0xf0] }
 0x5b4   :  { %3944 = vmatpush.bf16.msra.mxu1 %v5519_v21  ;;  %v6099_v47 = vor.u32 %v6638_v28, %v6098_v1  ;;  %v6627_v21 = vld [vmem:[%s9124_s5 + $0x74] sm:$0xf]  ;;  %v6015_v1 = vor.u32 %v6615_v59, %v6012_v48  ;;  %v6108_v28 = vld [vmem:[%s9124_s5 + $0xd8] sm:$0xf0] }
 0x5b5   :  { %v6063_v62 = vor.u32 %v6627_v21, %v6060_v0  ;;  %v6639_v6 = vld [vmem:[%s9124_s5 + $0xd4] sm:$0xf]  ;;  %v6138_v0 = vld [vmem:[%s9124_s5 + $0x110] sm:$0xf] }
 0x5b6   :  { %3956 = vmatpush.bf16.msra.mxu2 %v5663_v58  ;;  %3969 = vmatpush.bf16.msra.mxu3 %v5791_v38  ;;  %v6186_v58 = vld [vmem:[%s9124_s5 + $0x170] sm:$0xf]  ;;  %v6111_v21 = vor.u32 %v6639_v6, %v6108_v28  ;;  %v6670_v28 = vld [vmem:[%s9124_s5 + $0x1c4] sm:$0xf0] }
 0x5b7   :  { %3982 = vmatpush.bf16.msrb.mxu0 %v5919_v35  ;;  %v6187_v38 = vor.u32 %v6660_v34, %v6186_v58  ;;  %v6052_v35 = vld [vmem:[%s9124_s5 + $0x68] sm:$0xf0]  ;;  %v6637_v58 = vld [vmem:[%s9124_s5 + $0xc4] sm:$0xf] }
 0x5b8   :  { %3945 = vmatpush.bf16.msra.mxu1 %v5503_v5  ;;  %v6055_v10 = vor.u32 %v6625_v36, %v6052_v35  ;;  %v6083_v5 = vor.u32 %v6634_v41, %v6082_v15  ;;  %v6100_v34 = vld [vmem:[%s9124_s5 + $0xc8] sm:$0xf0]  ;;  %v6130_v35 = vld [vmem:[%s9124_s5 + $0x100] sm:$0xf]  ;;  %v6250_v15 = vld [vmem:[%s9124_s5 + $0x1f0] sm:$0xf] }
 0x5ba   :  { %3957 = vmatpush.bf16.msra.mxu2 %v5647_v17  ;;  %3970 = vmatpush.bf16.msra.mxu3 %v5775_v45  ;;  %v6044_v17 = vld [vmem:[%s9124_s5 + $0x58] sm:$0xf0]  ;;  %v6632_v45 = vld [vmem:[%s9124_s5 + $0x94] sm:$0xf0] }
 0x5bb   :  { %3983 = vmatpush.bf16.msrb.mxu0 %v5903_v23  ;;  %3946 = vmatmul.bf16.vlgmr.msra.gmra.mxu1 %v8306_v37  ;;  %v6026_v37 = vld [vmem:[%s9124_s5 + $0x30] sm:$0xf]  ;;  %v6047_v2 = vor.u32 %v6623_v32, %v6044_v17  ;;  %v6075_v49 = vor.u32 %v6632_v45, %v6074_v46  ;;  %v4007_v32 = vperm.slane %v8886_v19, 1  ;;  %v6092_v46 = vld [vmem:[%s9124_s5 + $0xb8] sm:$0xf0] }
 0x5bc   :  { %4421 = vmatpush.bf16.msrb.mxu1 %v6059_v39  ;;  %v6027_v63 = vor.u32 %v6620_v12, %v6026_v37  ;;  %v6179_v39 = vor.u32 %v6658_v3, %v6178_v60  ;;  %v6170_v23 = vld [vmem:[%s9124_s5 + $0x150] sm:$0xf]  ;;  %v6652_v12 = vld [vmem:[%s9124_s5 + $0x134] sm:$0xf0]  ;;  %v6659_v45 = vld [vmem:[%s9124_s5 + $0x174] sm:$0xf] }
 0x5bd   :  { %v6171_v44 = vor.u32 %v6656_v50, %v6170_v23  ;;  %v6154_v37 = vld [vmem:[%s9124_s5 + $0x130] sm:$0xf]  ;;  %v6676_v60 = vld [vmem:[%s9124_s5 + $0x1f4] sm:$0xf0] }
 0x5be   :  { %3958 = vmatpush.bf16.msra.mxu2 %v5631_v9  ;;  %3971 = vmatpush.bf16.msra.mxu3 %v5759_v57  ;;  %v6619_v57 = vld [vmem:[%s9124_s5 + $0x34] sm:$0xf]  ;;  %v6251_v17 = vor.u32 %v6676_v60, %v6250_v15 }
 0x5bf   :  { %3984 = vmatpush.bf16.msrb.mxu0 %v5887_v11  ;;  %v6028_v11 = vld [vmem:[%s9124_s5 + $0x38] sm:$0xf0] }
 0x5c0   :  { %4422 = vmatpush.bf16.msrb.mxu1 %v6051_v33  ;;  %v6066_v33 = vld [vmem:[%s9124_s5 + $0x80] sm:$0xf] }
 0x5c1   :  { %3959 = vmatmul.bf16.vlgmr.msra.gmra.mxu2 %v8346_v16  ;;  %3972 = vmatmul.bf16.vlgmr.msra.gmra.mxu3 %v8348_v26  ;;  %v6018_v16 = vld [vmem:[%s9124_s5 + $0x20] sm:$0xf]  ;;  %v6618_v26 = vld [vmem:[%s9124_s5 + $0x24] sm:$0xf0]  ;;  %v6067_v9 = vor.u32 %v6630_v13, %v6066_v33  ;;  %v4015_v33 = vperm.slane %v4007_v32, 1 }
 0x5c2   :  { %4434 = vmatpush.bf16.msrb.mxu2 %v6123_v42  ;;  %3985 = vmatmul.bf16.vlgmr.msrb.gmra.mxu0 %v8350_v20  ;;  %v6114_v20 = vld [vmem:[%s9124_s5 + $0xe0] sm:$0xf]  ;;  %v6019_v52 = vor.u32 %v6618_v26, %v6018_v16  ;;  %v6643_v42 = vld [vmem:[%s9124_s5 + $0xf4] sm:$0xf]  ;;  %v6617_v16 = vld [vmem:[%s9124_s5 + $0x24] sm:$0xf] }
 0x5c3   :  { %v6115_v53 = vor.u32 %v6642_v27, %v6114_v20  ;;  %4447 = vmatpush.bf16.msrb.mxu3 %v6187_v38  ;;  %v6020_v26 = vld [vmem:[%s9124_s5 + $0x28] sm:$0xf0]  ;;  %v6641_v20 = vld [vmem:[%s9124_s5 + $0xe4] sm:$0xf]  ;;  %v6103_v38 = vor.u32 %v6637_v58, %v6100_v34  ;;  %4460 = vmatpush.bf16.msra.mxu0 %v6251_v17  ;;  %v6218_v58 = vld [vmem:[%s9124_s5 + $0x1b0] sm:$0xf] }
 0x5c4   :  { %4423 = vmatpush.bf16.msrb.mxu1 %v6043_v30  ;;  %v6031_v30 = vor.u32 %v6619_v57, %v6028_v11  ;;  %v6116_v27 = vld [vmem:[%s9124_s5 + $0xe8] sm:$0xf0]  ;;  %v6668_v34 = vld [vmem:[%s9124_s5 + $0x1b4] sm:$0xf0]  ;;  %v6666_v17 = vld [vmem:[%s9124_s5 + $0x1a4] sm:$0xf0] }
 0x5c5   :  { %v6084_v57 = vld [vmem:[%s9124_s5 + $0xa8] sm:$0xf0] }
 0x5c6   :  { %4435 = vmatpush.bf16.msrb.mxu2 %v6115_v53  ;;  %v6119_v53 = vor.u32 %v6641_v20, %v6116_v27  ;;  %v6631_v20 = vld [vmem:[%s9124_s5 + $0x94] sm:$0xf] }
 0x5c7   :  { %4448 = vmatpush.bf16.msrb.mxu3 %v6179_v39 }
 0x5c8   :  { %4424 = vmatpush.bf16.msrb.mxu1 %v6035_v25  ;;  %v6127_v25 = vor.u32 %v6643_v42, %v6124_v18  ;;  %v6180_v18 = vld [vmem:[%s9124_s5 + $0x168] sm:$0xf0] }
 0x5ca   :  { %4436 = vmatpush.bf16.msrb.mxu2 %v6107_v22 }
 0x5cb   :  { %4449 = vmatpush.bf16.msrb.mxu3 %v6171_v44  ;;  %v6191_v44 = vor.u32 %v6659_v45, %v6188_v61  ;;  %v6148_v45 = vld [vmem:[%s9124_s5 + $0x128] sm:$0xf0] }
 0x5cc   :  { %4425 = vmatpush.bf16.msrb.mxu1 %v6027_v63  ;;  %v6155_v63 = vor.u32 %v6652_v12, %v6154_v37 }
 0x5ce   :  { %4437 = vmatpush.bf16.msrb.mxu2 %v6099_v47  ;;  %v3991_v47 = vperm.slane %v8886_v19, 0 }
 0x5cf   :  { %4450 = vmatpush.bf16.msrb.mxu3 %v6163_v7  ;;  %v6633_v7 = vld [vmem:[%s9124_s5 + $0xa4] sm:$0xf] }
 0x5d0   :  { %4426 = vmatpush.bf16.msrb.mxu1 %v6019_v52  ;;  %v6023_v52 = vor.u32 %v6617_v16, %v6020_v26  ;;  %v6087_v42 = vor.u32 %v6633_v7, %v6084_v57  ;;  %v6672_v16 = vld [vmem:[%s9124_s5 + $0x1d4] sm:$0xf0]  ;;  %v6140_v7 = vld [vmem:[%s9124_s5 + $0x118] sm:$0xf0] }
 0x5d2   :  { %4438 = vmatpush.bf16.msrb.mxu2 %v6091_v31  ;;  %v6004_v31 = vld [vmem:[%s9124_s5 + $0x8] sm:$0xf0] }
 0x5d3   :  { %4451 = vmatpush.bf16.msrb.mxu3 %v6155_v63  ;;  %v6007_v36 = vor.u32 %v6613_v4, %v6004_v31  ;;  %v6234_v63 = vld [vmem:[%s9124_s5 + $0x1d0] sm:$0xf]  ;;  %v6164_v4 = vld [vmem:[%s9124_s5 + $0x148] sm:$0xf0] }
 0x5d4   :  { %4427 = vmatpush.bf16.msrb.mxu1 %v6011_v54  ;;  %v6147_v54 = vor.u32 %v6650_v55, %v6146_v8  ;;  %v6235_v26 = vor.u32 %v6672_v16, %v6234_v63  ;;  %v6655_v55 = vld [vmem:[%s9124_s5 + $0x154] sm:$0xf]  ;;  %v6132_v63 = vld [vmem:[%s9124_s5 + $0x108] sm:$0xf0] }
 0x5d5   :  { %v6675_v16 = vld [vmem:[%s9124_s5 + $0x1f4] sm:$0xf] }
 0x5d6   :  { %4439 = vmatpush.bf16.msrb.mxu2 %v6083_v5 }
 0x5d7   :  { %4452 = vmatpush.bf16.msrb.mxu3 %v6147_v54  ;;  %v6172_v54 = vld [vmem:[%s9124_s5 + $0x158] sm:$0xf0] }
 0x5d8   :  { %4428 = vmatpush.bf16.msrb.mxu1 %v6003_v29  ;;  %v6175_v59 = vor.u32 %v6655_v55, %v6172_v54  ;;  %v4009_v54 = vperm.slane %v8886_v19, 5 }
 0x5da   :  { %4440 = vmatpush.bf16.msrb.mxu2 %v6075_v49  ;;  %v3999_v49 = vperm.slane %v3991_v47, 0  ;;  %v6629_v47 = vld [vmem:[%s9124_s5 + $0x84] sm:$0xf] }
 0x5dc   :  { %4473 = vmatpush.bf16.msra.mxu1 %v6063_v62  ;;  %v6648_v62 = vld [vmem:[%s9124_s5 + $0x114] sm:$0xf0] }
 0x5dd   :  { %v6139_v40 = vor.u32 %v6648_v62, %v6138_v0  ;;  %v6653_v0 = vld [vmem:[%s9124_s5 + $0x144] sm:$0xf] }
 0x5de   :  { %4441 = vmatpush.bf16.msrb.mxu2 %v6067_v9  ;;  %v6674_v9 = vld [vmem:[%s9124_s5 + $0x1e4] sm:$0xf0]  ;;  %v6167_v31 = vor.u32 %v6653_v0, %v6164_v4  ;;  %v6236_v0 = vld [vmem:[%s9124_s5 + $0x1d8] sm:$0xf0] }
 0x5df   :  { %4453 = vmatpush.bf16.msrb.mxu3 %v6139_v40  ;;  %v6243_v24 = vor.u32 %v6674_v9, %v6242_v51  ;;  %v6664_v51 = vld [vmem:[%s9124_s5 + $0x194] sm:$0xf0] }
 0x5e0   :  { %4474 = vmatpush.bf16.msra.mxu1 %v6055_v10  ;;  %v6646_v10 = vld [vmem:[%s9124_s5 + $0x104] sm:$0xf0] }
 0x5e1   :  { %v6131_v39 = vor.u32 %v6646_v10, %v6130_v35  ;;  %4461 = vmatpush.bf16.msra.mxu0 %v6243_v24  ;;  %v4008_v35 = vperm.slane %v8886_v19, 3  ;;  %v6219_v10 = vor.u32 %v6668_v34, %v6218_v58  ;;  %v6647_v24 = vld [vmem:[%s9124_s5 + $0x114] sm:$0xf]  ;;  %v6669_v34 = vld [vmem:[%s9124_s5 + $0x1c4] sm:$0xf] }
 0x5e2   :  { %4486 = vmatpush.bf16.msra.mxu2 %v6127_v25 }
 0x5e3   :  { %4454 = vmatpush.bf16.msrb.mxu3 %v6131_v39  ;;  %v6210_v39 = vld [vmem:[%s9124_s5 + $0x1a0] sm:$0xf] }
 0x5e4   :  { %4475 = vmatpush.bf16.msra.mxu1 %v6047_v2  ;;  %v6635_v2 = vld [vmem:[%s9124_s5 + $0xb4] sm:$0xf] }
 0x5e5   :  { %v6095_v56 = vor.u32 %v6635_v2, %v6092_v46  ;;  %4462 = vmatpush.bf16.msra.mxu0 %v6235_v26  ;;  %v6649_v2 = vld [vmem:[%s9124_s5 + $0x124] sm:$0xf]  ;;  %v6211_v46 = vor.u32 %v6666_v17, %v6210_v39  ;;  %v6663_v17 = vld [vmem:[%s9124_s5 + $0x194] sm:$0xf] }
 0x5e6   :  { %4487 = vmatpush.bf16.msra.mxu2 %v6119_v53 }
 0x5e7   :  { %4499 = vmatpush.bf16.msra.mxu3 %v6191_v44 }
 0x5e8   :  { %4476 = vmatpush.bf16.msra.mxu1 %v6039_v43 }
 0x5ea   :  { %4488 = vmatpush.bf16.msra.mxu2 %v6111_v21  ;;  %v6068_v21 = vld [vmem:[%s9124_s5 + $0x88] sm:$0xf0] }
 0x5eb   :  { %v6071_v62 = vor.u32 %v6629_v47, %v6068_v21  ;;  %v4017_v47 = vperm.slane %v4009_v54, 1  ;;  %v6671_v21 = vld [vmem:[%s9124_s5 + $0x1d4] sm:$0xf] }
 0x5ec   :  { %4477 = vmatpush.bf16.msra.mxu1 %v6031_v30  ;;  %v6657_v30 = vld [vmem:[%s9124_s5 + $0x164] sm:$0xf] }
 0x5ed   :  { %v6183_v37 = vor.u32 %v6657_v30, %v6180_v18  ;;  %v6662_v30 = vld [vmem:[%s9124_s5 + $0x184] sm:$0xf0] }
 0x5ee   :  { %4489 = vmatpush.bf16.msra.mxu2 %v6103_v38 }
 0x5ef   :  { %4500 = vmatpush.bf16.msra.mxu3 %v6183_v37 }
 0x5f0   :  { %4478 = vmatpush.bf16.msra.mxu1 %v6023_v52  ;;  %v6076_v52 = vld [vmem:[%s9124_s5 + $0x98] sm:$0xf0] }
 0x5f1   :  { %v6079_v8 = vor.u32 %v6631_v20, %v6076_v52  ;;  %v6252_v20 = vld [vmem:[%s9124_s5 + $0x1f8] sm:$0xf0]  ;;  %v3993_v52 = vperm.slane %v8886_v19, 4 }
 0x5f2   :  { %4490 = vmatpush.bf16.msra.mxu2 %v6095_v56  ;;  %v6151_v56 = vor.u32 %v6649_v2, %v6148_v45  ;;  %v6204_v2 = vld [vmem:[%s9124_s5 + $0x198] sm:$0xf0]  ;;  %v6661_v45 = vld [vmem:[%s9124_s5 + $0x184] sm:$0xf] }
 0x5f3   :  { %4501 = vmatpush.bf16.msra.mxu3 %v6175_v59  ;;  %v6673_v59 = vld [vmem:[%s9124_s5 + $0x1e4] sm:$0xf] }
 0x5f4   :  { %4479 = vmatpush.bf16.msra.mxu1 %v6015_v1  ;;  %v6226_v1 = vld [vmem:[%s9124_s5 + $0x1c0] sm:$0xf] }
 0x5f6   :  { %4491 = vmatpush.bf16.msra.mxu2 %v6087_v42  ;;  %v6194_v42 = vld [vmem:[%s9124_s5 + $0x180] sm:$0xf] }
 0x5f7   :  { %v3791_v14 = vpop.f32.mrf.mxu1  ;;  %4502 = vmatpush.bf16.msra.mxu3 %v6167_v31 }
 0x5f8   :  { %4480 = vmatpush.bf16.msra.mxu1 %v6007_v36 }
 0x5fa   :  { %4492 = vmatpush.bf16.msra.mxu2 %v6079_v8 }
 0x5fe   :  { %v3830_v22 = vpop.f32.mrf.mxu0  ;;  %4493 = vmatpush.bf16.msra.mxu2 %v6071_v62  ;;  %v6239_v62 = vor.u32 %v6671_v21, %v6236_v0 }
 0x5ff   :  { %v3793_v29 = vpop.f32.mrf.mxu1 }
 0x600   :  { %v6227_v29 = vor.u32 %v6670_v28, %v6226_v1  ;;  %v4001_v1 = vperm.slane %v3993_v52, 0 }
 0x602   :  { %4463 = vmatpush.bf16.msra.mxu0 %v6227_v29 }
 0x603   :  { %v3804_v41 = vpop.f32.mrf.mxu2  ;;  %v3817_v5 = vpop.f32.mrf.mxu3 }
 0x604   :  { %v3805_v3 = vadd.f32 %v3804_v41, %v3791_v14  ;;  %v6651_v41 = vld [vmem:[%s9124_s5 + $0x134] sm:$0xf] }
 0x606   :  { %v3818_v23 = vadd.f32 %v3817_v5, %v3805_v3  ;;  %v3832_v50 = vpop.f32.mrf.mxu0  ;;  %v6156_v5 = vld [vmem:[%s9124_s5 + $0x138] sm:$0xf0]  ;;  %4464 = vmatpush.bf16.msra.mxu0 %v6219_v10  ;;  %v6667_v10 = vld [vmem:[%s9124_s5 + $0x1b4] sm:$0xf] }
 0x607   :  { %v6159_v32 = vor.u32 %v6651_v41, %v6156_v5 }
 0x608   :  { %v3831_v43 = vadd.f32 %v3830_v22, %v3818_v23  ;;  %v3843_v13 = vpop.f32.mrf.mxu1  ;;  %v3992_v22 = vperm.slane %v8886_v19, 2 }
 0x609   :  { %4503 = vmatpush.bf16.msra.mxu3 %v6159_v32 }
 0x60a   :  { %v4003_v11 = vmul.f32 %v3999_v49, %v3831_v43  ;;  %v4000_v15 = vperm.slane %v3992_v22, 0  ;;  %v4016_v49 = vperm.slane %v4008_v35, 1  ;;  %4465 = vmatpush.bf16.msra.mxu0 %v6211_v46  ;;  %v6207_v46 = vor.u32 %v6663_v17, %v6204_v2 }
 0x60b   :  { %v3806_v14 = vpop.f32.mrf.mxu2  ;;  %v3819_v25 = vpop.f32.mrf.mxu3 }
 0x60c   :  { %v4019_v12 = vadd.f32 %v4015_v33, %v4003_v11  ;;  %v6143_v11 = vor.u32 %v6647_v24, %v6140_v7  ;;  %v6195_v14 = vor.u32 %v6662_v30, %v6194_v42 }
 0x60d   :  { %4504 = vmatpush.bf16.msra.mxu3 %v6151_v56 }
 0x60e   :  { %v4023_v27 = vmax.f32 %v4019_v12, 0.0  ;;  %v3882_v53 = vpop.f32.mrf.mxu0  ;;  %v6645_v12 = vld [vmem:[%s9124_s5 + $0x104] sm:$0xf] }
 0x60f   :  { %v6135_v26 = vor.u32 %v6645_v12, %v6132_v63 }
 0x610   :  { %v8986_v48 = vpack.c.bf16 %v4023_v27, %v4023_v27  ;;  %v3845_v6 = vpop.f32.mrf.mxu1  ;;  %v6255_v27 = vor.u32 %v6675_v16, %v6252_v20 }
 0x611   :  { %4505 = vmatpush.bf16.msra.mxu3 %v6143_v11 }
 0x612   :  { %4429 = vmatmul.bf16.vlgmr.msrb.gmra.mxu1 %v8986_v48 }
 0x613   :  { %v3856_v40 = vpop.f32.mrf.mxu2 }
 0x614   :  { %v3857_v36 = vadd.f32 %v3856_v40, %v3843_v13  ;;  %v3869_v38 = vpop.f32.mrf.mxu3  ;;  %v6202_v13 = vld [vmem:[%s9124_s5 + $0x190] sm:$0xf] }
 0x615   :  { %v6203_v9 = vor.u32 %v6664_v51, %v6202_v13  ;;  %4506 = vmatpush.bf16.msra.mxu3 %v6135_v26  ;;  %v4010_v13 = vperm.slane %v8886_v19, 7 }
 0x616   :  { %v3870_v60 = vadd.f32 %v3869_v38, %v3857_v36  ;;  %v3884_v3 = vpop.f32.mrf.mxu0  ;;  %v6228_v36 = vld [vmem:[%s9124_s5 + $0x1c8] sm:$0xf0] }
 0x617   :  { %4466 = vmatpush.bf16.msra.mxu0 %v6203_v9  ;;  %v6231_v38 = vor.u32 %v6669_v34, %v6228_v36  ;;  %v6212_v3 = vld [vmem:[%s9124_s5 + $0x1a8] sm:$0xf0] }
 0x618   :  { %v3883_v23 = vadd.f32 %v3882_v53, %v3870_v60  ;;  %v3895_v50 = vpop.f32.mrf.mxu1  ;;  %v6665_v60 = vld [vmem:[%s9124_s5 + $0x1a4] sm:$0xf] }
 0x619   :  { %v6215_v32 = vor.u32 %v6665_v60, %v6212_v3 }
 0x61a   :  { %v4004_v61 = vmul.f32 %v4000_v15, %v3883_v23  ;;  %v6220_v15 = vld [vmem:[%s9124_s5 + $0x1b8] sm:$0xf0]  ;;  %v6196_v23 = vld [vmem:[%s9124_s5 + $0x188] sm:$0xf0] }
 0x61b   :  { %v3858_v44 = vpop.f32.mrf.mxu2  ;;  %4467 = vmatpush.bf16.msra.mxu0 %v6195_v14  ;;  %v6223_v5 = vor.u32 %v6667_v10, %v6220_v15 }
 0x61c   :  { %v4020_v43 = vadd.f32 %v4016_v49, %v4004_v61  ;;  %v3871_v33 = vpop.f32.mrf.mxu3  ;;  %v3994_v61 = vperm.slane %v8886_v19, 6 }
 0x61e   :  { %v4024_v57 = vmax.f32 %v4020_v43, 0.0  ;;  %v4002_v9 = vperm.slane %v3994_v61, 0 }
 0x61f   :  { %4512 = vmatpush.bf16.msrb.mxu0 %v6255_v27 }
 0x620   :  { %v4028_v25 = vpack.c.bf16 %v4024_v57, %v4024_v57  ;;  %v3897_v37 = vpop.f32.mrf.mxu1  ;;  %v4018_v57 = vperm.slane %v4010_v13, 1 }
 0x621   :  { %v3934_v18 = vpop.f32.mrf.mxu0 }
 0x622   :  { %4442 = vmatmul.bf16.vlgmr.msrb.gmra.mxu2 %v4028_v25  ;;  %4481 = vmatmul.bf16.vlgmr.msra.gmra.mxu1 %v8986_v48  ;;  %v6244_v48 = vld [vmem:[%s9124_s5 + $0x1e8] sm:$0xf0] }
 0x623   :  { %v6247_v6 = vor.u32 %v6673_v59, %v6244_v48 }
 0x624   :  { %v3908_v53 = vpop.f32.mrf.mxu2  ;;  %v3921_v55 = vpop.f32.mrf.mxu3 }
 0x625   :  { %v3909_v8 = vadd.f32 %v3908_v53, %v3895_v50  ;;  %4513 = vmatpush.bf16.msrb.mxu0 %v6247_v6  ;;  %v6199_v50 = vor.u32 %v6661_v45, %v6196_v23 }
 0x627   :  { %v3922_v22 = vadd.f32 %v3921_v55, %v3909_v8  ;;  %v4095_v8 = vld [vmem:[%s9130_s11] sm:$0x3]  ;;  %s6735_s11 = smov [#allocation4]  }
 0x628   :  { %v4097_v55 = vperm.slane %v4095_v8, 0  ;;  %s4543_s20 = sshll.u32 %s6735_s11, 4  ;;  %s4544_s20 = int_to_ptr.vmem [resolvable:$true] %s4543_s20 }
 0x629   :  { %v3936_v28 = vpop.f32.mrf.mxu0  ;;  %v3935_v29 = vadd.f32 %v3934_v18, %v3922_v22  ;;  %4514 = vmatpush.bf16.msrb.mxu0 %v6239_v62 }
 0x62b   :  { %v4005_v4 = vmul.f32 %v4001_v1, %v3935_v29  ;;  %v4098_v29 = vperm.slane %v4095_v8, 1 }
 0x62c   :  { %v3910_v40 = vpop.f32.mrf.mxu2  ;;  %v3923_v58 = vpop.f32.mrf.mxu3 }
 0x62d   :  { %v4021_v31 = vadd.f32 %v4017_v47, %v4005_v4  ;;  %4515 = vmatpush.bf16.msrb.mxu0 %v6231_v38 }
 0x62f   :  { %v4025_v35 = vmax.f32 %v4021_v31, 0.0 }
 0x631   :  { %v4029_v41 = vpack.c.bf16 %v4025_v35, %v4025_v35  ;;  %4516 = vmatpush.bf16.msrb.mxu0 %v6223_v5 }
 0x632   :  { %4494 = vmatmul.bf16.vlgmr.msra.gmra.mxu2 %v4028_v25 }
 0x633   :  { %4455 = vmatmul.bf16.vlgmr.msrb.gmra.mxu3 %v4029_v41 }
 0x635   :  { %4517 = vmatpush.bf16.msrb.mxu0 %v6215_v32 }
 0x638   :  { %v3947_v39 = vpop.f32.mrf.mxu1 }
 0x639   :  { %4518 = vmatpush.bf16.msrb.mxu0 %v6207_v46 }
 0x63d   :  { %4519 = vmatpush.bf16.msrb.mxu0 %v6199_v50 }
 0x63f   :  { %v3986_v49 = vpop.f32.mrf.mxu0 }
 0x640   :  { %v3949_v56 = vpop.f32.mrf.mxu1 }
 0x643   :  { %4507 = vmatmul.bf16.vlgmr.msra.gmra.mxu3 %v4029_v41 }
 0x644   :  { %v3960_v44 = vpop.f32.mrf.mxu2  ;;  %v3973_v33 = vpop.f32.mrf.mxu3 }
 0x645   :  { %v3961_v43 = vadd.f32 %v3960_v44, %v3947_v39 }
 0x647   :  { %v3974_v51 = vadd.f32 %v3973_v33, %v3961_v43  ;;  %v3988_v24 = vpop.f32.mrf.mxu0 }
 0x649   :  { %v3987_v7 = vadd.f32 %v3986_v49, %v3974_v51 }
 0x64b   :  { %v4006_v11 = vmul.f32 %v4002_v9, %v3987_v7 }
 0x64c   :  { %v3962_v42 = vpop.f32.mrf.mxu2  ;;  %v3975_v18 = vpop.f32.mrf.mxu3 }
 0x64d   :  { %v4022_v30 = vadd.f32 %v4018_v57, %v4006_v11 }
 0x64f   :  { %v4026_v14 = vmax.f32 %v4022_v30, 0.0 }
 0x651   :  { %v4030_v25 = vpack.c.bf16 %v4026_v14, %v4026_v14 }
 0x653   :  { %4468 = vmatmul.bf16.vlgmr.msra.gmra.mxu0 %v4030_v25 }
 0x663   :  { %4520 = vmatmul.bf16.vlgmr.msrb.gmra.mxu0 %v4030_v25 }
 0x68f   :  { %v4430_v37 = vpop.f32.mrf.mxu1 }
 0x690   :  { %v4431_v59 = vadd.f32 %v4430_v37, %v4097_v55 }
 0x697   :  { %v4432_v12 = vpop.f32.mrf.mxu1 }
 0x69f   :  { %v4482_v63 = vpop.f32.mrf.mxu1 }
 0x6a0   :  { %v4483_v21 = vadd.f32 %v4482_v63, %v4098_v29 }
 0x6a5   :  { %v4443_v16 = vpop.f32.mrf.mxu2 }
 0x6a6   :  { %v4444_v48 = vadd.f32 %v4443_v16, %v4431_v59 }
 0x6a7   :  { %v4484_v26 = vpop.f32.mrf.mxu1 }
 0x6ad   :  { %v4445_v19 = vpop.f32.mrf.mxu2 }
 0x6b5   :  { %v4495_v20 = vpop.f32.mrf.mxu2 }
 0x6b6   :  { %v4456_v52 = vpop.f32.mrf.mxu3  ;;  %v4496_v0 = vadd.f32 %v4495_v20, %v4483_v21 }
 0x6b7   :  { %v4457_v6 = vadd.f32 %v4456_v52, %v4444_v48 }
 0x6bd   :  { %v4497_v27 = vpop.f32.mrf.mxu2 }
 0x6be   :  { %v4458_v53 = vpop.f32.mrf.mxu3 }
 0x6c6   :  { %v4508_v54 = vpop.f32.mrf.mxu3 }
 0x6c7   :  { %v4509_v62 = vadd.f32 %v4508_v54, %v4496_v0 }
 0x6ce   :  { %v4510_v28 = vpop.f32.mrf.mxu3 }
 0x6d0   :  { %v4469_v22 = vpop.f32.mrf.mxu0 }
 0x6d1   :  { %v4470_v1 = vadd.f32 %v4469_v22, %v4457_v6 }
 0x6d3   :  { %4525 = vst [vmem:[#allocation2] sm:$0x3] %v4470_v1 }
 0x6d4   :  { %4537 = dma.vmem_to_hbm [thread:$0]  %s4533_s17, 32, %s4535_s19, [#allocation3]  }
 0x6d8   :  { %v4471_v47 = vpop.f32.mrf.mxu0 }
 0x6e0   :  { %v4521_v4 = vpop.f32.mrf.mxu0 }
 0x6e1   :  { %v4522_v40 = vadd.f32 %v4521_v4, %v4509_v62 }
 0x6e3   :  { %4526 = vst [vmem:[#allocation4] sm:$0x3] %v4522_v40 }
 0x6e4   :  { %4548 = dma.vmem_to_hbm [thread:$0]  %s4544_s20, 32, %s4546_s22, [#allocation5]  }
 0x6e8   :  { %v4523_v31 = vpop.f32.mrf.mxu0 }
 0x6e9   :  { %6729 = dma.done.wait [#allocation3], 32  }
 0x6ea   :  { %6730 = vsyncadd [#allocation3], 4294967264 }
 0x6eb   :  { %6731 = dma.done.wait [#allocation5], 32  }
 0x6ec   :  { %6732 = vsyncadd [#allocation5], 4294967264 }
 0x6ed   :  { %4557 = vsyncpa [#allocation3], 1 }
 0x6ee   :  { %4558 = vsyncpa [#allocation5], 1 }

</bundles_post_ra>
